<compile_context>
chip_gen: v6e
topology: v6e:2x2x1
jax: 0.10.0
libtpu: 0.0.40
codegen_flags: <defaults>
</compile_context>

<pallas_src>
import math

import jax
import jax.numpy as jnp
from jax import lax
from jax.experimental import pallas as pl
from jax.experimental.pallas import tpu as pltpu

# ---- hyperparameters consistent with the module's __init__ ----
EMBED_DIM = 32       # embed_dim
NUM_FEATURES = 4     # num_features
FEATURE_DIM = 32     # feature_dim (astro_feature_dim)
NUM_HEADS = 2        # num_astro_heads
HEAD_DIM = FEATURE_DIM // NUM_HEADS
LN_EPS = 1e-5
MASK_EPS = 1e-6
TOKEN_TILE = 1024    # tokens per grid step (multiple of 8 -> MXU-aligned M)


def _round_up(n, m):
    return ((n + m - 1) // m) * m


# --------------------------------------------------------------------------
# Constant packing / selection matrices (built once in the wrapper).
# Packed feature lane layout:   c = f*32 + h*16 + d          (128 lanes)
# Score column layout:          col = f*8 + h*4 + g           (32 columns)
# Product lane layout:          j = f*128 + g*32 + h*16 + d   (512 lanes)
# --------------------------------------------------------------------------
def _constant_matrices():
    F, D, H, Dh = NUM_FEATURES, FEATURE_DIM, NUM_HEADS, HEAD_DIM
    FD, P, SC = F * D, F * F * D, F * F * H          # 128, 512, 32
    f32 = jnp.float32
    i128 = jnp.arange(FD)
    i512 = jnp.arange(P)
    isc = jnp.arange(SC)

    # score-column decomposition: col = f*(F*H) + h*F + g
    col_f = isc // (F * H)
    col_g = isc % F
    # product-lane decomposition: j = f*FD + g*D + h*Dh + d
    j_f = i512 // FD
    j_g = (i512 % FD) // D
    j_h = (i512 % D) // Dh
    j_dd = i512 % D                                   # dd = h*Dh + d
    j_col = j_f * (F * H) + j_h * F + j_g             # score column fed by lane j

    # |xp| (T,128) -> key-feature abs-sum replicated into score-column layout
    amask = ((i128[:, None] // D) == col_g[None, :]).astype(f32)           # (128, 32)
    # qp (T,128) -> qrep (T,512): q_f replicated across all key features g
    repq = (i128[:, None] == (j_f * D + j_dd)[None, :]).astype(f32)        # (128, 512)
    # prod (T,512) -> scores (T,32): sum over head-dim d
    ssum = (j_col[:, None] == isc[None, :]).astype(f32)                    # (512, 32)
    # per-(f,h) group sum of exp(scores), broadcast back to the 4 g-columns
    dsum = ((isc[:, None] // F) == (isc[None, :] // F)).astype(f32)        # (32, 32)
    # head-average attention weights, placed at output column f*F + g
    wavg = ((col_f * F + col_g)[:, None]
            == jnp.arange(F * F)[None, :]).astype(f32) / H                 # (32, 16)
    # p (T,32) -> (T,512): broadcast each p[f,h,g] over the 16 head-dim lanes
    pexp = (isc[:, None] == j_col[None, :]).astype(f32)                    # (32, 512)
    # (T,512) context product -> (T,128): sum over key feature g
    ctxsum = ((j_f * D + j_dd)[:, None] == i128[None, :]).astype(f32)      # (512, 128)
    # per-feature (32-lane segment) mean, broadcast back to 128 lanes
    aavg = ((i128[:, None] // D) == (i128[None, :] // D)).astype(f32) / D  # (128, 128)
    return amask, repq, ssum, dsum, wavg, pexp, ctxsum, aavg


# --------------------------------------------------------------------------
# Fused kernel: proj -> MHA (w/ key_padding_mask) -> LN1 -> FFN -> LN2 -> out_proj
# One grid step processes a (T, EMBED_DIM) tile of tokens; everything stays
# lane-packed at 128 (or 512 for the short-lived attention products).
# --------------------------------------------------------------------------
def _fused_kernel(x_ref,
                  projw_ref, projb_ref,
                  wq_ref, bq_ref, wk_ref, bk_ref, wv_ref, bv_ref,
                  amask_ref, repq_ref, ssum_ref, dsum_ref, wavg_ref,
                  pexp_ref, ctxsum_ref,
                  ow_ref, ob_ref,
                  aavg_ref,
                  ln1g_ref, ln1b_ref,
                  f1w_ref, f1b_ref, f2w_ref, f2b_ref, f3w_ref, f3b_ref,
                  ln2g_ref, ln2b_ref,
                  outw_ref, outb_ref,
                  out_ref, attnw_ref):
    F = NUM_FEATURES

    def mm(a, b):
        return jnp.dot(a, b, preferred_element_type=jnp.float32)

    aavg = aavg_ref[...]

    def seg_ln(z, g, b):
        # LayerNorm over each 32-lane feature segment, packed layout preserved.
        mu = mm(z, aavg)
        zc = z - mu
        var = mm(zc * zc, aavg)
        return zc * lax.rsqrt(var + LN_EPS) * g + b

    x = x_ref[...]                                           # (T, 32)

    # --- input projection: one full-width dot, lane-packed result -----------
    xp = mm(x, projw_ref[...]) + projb_ref[...]              # (T, 128)

    # --- packed Q/K/V via block-diagonal weights (1/sqrt(Dh) folded in Wq) --
    qp = mm(xp, wq_ref[...]) + bq_ref[...]                   # (T, 128)
    kp = mm(xp, wk_ref[...]) + bk_ref[...]                   # (T, 128)
    vp = mm(xp, wv_ref[...]) + bv_ref[...]                   # (T, 128)

    # --- key_padding_mask replicated straight into score-column layout ------
    masked = mm(jnp.abs(xp), amask_ref[...]) < MASK_EPS      # (T, 32) bool

    # --- attention scores for all (query f, key g, head h) at once ----------
    qrep = mm(qp, repq_ref[...])                             # (T, 512)
    krep = jnp.concatenate([kp] * F, axis=-1)                # (T, 512) cheap copies
    scores = mm(qrep * krep, ssum_ref[...])                  # (T, 32)
    scores = jnp.where(masked, -jnp.inf, scores)

    # --- softmax over the key-feature axis g (4 entries per (f,h) group) ----
    m = jnp.max(scores, axis=-1, keepdims=True)              # per-token max (stability)
    e = jnp.exp(scores - m)                                   # masked -> exp(-inf) = 0
    denom = mm(e, dsum_ref[...])                             # group sum, broadcast back
    p = e / denom                                             # (T, 32)
    # NOTE: a token whose 4 projected features are all "masked" yields 0/0 =
    # NaN here, exactly as the PyTorch / pure-JAX reference does.

    # --- head-averaged attention weights in a single small matmul -----------
    attnw_ref[...] = mm(p, wavg_ref[...]).astype(attnw_ref.dtype)   # (T, 16)

    # --- context + MHA out-projection ----------------------------------------
    prep = mm(p, pexp_ref[...])                              # (T, 512)
    vrep = jnp.concatenate([vp] * F, axis=-1)                # (T, 512)
    ctx = mm(prep * vrep, ctxsum_ref[...])                   # (T, 128)
    attn_out = mm(ctx, ow_ref[...]) + ob_ref[...]            # (T, 128)

    # --- residual + LN1, FFN (ReLU), residual + LN2 (dropout = identity) ----
    h1 = seg_ln(xp + attn_out, ln1g_ref[...], ln1b_ref[...])        # (T, 128)
    z = jnp.maximum(mm(h1, f1w_ref[...]) + f1b_ref[...], 0.0)       # (T, 512)
    z = jnp.maximum(mm(z, f2w_ref[...]) + f2b_ref[...], 0.0)        # (T, 256)
    z = mm(z, f3w_ref[...]) + f3b_ref[...]                          # (T, 128)
    h2 = seg_ln(h1 + z, ln2g_ref[...], ln2b_ref[...])               # (T, 128)

    # --- final out_proj on the packed layout ---------------------------------
    out_ref[...] = (mm(h2, outw_ref[...]) + outb_ref[...]).astype(out_ref.dtype)


# --------------------------------------------------------------------------
# Wrapper: weight pre-packing (free XLA-side reshapes/krons) + pallas_call
# --------------------------------------------------------------------------
def _prep_weights(p):
    F, D = NUM_FEATURES, FEATURE_DIM
    scale = 1.0 / math.sqrt(HEAD_DIM)
    eye_f = jnp.eye(F, dtype=jnp.float32)

    def bd(w):                       # per-feature weight -> block-diagonal packed weight
        return jnp.kron(eye_f, w)

    def tl(b):                       # per-feature bias/gain -> lane-packed (1, F*n)
        return jnp.tile(b, (1, F))

    wq = p["in_w"][:, :D] * scale
    bq = p["in_b"][:, :D] * scale
    wk = p["in_w"][:, D:2 * D]
    bk = p["in_b"][:, D:2 * D]
    wv = p["in_w"][:, 2 * D:]
    bv = p["in_b"][:, 2 * D:]

    amask, repq, ssum, dsum, wavg, pexp, ctxsum, aavg = _constant_matrices()

    return (p["proj_w"], p["proj_b"],
            bd(wq), tl(bq), bd(wk), tl(bk), bd(wv), tl(bv),
            amask, repq, ssum, dsum, wavg, pexp, ctxsum,
            bd(p["attn_out_w"]), tl(p["attn_out_b"]),
            aavg,
            tl(p["ln1_g"]), tl(p["ln1_b"]),
            bd(p["ffn1_w"]), tl(p["ffn1_b"]),
            bd(p["ffn2_w"]), tl(p["ffn2_b"]),
            bd(p["ffn3_w"]), tl(p["ffn3_b"]),
            tl(p["ln2_g"]), tl(p["ln2_b"]),
            p["out_w"], p["out_b"])


def astro_attention_block_forward(x, p):
    B, S, E = x.shape
    bn = B * S
    F = NUM_FEATURES

    # Token tile: as large as possible, but guarantee >=2 grid steps whenever
    # possible so both v7x TensorCores get work (token axis is "parallel").
    tile = max(8, min(TOKEN_TILE, _round_up((bn + 1) // 2, 8)))
    bn_pad = _round_up(bn, tile)
    x2d = x.reshape(bn, E)
    if bn_pad != bn:
        x2d = jnp.pad(x2d, ((0, bn_pad - bn), (0, 0)))

    w_args = _prep_weights(p)

    def full_spec(a):
        return pl.BlockSpec(a.shape, lambda i: (0, 0))

    in_specs = [pl.BlockSpec((tile, E), lambda i: (i, 0))]
    in_specs += [full_spec(a) for a in w_args]
    out_specs = (pl.BlockSpec((tile, E), lambda i: (i, 0)),
                 pl.BlockSpec((tile, F * F), lambda i: (i, 0)))
    out_shape = (jax.ShapeDtypeStruct((bn_pad, E), jnp.float32),
                 jax.ShapeDtypeStruct((bn_pad, F * F), jnp.float32))

    out2d, attnw2d = pl.pallas_call(
        _fused_kernel,
        grid=(bn_pad // tile,),
        out_shape=out_shape,
        in_specs=in_specs,
        out_specs=out_specs,
        compiler_params=pltpu.CompilerParams(
            dimension_semantics=("parallel",),
            vmem_limit_bytes=40 * 1024 * 1024),
    )(x2d, *w_args)

    out = out2d[:bn].reshape(B, S, E)
    attn_w = attnw2d[:bn].reshape(bn, F, F)
    return out, attn_w


# --------------------------------------------------------------------------
# Deterministic parameter init (shapes follow the module's __init__)
# --------------------------------------------------------------------------
def init_params(key):
    ks = jax.random.split(key, 16)
    F, D, E = NUM_FEATURES, FEATURE_DIM, EMBED_DIM

    def w(k, shape, scale=0.1):
        return (scale * jax.random.normal(k, shape)).astype(jnp.float32)

    return {
        "proj_w": w(ks[0], (E, F * D)),
        "proj_b": w(ks[1], (1, F * D), 0.01),
        "in_w": w(ks[2], (D, 3 * D)),                 # MHA packed in_proj (transposed)
        "in_b": w(ks[3], (1, 3 * D), 0.01),
        "attn_out_w": w(ks[4], (D, D)),
        "attn_out_b": w(ks[5], (1, D), 0.01),
        "ln1_g": jnp.ones((1, D), jnp.float32),
        "ln1_b": jnp.zeros((1, D), jnp.float32),
        "ffn1_w": w(ks[6], (D, 4 * D)),
        "ffn1_b": w(ks[7], (1, 4 * D), 0.01),
        "ffn2_w": w(ks[8], (4 * D, 2 * D)),
        "ffn2_b": w(ks[9], (1, 2 * D), 0.01),
        "ffn3_w": w(ks[10], (2 * D, D)),
        "ffn3_b": w(ks[11], (1, D), 0.01),
        "ln2_g": jnp.ones((1, D), jnp.float32),
        "ln2_b": jnp.zeros((1, D), jnp.float32),
        "out_w": w(ks[12], (F * D, E)),
        "out_b": w(ks[13], (1, E), 0.01),
    }


# --------------------------------------------------------------------------
# Pure-JAX reference of the same forward pass (for correctness check)
# --------------------------------------------------------------------------
def reference_forward(x, p):
    B, S, E = x.shape
    bn = B * S
    F, D, H, Dh = NUM_FEATURES, FEATURE_DIM, NUM_HEADS, HEAD_DIM
    xp = x.reshape(bn, E) @ p["proj_w"] + p["proj_b"]
    xf = xp.reshape(bn, F, D)
    mask = jnp.sum(jnp.abs(xf), axis=-1) < MASK_EPS                     # (bn, F)
    qkv = xf @ p["in_w"] + p["in_b"]
    q = qkv[..., :D] / math.sqrt(Dh)
    k = qkv[..., D:2 * D]
    v = qkv[..., 2 * D:]
    qh = q.reshape(bn, F, H, Dh)
    kh = k.reshape(bn, F, H, Dh)
    vh = v.reshape(bn, F, H, Dh)
    s = jnp.einsum("bnhd,bmhd->bhnm", qh, kh)
    s = jnp.where(mask[:, None, None, :], -jnp.inf, s)
    pw = jax.nn.softmax(s, axis=-1)
    attn_w = jnp.mean(pw, axis=1)
    ctx = jnp.einsum("bhnm,bmhd->bnhd", pw, vh).reshape(bn, F, D)
    attn_out = ctx @ p["attn_out_w"] + p["attn_out_b"]

    def ln(z, g, b):
        mu = jnp.mean(z, -1, keepdims=True)
        var = jnp.mean((z - mu) ** 2, -1, keepdims=True)
        return (z - mu) / jnp.sqrt(var + LN_EPS) * g + b

    h1 = ln(xf + attn_out, p["ln1_g"], p["ln1_b"])
    f = jax.nn.relu(h1 @ p["ffn1_w"] + p["ffn1_b"])
    f = jax.nn.relu(f @ p["ffn2_w"] + p["ffn2_b"])
    f = f @ p["ffn3_w"] + p["ffn3_b"]
    h2 = ln(h1 + f, p["ln2_g"], p["ln2_b"])
    out = h2.reshape(bn, F * D) @ p["out_w"] + p["out_b"]
    return out.reshape(B, S, E), attn_w


if __name__ == "__main__":
    key = jax.random.PRNGKey(0)
    pkey, xkey = jax.random.split(key)
    params = init_params(pkey)

    B, S = 2, 8
    x = jax.random.normal(xkey, (B, S, EMBED_DIM), dtype=jnp.float32)

    out, attn_w = jax.jit(astro_attention_block_forward)(x, params)
    out = jax.block_until_ready(out)
    attn_w = jax.block_until_ready(attn_w)

    ref_out, ref_attn = reference_forward(x, params)
    assert out.shape == (B, S, EMBED_DIM)
    assert attn_w.shape == (B * S, NUM_FEATURES, NUM_FEATURES)
    assert bool(jnp.allclose(out, ref_out, atol=2e-3, rtol=2e-3))
    assert bool(jnp.allclose(attn_w, ref_attn, atol=2e-3, rtol=2e-3))

    print("KERNEL_OK")
</pallas_src>

<mosaic_0001>
module attributes {stable_mosaic.version = 11 : i64} {
  func.func @_fused_kernel(%arg0: i32, %arg1: memref<8x32xf32, #tpu.memory_space<vmem>>, %arg2: memref<32x128xf32, #tpu.memory_space<vmem>>, %arg3: memref<1x128xf32, #tpu.memory_space<vmem>>, %arg4: memref<128x128xf32, #tpu.memory_space<vmem>>, %arg5: memref<1x128xf32, #tpu.memory_space<vmem>>, %arg6: memref<128x128xf32, #tpu.memory_space<vmem>>, %arg7: memref<1x128xf32, #tpu.memory_space<vmem>>, %arg8: memref<128x128xf32, #tpu.memory_space<vmem>>, %arg9: memref<1x128xf32, #tpu.memory_space<vmem>>, %arg10: memref<128x32xf32, #tpu.memory_space<vmem>>, %arg11: memref<128x512xf32, #tpu.memory_space<vmem>>, %arg12: memref<512x32xf32, #tpu.memory_space<vmem>>, %arg13: memref<32x32xf32, #tpu.memory_space<vmem>>, %arg14: memref<32x16xf32, #tpu.memory_space<vmem>>, %arg15: memref<32x512xf32, #tpu.memory_space<vmem>>, %arg16: memref<512x128xf32, #tpu.memory_space<vmem>>, %arg17: memref<128x128xf32, #tpu.memory_space<vmem>>, %arg18: memref<1x128xf32, #tpu.memory_space<vmem>>, %arg19: memref<128x128xf32, #tpu.memory_space<vmem>>, %arg20: memref<1x128xf32, #tpu.memory_space<vmem>>, %arg21: memref<1x128xf32, #tpu.memory_space<vmem>>, %arg22: memref<128x512xf32, #tpu.memory_space<vmem>>, %arg23: memref<1x512xf32, #tpu.memory_space<vmem>>, %arg24: memref<512x256xf32, #tpu.memory_space<vmem>>, %arg25: memref<1x256xf32, #tpu.memory_space<vmem>>, %arg26: memref<256x128xf32, #tpu.memory_space<vmem>>, %arg27: memref<1x128xf32, #tpu.memory_space<vmem>>, %arg28: memref<1x128xf32, #tpu.memory_space<vmem>>, %arg29: memref<1x128xf32, #tpu.memory_space<vmem>>, %arg30: memref<128x32xf32, #tpu.memory_space<vmem>>, %arg31: memref<1x32xf32, #tpu.memory_space<vmem>>, %arg32: memref<8x32xf32, #tpu.memory_space<vmem>>, %arg33: memref<8x16xf32, #tpu.memory_space<vmem>>) attributes {dimension_semantics = [#tpu.dimension_semantics<parallel>], iteration_bounds = array<i64: 2>, scalar_prefetch = 0 : i64, scratch_operands = 0 : i64, tpu.core_type = #tpu.core_type<tc>, window_params = [{transform_indices = @transform_0, window_bounds = array<i64: 8, 32>}, {pipeline_mode = #tpu.pipeline_mode<synchronous>, transform_indices = @transform_1, window_bounds = array<i64: 32, 128>}, {pipeline_mode = #tpu.pipeline_mode<synchronous>, transform_indices = @transform_2, window_bounds = array<i64: 1, 128>}, {pipeline_mode = #tpu.pipeline_mode<synchronous>, transform_indices = @transform_3, window_bounds = array<i64: 128, 128>}, {pipeline_mode = #tpu.pipeline_mode<synchronous>, transform_indices = @transform_4, window_bounds = array<i64: 1, 128>}, {pipeline_mode = #tpu.pipeline_mode<synchronous>, transform_indices = @transform_5, window_bounds = array<i64: 128, 128>}, {pipeline_mode = #tpu.pipeline_mode<synchronous>, transform_indices = @transform_6, window_bounds = array<i64: 1, 128>}, {pipeline_mode = #tpu.pipeline_mode<synchronous>, transform_indices = @transform_7, window_bounds = array<i64: 128, 128>}, {pipeline_mode = #tpu.pipeline_mode<synchronous>, transform_indices = @transform_8, window_bounds = array<i64: 1, 128>}, {pipeline_mode = #tpu.pipeline_mode<synchronous>, transform_indices = @transform_9, window_bounds = array<i64: 128, 32>}, {pipeline_mode = #tpu.pipeline_mode<synchronous>, transform_indices = @transform_10, window_bounds = array<i64: 128, 512>}, {pipeline_mode = #tpu.pipeline_mode<synchronous>, transform_indices = @transform_11, window_bounds = array<i64: 512, 32>}, {pipeline_mode = #tpu.pipeline_mode<synchronous>, transform_indices = @transform_12, window_bounds = array<i64: 32, 32>}, {pipeline_mode = #tpu.pipeline_mode<synchronous>, transform_indices = @transform_13, window_bounds = array<i64: 32, 16>}, {pipeline_mode = #tpu.pipeline_mode<synchronous>, transform_indices = @transform_14, window_bounds = array<i64: 32, 512>}, {pipeline_mode = #tpu.pipeline_mode<synchronous>, transform_indices = @transform_15, window_bounds = array<i64: 512, 128>}, {pipeline_mode = #tpu.pipeline_mode<synchronous>, transform_indices = @transform_16, window_bounds = array<i64: 128, 128>}, {pipeline_mode = #tpu.pipeline_mode<synchronous>, transform_indices = @transform_17, window_bounds = array<i64: 1, 128>}, {pipeline_mode = #tpu.pipeline_mode<synchronous>, transform_indices = @transform_18, window_bounds = array<i64: 128, 128>}, {pipeline_mode = #tpu.pipeline_mode<synchronous>, transform_indices = @transform_19, window_bounds = array<i64: 1, 128>}, {pipeline_mode = #tpu.pipeline_mode<synchronous>, transform_indices = @transform_20, window_bounds = array<i64: 1, 128>}, {pipeline_mode = #tpu.pipeline_mode<synchronous>, transform_indices = @transform_21, window_bounds = array<i64: 128, 512>}, {pipeline_mode = #tpu.pipeline_mode<synchronous>, transform_indices = @transform_22, window_bounds = array<i64: 1, 512>}, {pipeline_mode = #tpu.pipeline_mode<synchronous>, transform_indices = @transform_23, window_bounds = array<i64: 512, 256>}, {pipeline_mode = #tpu.pipeline_mode<synchronous>, transform_indices = @transform_24, window_bounds = array<i64: 1, 256>}, {pipeline_mode = #tpu.pipeline_mode<synchronous>, transform_indices = @transform_25, window_bounds = array<i64: 256, 128>}, {pipeline_mode = #tpu.pipeline_mode<synchronous>, transform_indices = @transform_26, window_bounds = array<i64: 1, 128>}, {pipeline_mode = #tpu.pipeline_mode<synchronous>, transform_indices = @transform_27, window_bounds = array<i64: 1, 128>}, {pipeline_mode = #tpu.pipeline_mode<synchronous>, transform_indices = @transform_28, window_bounds = array<i64: 1, 128>}, {pipeline_mode = #tpu.pipeline_mode<synchronous>, transform_indices = @transform_29, window_bounds = array<i64: 128, 32>}, {pipeline_mode = #tpu.pipeline_mode<synchronous>, transform_indices = @transform_30, window_bounds = array<i64: 1, 32>}, {transform_indices = @transform_31, window_bounds = array<i64: 8, 32>}, {transform_indices = @transform_32, window_bounds = array<i64: 8, 16>}]} {
    %c0 = arith.constant 0 : index
    %c0_0 = arith.constant 0 : index
    %0 = vector.load %arg19[%c0, %c0_0] : memref<128x128xf32, #tpu.memory_space<vmem>>, vector<128x128xf32>
    %c0_1 = arith.constant 0 : index
    %c0_2 = arith.constant 0 : index
    %1 = vector.load %arg1[%c0_1, %c0_2] : memref<8x32xf32, #tpu.memory_space<vmem>>, vector<8x32xf32>
    %c0_3 = arith.constant 0 : index
    %c0_4 = arith.constant 0 : index
    %2 = vector.load %arg2[%c0_3, %c0_4] : memref<32x128xf32, #tpu.memory_space<vmem>>, vector<32x128xf32>
    %cst = arith.constant dense<0.000000e+00> : vector<8x128xf32>
    %3 = tpu.matmul %1, %2, %cst {dimension_numbers = #tpu.dot_dimension_numbers<[1], [0], [0], [1], [0, 0, 1, 1], [], []>} : vector<8x32xf32>, vector<32x128xf32>, vector<8x128xf32> -> vector<8x128xf32>
    %c0_5 = arith.constant 0 : index
    %c0_6 = arith.constant 0 : index
    %4 = vector.load %arg3[%c0_5, %c0_6] : memref<1x128xf32, #tpu.memory_space<vmem>>, vector<1x128xf32>
    %5 = vector.broadcast %4 : vector<1x128xf32> to vector<8x128xf32>
    %6 = arith.addf %3, %5 : vector<8x128xf32>
    %c0_7 = arith.constant 0 : index
    %c0_8 = arith.constant 0 : index
    %7 = vector.load %arg4[%c0_7, %c0_8] : memref<128x128xf32, #tpu.memory_space<vmem>>, vector<128x128xf32>
    %cst_9 = arith.constant dense<0.000000e+00> : vector<8x128xf32>
    %8 = tpu.matmul %6, %7, %cst_9 {dimension_numbers = #tpu.dot_dimension_numbers<[1], [0], [0], [1], [0, 0, 1, 1], [], []>} : vector<8x128xf32>, vector<128x128xf32>, vector<8x128xf32> -> vector<8x128xf32>
    %c0_10 = arith.constant 0 : index
    %c0_11 = arith.constant 0 : index
    %9 = vector.load %arg5[%c0_10, %c0_11] : memref<1x128xf32, #tpu.memory_space<vmem>>, vector<1x128xf32>
    %10 = vector.broadcast %9 : vector<1x128xf32> to vector<8x128xf32>
    %11 = arith.addf %8, %10 : vector<8x128xf32>
    %c0_12 = arith.constant 0 : index
    %c0_13 = arith.constant 0 : index
    %12 = vector.load %arg6[%c0_12, %c0_13] : memref<128x128xf32, #tpu.memory_space<vmem>>, vector<128x128xf32>
    %cst_14 = arith.constant dense<0.000000e+00> : vector<8x128xf32>
    %13 = tpu.matmul %6, %12, %cst_14 {dimension_numbers = #tpu.dot_dimension_numbers<[1], [0], [0], [1], [0, 0, 1, 1], [], []>} : vector<8x128xf32>, vector<128x128xf32>, vector<8x128xf32> -> vector<8x128xf32>
    %c0_15 = arith.constant 0 : index
    %c0_16 = arith.constant 0 : index
    %14 = vector.load %arg7[%c0_15, %c0_16] : memref<1x128xf32, #tpu.memory_space<vmem>>, vector<1x128xf32>
    %15 = vector.broadcast %14 : vector<1x128xf32> to vector<8x128xf32>
    %16 = arith.addf %13, %15 : vector<8x128xf32>
    %c0_17 = arith.constant 0 : index
    %c0_18 = arith.constant 0 : index
    %17 = vector.load %arg8[%c0_17, %c0_18] : memref<128x128xf32, #tpu.memory_space<vmem>>, vector<128x128xf32>
    %cst_19 = arith.constant dense<0.000000e+00> : vector<8x128xf32>
    %18 = tpu.matmul %6, %17, %cst_19 {dimension_numbers = #tpu.dot_dimension_numbers<[1], [0], [0], [1], [0, 0, 1, 1], [], []>} : vector<8x128xf32>, vector<128x128xf32>, vector<8x128xf32> -> vector<8x128xf32>
    %c0_20 = arith.constant 0 : index
    %c0_21 = arith.constant 0 : index
    %19 = vector.load %arg9[%c0_20, %c0_21] : memref<1x128xf32, #tpu.memory_space<vmem>>, vector<1x128xf32>
    %20 = vector.broadcast %19 : vector<1x128xf32> to vector<8x128xf32>
    %21 = arith.addf %18, %20 : vector<8x128xf32>
    %22 = math.absf %6 : vector<8x128xf32>
    %c0_22 = arith.constant 0 : index
    %c0_23 = arith.constant 0 : index
    %23 = vector.load %arg10[%c0_22, %c0_23] : memref<128x32xf32, #tpu.memory_space<vmem>>, vector<128x32xf32>
    %cst_24 = arith.constant dense<0.000000e+00> : vector<8x32xf32>
    %24 = tpu.matmul %22, %23, %cst_24 {dimension_numbers = #tpu.dot_dimension_numbers<[1], [0], [0], [1], [0, 0, 1, 1], [], []>} : vector<8x128xf32>, vector<128x32xf32>, vector<8x32xf32> -> vector<8x32xf32>
    %cst_25 = arith.constant 9.99999997E-7 : f32
    %25 = vector.broadcast %cst_25 : f32 to vector<8x32xf32>
    %26 = arith.cmpf olt, %24, %25 : vector<8x32xf32>
    %c0_26 = arith.constant 0 : index
    %c0_27 = arith.constant 0 : index
    %27 = vector.load %arg11[%c0_26, %c0_27] : memref<128x512xf32, #tpu.memory_space<vmem>>, vector<128x512xf32>
    %cst_28 = arith.constant dense<0.000000e+00> : vector<8x512xf32>
    %28 = tpu.matmul %11, %27, %cst_28 {dimension_numbers = #tpu.dot_dimension_numbers<[1], [0], [0], [1], [0, 0, 1, 1], [], []>} : vector<8x128xf32>, vector<128x512xf32>, vector<8x512xf32> -> vector<8x512xf32>
    %29 = tpu.concatenate %16, %16, %16, %16 in 1 : vector<8x128xf32>, vector<8x128xf32>, vector<8x128xf32>, vector<8x128xf32> -> vector<8x512xf32>
    %30 = arith.mulf %28, %29 : vector<8x512xf32>
    %c0_29 = arith.constant 0 : index
    %c0_30 = arith.constant 0 : index
    %31 = vector.load %arg12[%c0_29, %c0_30] : memref<512x32xf32, #tpu.memory_space<vmem>>, vector<512x32xf32>
    %cst_31 = arith.constant dense<0.000000e+00> : vector<8x32xf32>
    %32 = tpu.matmul %30, %31, %cst_31 {dimension_numbers = #tpu.dot_dimension_numbers<[1], [0], [0], [1], [0, 0, 1, 1], [], []>} : vector<8x512xf32>, vector<512x32xf32>, vector<8x32xf32> -> vector<8x32xf32>
    %cst_32 = arith.constant 0xFF800000 : f32
    %33 = vector.broadcast %cst_32 : f32 to vector<8x32xf32>
    %34 = arith.select %26, %33, %32 : vector<8x32xi1>, vector<8x32xf32>
    %cst_33 = arith.constant dense<0xFF800000> : vector<8xf32>
    %35 = vector.multi_reduction <maximumf>, %34, %cst_33 [1] : vector<8x32xf32> to vector<8xf32>
    %36 = vector.shape_cast %35 : vector<8xf32> to vector<8x1xf32>
    %37 = vector.broadcast %36 : vector<8x1xf32> to vector<8x32xf32>
    %38 = arith.subf %34, %37 : vector<8x32xf32>
    %39 = math.exp %38 : vector<8x32xf32>
    %c0_34 = arith.constant 0 : index
    %c0_35 = arith.constant 0 : index
    %40 = vector.load %arg13[%c0_34, %c0_35] : memref<32x32xf32, #tpu.memory_space<vmem>>, vector<32x32xf32>
    %cst_36 = arith.constant dense<0.000000e+00> : vector<8x32xf32>
    %41 = tpu.matmul %39, %40, %cst_36 {dimension_numbers = #tpu.dot_dimension_numbers<[1], [0], [0], [1], [0, 0, 1, 1], [], []>} : vector<8x32xf32>, vector<32x32xf32>, vector<8x32xf32> -> vector<8x32xf32>
    %42 = arith.divf %39, %41 : vector<8x32xf32>
    %c0_37 = arith.constant 0 : index
    %c0_38 = arith.constant 0 : index
    %43 = vector.load %arg14[%c0_37, %c0_38] : memref<32x16xf32, #tpu.memory_space<vmem>>, vector<32x16xf32>
    %cst_39 = arith.constant dense<0.000000e+00> : vector<8x16xf32>
    %44 = tpu.matmul %42, %43, %cst_39 {dimension_numbers = #tpu.dot_dimension_numbers<[1], [0], [0], [1], [0, 0, 1, 1], [], []>} : vector<8x32xf32>, vector<32x16xf32>, vector<8x16xf32> -> vector<8x16xf32>
    %c0_40 = arith.constant 0 : index
    %c0_41 = arith.constant 0 : index
    %45 = vector.load %arg33[%c0_40, %c0_41] : memref<8x16xf32, #tpu.memory_space<vmem>>, vector<8x16xf32>
    tpu.vector_store %arg33[%c0_40, %c0_41], %44 {strides = array<i32>} : memref<8x16xf32, #tpu.memory_space<vmem>>, vector<8x16xf32>,
    %c0_42 = arith.constant 0 : index
    %c0_43 = arith.constant 0 : index
    %46 = vector.load %arg15[%c0_42, %c0_43] : memref<32x512xf32, #tpu.memory_space<vmem>>, vector<32x512xf32>
    %cst_44 = arith.constant dense<0.000000e+00> : vector<8x512xf32>
    %47 = tpu.matmul %42, %46, %cst_44 {dimension_numbers = #tpu.dot_dimension_numbers<[1], [0], [0], [1], [0, 0, 1, 1], [], []>} : vector<8x32xf32>, vector<32x512xf32>, vector<8x512xf32> -> vector<8x512xf32>
    %48 = tpu.concatenate %21, %21, %21, %21 in 1 : vector<8x128xf32>, vector<8x128xf32>, vector<8x128xf32>, vector<8x128xf32> -> vector<8x512xf32>
    %49 = arith.mulf %47, %48 : vector<8x512xf32>
    %c0_45 = arith.constant 0 : index
    %c0_46 = arith.constant 0 : index
    %50 = vector.load %arg16[%c0_45, %c0_46] : memref<512x128xf32, #tpu.memory_space<vmem>>, vector<512x128xf32>
    %cst_47 = arith.constant dense<0.000000e+00> : vector<8x128xf32>
    %51 = tpu.matmul %49, %50, %cst_47 {dimension_numbers = #tpu.dot_dimension_numbers<[1], [0], [0], [1], [0, 0, 1, 1], [], []>} : vector<8x512xf32>, vector<512x128xf32>, vector<8x128xf32> -> vector<8x128xf32>
    %c0_48 = arith.constant 0 : index
    %c0_49 = arith.constant 0 : index
    %52 = vector.load %arg17[%c0_48, %c0_49] : memref<128x128xf32, #tpu.memory_space<vmem>>, vector<128x128xf32>
    %cst_50 = arith.constant dense<0.000000e+00> : vector<8x128xf32>
    %53 = tpu.matmul %51, %52, %cst_50 {dimension_numbers = #tpu.dot_dimension_numbers<[1], [0], [0], [1], [0, 0, 1, 1], [], []>} : vector<8x128xf32>, vector<128x128xf32>, vector<8x128xf32> -> vector<8x128xf32>
    %c0_51 = arith.constant 0 : index
    %c0_52 = arith.constant 0 : index
    %54 = vector.load %arg18[%c0_51, %c0_52] : memref<1x128xf32, #tpu.memory_space<vmem>>, vector<1x128xf32>
    %55 = vector.broadcast %54 : vector<1x128xf32> to vector<8x128xf32>
    %56 = arith.addf %53, %55 : vector<8x128xf32>
    %57 = arith.addf %6, %56 : vector<8x128xf32>
    %c0_53 = arith.constant 0 : index
    %c0_54 = arith.constant 0 : index
    %58 = vector.load %arg20[%c0_53, %c0_54] : memref<1x128xf32, #tpu.memory_space<vmem>>, vector<1x128xf32>
    %c0_55 = arith.constant 0 : index
    %c0_56 = arith.constant 0 : index
    %59 = vector.load %arg21[%c0_55, %c0_56] : memref<1x128xf32, #tpu.memory_space<vmem>>, vector<1x128xf32>
    %cst_57 = arith.constant dense<0.000000e+00> : vector<8x128xf32>
    %60 = tpu.matmul %57, %0, %cst_57 {dimension_numbers = #tpu.dot_dimension_numbers<[1], [0], [0], [1], [0, 0, 1, 1], [], []>} : vector<8x128xf32>, vector<128x128xf32>, vector<8x128xf32> -> vector<8x128xf32>
    %61 = arith.subf %57, %60 : vector<8x128xf32>
    %62 = arith.mulf %61, %61 : vector<8x128xf32>
    %cst_58 = arith.constant dense<0.000000e+00> : vector<8x128xf32>
    %63 = tpu.matmul %62, %0, %cst_58 {dimension_numbers = #tpu.dot_dimension_numbers<[1], [0], [0], [1], [0, 0, 1, 1], [], []>} : vector<8x128xf32>, vector<128x128xf32>, vector<8x128xf32> -> vector<8x128xf32>
    %cst_59 = arith.constant 9.99999974E-6 : f32
    %64 = vector.broadcast %cst_59 : f32 to vector<8x128xf32>
    %65 = arith.addf %63, %64 : vector<8x128xf32>
    %66 = math.rsqrt %65 : vector<8x128xf32>
    %67 = arith.mulf %61, %66 : vector<8x128xf32>
    %68 = vector.broadcast %58 : vector<1x128xf32> to vector<8x128xf32>
    %69 = arith.mulf %67, %68 : vector<8x128xf32>
    %70 = vector.broadcast %59 : vector<1x128xf32> to vector<8x128xf32>
    %71 = arith.addf %69, %70 : vector<8x128xf32>
    %c0_60 = arith.constant 0 : index
    %c0_61 = arith.constant 0 : index
    %72 = vector.load %arg22[%c0_60, %c0_61] : memref<128x512xf32, #tpu.memory_space<vmem>>, vector<128x512xf32>
    %cst_62 = arith.constant dense<0.000000e+00> : vector<8x512xf32>
    %73 = tpu.matmul %71, %72, %cst_62 {dimension_numbers = #tpu.dot_dimension_numbers<[1], [0], [0], [1], [0, 0, 1, 1], [], []>} : vector<8x128xf32>, vector<128x512xf32>, vector<8x512xf32> -> vector<8x512xf32>
    %c0_63 = arith.constant 0 : index
    %c0_64 = arith.constant 0 : index
    %74 = vector.load %arg23[%c0_63, %c0_64] : memref<1x512xf32, #tpu.memory_space<vmem>>, vector<1x512xf32>
    %75 = vector.broadcast %74 : vector<1x512xf32> to vector<8x512xf32>
    %76 = arith.addf %73, %75 : vector<8x512xf32>
    %cst_65 = arith.constant 0.000000e+00 : f32
    %77 = vector.broadcast %cst_65 : f32 to vector<8x512xf32>
    %78 = arith.maximumf %76, %77 : vector<8x512xf32>
    %c0_66 = arith.constant 0 : index
    %c0_67 = arith.constant 0 : index
    %79 = vector.load %arg24[%c0_66, %c0_67] : memref<512x256xf32, #tpu.memory_space<vmem>>, vector<512x256xf32>
    %cst_68 = arith.constant dense<0.000000e+00> : vector<8x256xf32>
    %80 = tpu.matmul %78, %79, %cst_68 {dimension_numbers = #tpu.dot_dimension_numbers<[1], [0], [0], [1], [0, 0, 1, 1], [], []>} : vector<8x512xf32>, vector<512x256xf32>, vector<8x256xf32> -> vector<8x256xf32>
    %c0_69 = arith.constant 0 : index
    %c0_70 = arith.constant 0 : index
    %81 = vector.load %arg25[%c0_69, %c0_70] : memref<1x256xf32, #tpu.memory_space<vmem>>, vector<1x256xf32>
    %82 = vector.broadcast %81 : vector<1x256xf32> to vector<8x256xf32>
    %83 = arith.addf %80, %82 : vector<8x256xf32>
    %cst_71 = arith.constant 0.000000e+00 : f32
    %84 = vector.broadcast %cst_71 : f32 to vector<8x256xf32>
    %85 = arith.maximumf %83, %84 : vector<8x256xf32>
    %c0_72 = arith.constant 0 : index
    %c0_73 = arith.constant 0 : index
    %86 = vector.load %arg26[%c0_72, %c0_73] : memref<256x128xf32, #tpu.memory_space<vmem>>, vector<256x128xf32>
    %cst_74 = arith.constant dense<0.000000e+00> : vector<8x128xf32>
    %87 = tpu.matmul %85, %86, %cst_74 {dimension_numbers = #tpu.dot_dimension_numbers<[1], [0], [0], [1], [0, 0, 1, 1], [], []>} : vector<8x256xf32>, vector<256x128xf32>, vector<8x128xf32> -> vector<8x128xf32>
    %c0_75 = arith.constant 0 : index
    %c0_76 = arith.constant 0 : index
    %88 = vector.load %arg27[%c0_75, %c0_76] : memref<1x128xf32, #tpu.memory_space<vmem>>, vector<1x128xf32>
    %89 = vector.broadcast %88 : vector<1x128xf32> to vector<8x128xf32>
    %90 = arith.addf %87, %89 : vector<8x128xf32>
    %91 = arith.addf %71, %90 : vector<8x128xf32>
    %c0_77 = arith.constant 0 : index
    %c0_78 = arith.constant 0 : index
    %92 = vector.load %arg28[%c0_77, %c0_78] : memref<1x128xf32, #tpu.memory_space<vmem>>, vector<1x128xf32>
    %c0_79 = arith.constant 0 : index
    %c0_80 = arith.constant 0 : index
    %93 = vector.load %arg29[%c0_79, %c0_80] : memref<1x128xf32, #tpu.memory_space<vmem>>, vector<1x128xf32>
    %cst_81 = arith.constant dense<0.000000e+00> : vector<8x128xf32>
    %94 = tpu.matmul %91, %0, %cst_81 {dimension_numbers = #tpu.dot_dimension_numbers<[1], [0], [0], [1], [0, 0, 1, 1], [], []>} : vector<8x128xf32>, vector<128x128xf32>, vector<8x128xf32> -> vector<8x128xf32>
    %95 = arith.subf %91, %94 : vector<8x128xf32>
    %96 = arith.mulf %95, %95 : vector<8x128xf32>
    %cst_82 = arith.constant dense<0.000000e+00> : vector<8x128xf32>
    %97 = tpu.matmul %96, %0, %cst_82 {dimension_numbers = #tpu.dot_dimension_numbers<[1], [0], [0], [1], [0, 0, 1, 1], [], []>} : vector<8x128xf32>, vector<128x128xf32>, vector<8x128xf32> -> vector<8x128xf32>
    %cst_83 = arith.constant 9.99999974E-6 : f32
    %98 = vector.broadcast %cst_83 : f32 to vector<8x128xf32>
    %99 = arith.addf %97, %98 : vector<8x128xf32>
    %100 = math.rsqrt %99 : vector<8x128xf32>
    %101 = arith.mulf %95, %100 : vector<8x128xf32>
    %102 = vector.broadcast %92 : vector<1x128xf32> to vector<8x128xf32>
    %103 = arith.mulf %101, %102 : vector<8x128xf32>
    %104 = vector.broadcast %93 : vector<1x128xf32> to vector<8x128xf32>
    %105 = arith.addf %103, %104 : vector<8x128xf32>
    %c0_84 = arith.constant 0 : index
    %c0_85 = arith.constant 0 : index
    %106 = vector.load %arg30[%c0_84, %c0_85] : memref<128x32xf32, #tpu.memory_space<vmem>>, vector<128x32xf32>
    %cst_86 = arith.constant dense<0.000000e+00> : vector<8x32xf32>
    %107 = tpu.matmul %105, %106, %cst_86 {dimension_numbers = #tpu.dot_dimension_numbers<[1], [0], [0], [1], [0, 0, 1, 1], [], []>} : vector<8x128xf32>, vector<128x32xf32>, vector<8x32xf32> -> vector<8x32xf32>
    %c0_87 = arith.constant 0 : index
    %c0_88 = arith.constant 0 : index
    %108 = vector.load %arg31[%c0_87, %c0_88] : memref<1x32xf32, #tpu.memory_space<vmem>>, vector<1x32xf32>
    %109 = vector.broadcast %108 : vector<1x32xf32> to vector<8x32xf32>
    %110 = arith.addf %107, %109 : vector<8x32xf32>
    %c0_89 = arith.constant 0 : index
    %c0_90 = arith.constant 0 : index
    %111 = vector.load %arg32[%c0_89, %c0_90] : memref<8x32xf32, #tpu.memory_space<vmem>>, vector<8x32xf32>
    tpu.vector_store %arg32[%c0_89, %c0_90], %110 {strides = array<i32>} : memref<8x32xf32, #tpu.memory_space<vmem>>, vector<8x32xf32>,
    return
  }
  func.func @transform_0(%arg0: i32) -> (i32, i32) {
    %c0_i32 = arith.constant 0 : i32
    %c0_i32_0 = arith.constant 0 : i32
    return %arg0, %c0_i32 : i32, i32
  }
  func.func @transform_1(%arg0: i32) -> (i32, i32) {
    %c0_i32 = arith.constant 0 : i32
    %c0_i32_0 = arith.constant 0 : i32
    %c0_i32_1 = arith.constant 0 : i32
    return %c0_i32, %c0_i32_0 : i32, i32
  }
  func.func @transform_2(%arg0: i32) -> (i32, i32) {
    %c0_i32 = arith.constant 0 : i32
    %c0_i32_0 = arith.constant 0 : i32
    %c0_i32_1 = arith.constant 0 : i32
    return %c0_i32, %c0_i32_0 : i32, i32
  }
  func.func @transform_3(%arg0: i32) -> (i32, i32) {
    %c0_i32 = arith.constant 0 : i32
    %c0_i32_0 = arith.constant 0 : i32
    %c0_i32_1 = arith.constant 0 : i32
    return %c0_i32, %c0_i32_0 : i32, i32
  }
  func.func @transform_4(%arg0: i32) -> (i32, i32) {
    %c0_i32 = arith.constant 0 : i32
    %c0_i32_0 = arith.constant 0 : i32
    %c0_i32_1 = arith.constant 0 : i32
    return %c0_i32, %c0_i32_0 : i32, i32
  }
  func.func @transform_5(%arg0: i32) -> (i32, i32) {
    %c0_i32 = arith.constant 0 : i32
    %c0_i32_0 = arith.constant 0 : i32
    %c0_i32_1 = arith.constant 0 : i32
    return %c0_i32, %c0_i32_0 : i32, i32
  }
  func.func @transform_6(%arg0: i32) -> (i32, i32) {
    %c0_i32 = arith.constant 0 : i32
    %c0_i32_0 = arith.constant 0 : i32
    %c0_i32_1 = arith.constant 0 : i32
    return %c0_i32, %c0_i32_0 : i32, i32
  }
  func.func @transform_7(%arg0: i32) -> (i32, i32) {
    %c0_i32 = arith.constant 0 : i32
    %c0_i32_0 = arith.constant 0 : i32
    %c0_i32_1 = arith.constant 0 : i32
    return %c0_i32, %c0_i32_0 : i32, i32
  }
  func.func @transform_8(%arg0: i32) -> (i32, i32) {
    %c0_i32 = arith.constant 0 : i32
    %c0_i32_0 = arith.constant 0 : i32
    %c0_i32_1 = arith.constant 0 : i32
    return %c0_i32, %c0_i32_0 : i32, i32
  }
  func.func @transform_9(%arg0: i32) -> (i32, i32) {
    %c0_i32 = arith.constant 0 : i32
    %c0_i32_0 = arith.constant 0 : i32
    %c0_i32_1 = arith.constant 0 : i32
    return %c0_i32, %c0_i32_0 : i32, i32
  }
  func.func @transform_10(%arg0: i32) -> (i32, i32) {
    %c0_i32 = arith.constant 0 : i32
    %c0_i32_0 = arith.constant 0 : i32
    %c0_i32_1 = arith.constant 0 : i32
    return %c0_i32, %c0_i32_0 : i32, i32
  }
  func.func @transform_11(%arg0: i32) -> (i32, i32) {
    %c0_i32 = arith.constant 0 : i32
    %c0_i32_0 = arith.constant 0 : i32
    %c0_i32_1 = arith.constant 0 : i32
    return %c0_i32, %c0_i32_0 : i32, i32
  }
  func.func @transform_12(%arg0: i32) -> (i32, i32) {
    %c0_i32 = arith.constant 0 : i32
    %c0_i32_0 = arith.constant 0 : i32
    %c0_i32_1 = arith.constant 0 : i32
    return %c0_i32, %c0_i32_0 : i32, i32
  }
  func.func @transform_13(%arg0: i32) -> (i32, i32) {
    %c0_i32 = arith.constant 0 : i32
    %c0_i32_0 = arith.constant 0 : i32
    %c0_i32_1 = arith.constant 0 : i32
    return %c0_i32, %c0_i32_0 : i32, i32
  }
  func.func @transform_14(%arg0: i32) -> (i32, i32) {
    %c0_i32 = arith.constant 0 : i32
    %c0_i32_0 = arith.constant 0 : i32
    %c0_i32_1 = arith.constant 0 : i32
    return %c0_i32, %c0_i32_0 : i32, i32
  }
  func.func @transform_15(%arg0: i32) -> (i32, i32) {
    %c0_i32 = arith.constant 0 : i32
    %c0_i32_0 = arith.constant 0 : i32
    %c0_i32_1 = arith.constant 0 : i32
    return %c0_i32, %c0_i32_0 : i32, i32
  }
  func.func @transform_16(%arg0: i32) -> (i32, i32) {
    %c0_i32 = arith.constant 0 : i32
    %c0_i32_0 = arith.constant 0 : i32
    %c0_i32_1 = arith.constant 0 : i32
    return %c0_i32, %c0_i32_0 : i32, i32
  }
  func.func @transform_17(%arg0: i32) -> (i32, i32) {
    %c0_i32 = arith.constant 0 : i32
    %c0_i32_0 = arith.constant 0 : i32
    %c0_i32_1 = arith.constant 0 : i32
    return %c0_i32, %c0_i32_0 : i32, i32
  }
  func.func @transform_18(%arg0: i32) -> (i32, i32) {
    %c0_i32 = arith.constant 0 : i32
    %c0_i32_0 = arith.constant 0 : i32
    %c0_i32_1 = arith.constant 0 : i32
    return %c0_i32, %c0_i32_0 : i32, i32
  }
  func.func @transform_19(%arg0: i32) -> (i32, i32) {
    %c0_i32 = arith.constant 0 : i32
    %c0_i32_0 = arith.constant 0 : i32
    %c0_i32_1 = arith.constant 0 : i32
    return %c0_i32, %c0_i32_0 : i32, i32
  }
  func.func @transform_20(%arg0: i32) -> (i32, i32) {
    %c0_i32 = arith.constant 0 : i32
    %c0_i32_0 = arith.constant 0 : i32
    %c0_i32_1 = arith.constant 0 : i32
    return %c0_i32, %c0_i32_0 : i32, i32
  }
  func.func @transform_21(%arg0: i32) -> (i32, i32) {
    %c0_i32 = arith.constant 0 : i32
    %c0_i32_0 = arith.constant 0 : i32
    %c0_i32_1 = arith.constant 0 : i32
    return %c0_i32, %c0_i32_0 : i32, i32
  }
  func.func @transform_22(%arg0: i32) -> (i32, i32) {
    %c0_i32 = arith.constant 0 : i32
    %c0_i32_0 = arith.constant 0 : i32
    %c0_i32_1 = arith.constant 0 : i32
    return %c0_i32, %c0_i32_0 : i32, i32
  }
  func.func @transform_23(%arg0: i32) -> (i32, i32) {
    %c0_i32 = arith.constant 0 : i32
    %c0_i32_0 = arith.constant 0 : i32
    %c0_i32_1 = arith.constant 0 : i32
    return %c0_i32, %c0_i32_0 : i32, i32
  }
  func.func @transform_24(%arg0: i32) -> (i32, i32) {
    %c0_i32 = arith.constant 0 : i32
    %c0_i32_0 = arith.constant 0 : i32
    %c0_i32_1 = arith.constant 0 : i32
    return %c0_i32, %c0_i32_0 : i32, i32
  }
  func.func @transform_25(%arg0: i32) -> (i32, i32) {
    %c0_i32 = arith.constant 0 : i32
    %c0_i32_0 = arith.constant 0 : i32
    %c0_i32_1 = arith.constant 0 : i32
    return %c0_i32, %c0_i32_0 : i32, i32
  }
  func.func @transform_26(%arg0: i32) -> (i32, i32) {
    %c0_i32 = arith.constant 0 : i32
    %c0_i32_0 = arith.constant 0 : i32
    %c0_i32_1 = arith.constant 0 : i32
    return %c0_i32, %c0_i32_0 : i32, i32
  }
  func.func @transform_27(%arg0: i32) -> (i32, i32) {
    %c0_i32 = arith.constant 0 : i32
    %c0_i32_0 = arith.constant 0 : i32
    %c0_i32_1 = arith.constant 0 : i32
    return %c0_i32, %c0_i32_0 : i32, i32
  }
  func.func @transform_28(%arg0: i32) -> (i32, i32) {
    %c0_i32 = arith.constant 0 : i32
    %c0_i32_0 = arith.constant 0 : i32
    %c0_i32_1 = arith.constant 0 : i32
    return %c0_i32, %c0_i32_0 : i32, i32
  }
  func.func @transform_29(%arg0: i32) -> (i32, i32) {
    %c0_i32 = arith.constant 0 : i32
    %c0_i32_0 = arith.constant 0 : i32
    %c0_i32_1 = arith.constant 0 : i32
    return %c0_i32, %c0_i32_0 : i32, i32
  }
  func.func @transform_30(%arg0: i32) -> (i32, i32) {
    %c0_i32 = arith.constant 0 : i32
    %c0_i32_0 = arith.constant 0 : i32
    %c0_i32_1 = arith.constant 0 : i32
    return %c0_i32, %c0_i32_0 : i32, i32
  }
  func.func @transform_31(%arg0: i32) -> (i32, i32) {
    %c0_i32 = arith.constant 0 : i32
    %c0_i32_0 = arith.constant 0 : i32
    return %arg0, %c0_i32 : i32, i32
  }
  func.func @transform_32(%arg0: i32) -> (i32, i32) {
    %c0_i32 = arith.constant 0 : i32
    %c0_i32_0 = arith.constant 0 : i32
    return %arg0, %c0_i32 : i32, i32
  }
}

</mosaic_0001>

<bundles_post_ra>
// kernel: astro_attention_block_forward.1
= control target key start
LH: loop header
LB: loop body
LE: loop exit
PB: predicated region body
PF: predicated region fallthrough
CT: control target
= control target key end

     0   :  { %s4606_s6 = smov 1   ;;  %s4607_s10 = smov 2   ;;  %s5801_s0 = inlined_call_operand.smem [shape: u32[33], index: -1, kind: input, shape index: {}] }
   0x1   :  { %s4649_s5 = sld [smem:[%s5801_s0]]   ;;  %s4608_s14 = smov 3  }
   0x2   :  { %s4654_s9 = sld [smem:[%s5801_s0 + %s4606_s6]]   ;;  %s4609_s18 = smov 4  }
   0x3   :  { %s4659_s13 = sld [smem:[%s5801_s0 + %s4607_s10]]   ;;  %s4610_s22 = smov 5  }
   0x4   :  { %s4664_s17 = sld [smem:[%s5801_s0 + %s4608_s14]]   ;;  %s4611_s26 = smov 6  }
   0x5   :  { %s4669_s21 = sld [smem:[%s5801_s0 + %s4609_s18]]   ;;  %s4612_s30 = smov 7  }
   0x6   :  { %s4674_s25 = sld [smem:[%s5801_s0 + %s4610_s22]]   ;;  %s4613_s4 = smov 8  }
   0x7   :  { %5819 = sst [smem:[#allocation5_spill]] %s4649_s5  ;;  %s4614_s10 = smov 9  }
   0x8   :  { %5820 = sst [smem:[#allocation6_spill]] %s4654_s9  ;;  %s4615_s15 = smov 10  }
   0x9   :  { %5821 = sst [smem:[#allocation7_spill]] %s4659_s13  ;;  %s4616_s20 = smov 11  }
   0xa   :  { %s4679_s29 = sld [smem:[%s5801_s0 + %s4611_s26]]   ;;  %s4617_s26 = smov 12  }
   0xb   :  { %s4684_s3 = sld [smem:[%s5801_s0 + %s4612_s30]]   ;;  %s4618_s1 = smov 13  }
   0xc   :  { %s4689_s8 = sld [smem:[%s5801_s0 + %s4613_s4]]   ;;  %s4619_s7 = smov 14  }
   0xd   :  { %s4694_s14 = sld [smem:[%s5801_s0 + %s4614_s10]]   ;;  %s4621_s22 = smov 16  }
   0xe   :  { %s4699_s19 = sld [smem:[%s5801_s0 + %s4615_s15]]   ;;  %s4620_s15 = smov 15  }
   0xf   :  { %s4704_s24 = sld [smem:[%s5801_s0 + %s4616_s20]]   ;;  %s4622_s28 = smov 17  }
  0x10   :  { %s4709_s30 = sld [smem:[%s5801_s0 + %s4617_s26]]  }
  0x11   :  { %5822 = sst [smem:[#allocation8_spill]] %s4684_s3 }
  0x12   :  { %5823 = sst [smem:[#allocation9_spill]] %s4689_s8 }
  0x13   :  { %5824 = sst [smem:[#allocation10_spill]] %s4694_s14 }
  0x14   :  { %s4714_s6 = sld [smem:[%s5801_s0 + %s4618_s1]]  }
  0x15   :  { %s4719_s12 = sld [smem:[%s5801_s0 + %s4619_s7]]   ;;  %s4623_s7 = smov 18  }
  0x16   :  { %s4724_s20 = sld [smem:[%s5801_s0 + %s4620_s15]]   ;;  %s4624_s15 = smov 19  }
  0x17   :  { %s4729_s27 = sld [smem:[%s5801_s0 + %s4621_s22]]   ;;  %s4625_s22 = smov 20  }
  0x18   :  { %s4734_s4 = sld [smem:[%s5801_s0 + %s4622_s28]]   ;;  %s4626_s28 = smov 21  }
  0x19   :  { %s4739_s8 = sld [smem:[%s5801_s0 + %s4623_s7]]   ;;  %s4627_s7 = smov 22  }
  0x1a   :  { %5825 = sst [smem:[#allocation11_spill]] %s4714_s6 }
  0x1b   :  { %5826 = sst [smem:[#allocation12_spill]] %s4719_s12 }
  0x1c   :  { %5827 = sst [smem:[#allocation13_spill]] %s4724_s20 }
  0x1d   :  { %5828 = sst [smem:[#allocation14_spill]] %s4729_s27 }
  0x1e   :  { %5829 = sst [smem:[#allocation15_spill]] %s4734_s4 }
  0x1f   :  { %5830 = sst [smem:[#allocation16_spill]] %s4739_s8 }
  0x20   :  { %s4744_s20 = sld [smem:[%s5801_s0 + %s4624_s15]]   ;;  %s4628_s15 = smov 23  }
  0x21   :  { %s4749_s27 = sld [smem:[%s5801_s0 + %s4625_s22]]   ;;  %s4629_s22 = smov 24  }
  0x22   :  { %s4754_s4 = sld [smem:[%s5801_s0 + %s4626_s28]]   ;;  %s4630_s28 = smov 25  }
  0x23   :  { %s4759_s8 = sld [smem:[%s5801_s0 + %s4627_s7]]   ;;  %s4631_s7 = smov 26  }
  0x26   :  { %5831 = sst [smem:[#allocation17_spill]] %s4744_s20 }
  0x27   :  { %5832 = sst [smem:[#allocation18_spill]] %s4749_s27 }
  0x28   :  { %5833 = sst [smem:[#allocation19_spill]] %s4754_s4 }
  0x29   :  { %5834 = sst [smem:[#allocation20_spill]] %s4759_s8 }
  0x2a   :  { %s4764_s20 = sld [smem:[%s5801_s0 + %s4628_s15]]   ;;  %s4632_s15 = smov 27  }
  0x2b   :  { %s4769_s27 = sld [smem:[%s5801_s0 + %s4629_s22]]   ;;  %s4633_s22 = smov 28  }
  0x2c   :  { %s4774_s4 = sld [smem:[%s5801_s0 + %s4630_s28]]   ;;  %s4634_s28 = smov 29  }
  0x2d   :  { %s4779_s8 = sld [smem:[%s5801_s0 + %s4631_s7]]   ;;  %s4635_s7 = smov 30  }
  0x30   :  { %5835 = sst [smem:[#allocation21_spill]] %s4764_s20 }
  0x31   :  { %5836 = sst [smem:[#allocation22_spill]] %s4769_s27 }
  0x32   :  { %5837 = sst [smem:[#allocation23_spill]] %s4774_s4 }
  0x33   :  { %5838 = sst [smem:[#allocation24_spill]] %s4779_s8 }
  0x34   :  { %s4784_s20 = sld [smem:[%s5801_s0 + %s4632_s15]]   ;;  %s4636_s15 = smov 31  }
  0x35   :  { %s4789_s27 = sld [smem:[%s5801_s0 + %s4633_s22]]   ;;  %s4637_s22 = smov 32  }
  0x36   :  { %s4794_s4 = sld [smem:[%s5801_s0 + %s4634_s28]]  }
  0x37   :  { %s4799_s8 = sld [smem:[%s5801_s0 + %s4635_s7]]  }
  0x3a   :  { %5839 = sst [smem:[#allocation25_spill]] %s4784_s20 }
  0x3b   :  { %5840 = sst [smem:[#allocation26_spill]] %s4789_s27 }
  0x3c   :  { %5841 = sst [smem:[#allocation27_spill]] %s4794_s4 }
  0x3d   :  { %s4804_s20 = sld [smem:[%s5801_s0 + %s4636_s15]]  }
  0x3e   :  { %s4809_s27 = sld [smem:[%s5801_s0 + %s4637_s22]]  }
  0x3f   :  { %71 = vsyncpa [#allocation3], 0 }
  0x40   :  { %73 = vsyncpa [#allocation3 + $0x1], 0  ;;  %s4811_s28 = smov 0   ;;  %s4813_s1 = smov 0  }
  0x41   :  { %s4815_s2 = smov 0   ;;  %s4817_s7 = smov 0  }
  0x42 LB: > { %s5842_s14 = sld [smem:[#allocation10_spill]]  ;;  %s4832_s0 = sadd.s32 4294967295, %s4604_s7   ;;  %s4596_s1 = sphi %s4813_s1, %s5869_s1   ;;  %s4592_s28 = sphi %s4811_s28, %s5868_s28   ;;  %s4604_s7 = sphi %s4817_s7, %s5871_s7   ;;  %s4600_s2 = sphi %s4815_s2, %s5870_s2  }
  0x43   : > { %s5843_s12 = sld [smem:[#allocation12_spill]]  ;;  %s3677_s10 = sadd.s32 4294967294, %s4604_s7  }
  0x44   : > { %s5844_s9 = sld [smem:[#allocation6_spill]]  ;;  %s4836_s11 = sadd.s32 1, %s4604_s7  }
  0x45   : > { %s5845_s4 = sld [smem:[#allocation27_spill]]  ;;  %s742_s15 = sadd.s32 1, %s4600_s2 }
  0x46   : > { %s5846_s6 = sld [smem:[#allocation11_spill]]  ;;  %s739_s16 = ssub.s32 %s4604_s7, %s4836_s11 }
  0x47   : > { %s5847_s3 = sld [smem:[#allocation8_spill]]  ;;  %p752_p0 = scmp.ne.s32.totalorder %s4600_s2, %s4596_s1 }
  0x48   : > { %p740_p1 = scmp.eq.s32.totalorder %s739_s16, 0  ;;  %p753_p2 = scmp.eq.s32.totalorder %s4832_s0, 1 }
  0x49   : > { %p758_p3 = scmp.ne.s32.totalorder %s4596_s1, %s4592_s28  ;;  %p759_p4 = scmp.eq.s32.totalorder %s3677_s10, 1 }
  0x4a   : > { %s4847_s18 = scalar_select %p740_p1, %s4600_s2, %s742_s15  }
  0x4b   : > { %p4849_p5 = por %p753_p2, %p752_p0  ;;  %p4853_p6 = por %p759_p4, %p758_p3 }
  0x4c   : > { %p3680_p7 = scmp.ge.s32.totalorder %s4604_s7, 1  ;;  %p900_p8 = scmp.lt.s32.totalorder %s4604_s7, 3 }
  0x4e   : > { %p901_p9 = pnand %p3680_p7, %p900_p8 }
  0x4f   : > { %p985_p10 = scmp.lt.s32.totalorder (!%p901_p9), %s4832_s0, 1  ;;  %s5850_s5 = sld [smem:[#allocation5_spill]] (!%p901_p9) }
  0x50   : > { %904 = sbr.rel (%p901_p9) target bundleno = 3485 (0xd9d), region = 144  ;;  %s5851_s13 = sld [smem:[#allocation7_spill]] (!%p901_p9) }
  0x51   : > { %s5852_s16 = sld [smem:[#allocation13_spill]] (!%p901_p9) }
  0x55   : > { %v1013_v0 = vld [vmem:[%s5844_s9 + $0x18] sm:$0xff]  ;;  %v4638_v1 = vmov 0.0   ;;  %v1012_v2 = vld [vmem:[%s5844_s9 + $0x10] sm:$0xff]  ;;  %vm4639_vm0 = vmmov 0   ;;  %s4867_s26 = scalar_select %p985_p10, %s4832_s0, 1  ;;  %v1011_v5 = vld [vmem:[%s5844_s9 + $0x8] sm:$0xff] }
  0x56   : > { %4064 = vmatprep.subr.mxu0 %v4638_v1  ;;  %4072 = vmatprep.mubr.msk.f32.mxu0 %vm4639_vm0, %v4638_v1  ;;  %v1110_v3 = vld [vmem:[%s4664_s17 + $0x78] sm:$0xff]  ;;  %v1109_v4 = vld [vmem:[%s4664_s17 + $0x70] sm:$0xff]  ;;  %v1108_v6 = vld [vmem:[%s4664_s17 + $0x68] sm:$0xff]  ;;  %vm1021_vm1 = vcmask 261120   ;;  %vm2039_vm3 = vcmask 130048  }
  0x57   : > { %4065 = vmatpush3.msra.mxu0 %v1013_v0  ;;  %4075 = vmatprep.subr.mxu1 %v4638_v1  ;;  %s5808_s10 = sshll.u32 %s4867_s26, 3  ;;  %v1010_v7 = vld [vmem:[%s5844_s9] sm:$0xff]  ;;  %v1203_v9 = vld [vmem:[%s4674_s25 + $0x78] sm:$0xff]  ;;  %v1202_v11 = vld [vmem:[%s4674_s25 + $0x70] sm:$0xff]  ;;  %s3701_s9 = sshll.u32 %s4832_s0, 7 }
  0x58   : > { %4066 = vmatprep.subr.mxu0 %v4638_v1  ;;  %4076 = vmatpush3.msra.mxu1 %v1110_v3  ;;  %s988_s15 = scalar_lea.vmem %s5850_s5, %s5808_s10  ;;  %v1107_v10 = vld [vmem:[%s4664_s17 + $0x60] sm:$0xff]  ;;  %v1106_v12 = vld [vmem:[%s4664_s17 + $0x58] sm:$0xff]  ;;  %v1201_v13 = vld [vmem:[%s4674_s25 + $0x68] sm:$0xff]  ;;  %s5854_s10 = sld [smem:[#allocation14_spill]] }
  0x59   : > { %4067 = vmatpush3.msra.mxu0 %v1012_v2  ;;  %4077 = vmatprep.subr.mxu1 %v4638_v1  ;;  %v1009_v8 = vld [vmem:[%s988_s15] sm:$0xff]  ;;  %v1105_v14 = vld [vmem:[%s4664_s17 + $0x50] sm:$0xff]  ;;  %v1104_v16 = vld [vmem:[%s4664_s17 + $0x48] sm:$0xff]  ;;  %s5853_s15 = sld [smem:[#allocation9_spill]] }
  0x5a   : > { %4068 = vmatprep.subr.mxu0 %v4638_v1  ;;  %4078 = vmatpush3.msra.mxu1 %v1109_v4  ;;  %v1200_v15 = vld [vmem:[%s4674_s25 + $0x60] sm:$0xff]  ;;  %v1199_v17 = vld [vmem:[%s4674_s25 + $0x58] sm:$0xff]  ;;  %v1198_v19 = vld [vmem:[%s4674_s25 + $0x50] sm:$0xff] }
  0x5b   : > { %4069 = vmatpush3.msra.mxu0 %v1011_v5  ;;  %4079 = vmatprep.subr.mxu1 %v4638_v1  ;;  %v1103_v18 = vld [vmem:[%s4664_s17 + $0x40] sm:$0xff]  ;;  %v1102_v20 = vld [vmem:[%s4664_s17 + $0x38] sm:$0xff]  ;;  %v1197_v21 = vld [vmem:[%s4674_s25 + $0x48] sm:$0xff] }
  0x5c   : > { %4070 = vmatprep.subr.mxu0 %v4638_v1  ;;  %4080 = vmatpush3.msra.mxu1 %v1108_v6  ;;  %v1101_v22 = vld [vmem:[%s4664_s17 + $0x30] sm:$0xff]  ;;  %v1196_v23 = vld [vmem:[%s4674_s25 + $0x40] sm:$0xff]  ;;  %v1100_v24 = vld [vmem:[%s4664_s17 + $0x28] sm:$0xff] }
  0x5d   : > { %4071 = vmatpush3.msra.mxu0 %v1010_v7  ;;  %4081 = vmatprep.subr.mxu1 %v4638_v1  ;;  %v1195_v25 = vld [vmem:[%s4674_s25 + $0x38] sm:$0xff]  ;;  %v1099_v26 = vld [vmem:[%s4664_s17 + $0x20] sm:$0xff]  ;;  %v1194_v27 = vld [vmem:[%s4674_s25 + $0x30] sm:$0xff] }
  0x5e   : > { %4073 = vmatmul.mubr.msk.f32.vlgmr.msra.gmra.mxu0 %vm1021_vm1, %v1009_v8  ;;  %4110 = vmatprep.subr.mxu0 %v4638_v1  ;;  %v1098_v28 = vld [vmem:[%s4664_s17 + $0x18] sm:$0xff]  ;;  %v1193_v29 = vld [vmem:[%s4674_s25 + $0x28] sm:$0xff]  ;;  %v1097_v30 = vld [vmem:[%s4664_s17 + $0x10] sm:$0xff] }
  0x5f   : > { %4111 = vmatpush3.msra.mxu0 %v1203_v9  ;;  %4082 = vmatpush3.msra.mxu1 %v1107_v10  ;;  %v1192_v31 = vld [vmem:[%s4674_s25 + $0x20] sm:$0xff]  ;;  %v1096_v32 = vld [vmem:[%s4664_s17 + $0x8] sm:$0xff]  ;;  %v1191_v33 = vld [vmem:[%s4674_s25 + $0x18] sm:$0xff] }
  0x60   : > { %4112 = vmatprep.subr.mxu0 %v4638_v1  ;;  %4083 = vmatprep.subr.mxu1 %v4638_v1  ;;  %v1190_v34 = vld [vmem:[%s4674_s25 + $0x10] sm:$0xff]  ;;  %v1189_v35 = vld [vmem:[%s4674_s25 + $0x8] sm:$0xff]  ;;  %v1095_v36 = vld [vmem:[%s4664_s17] sm:$0xff] }
  0x61   : > { %4113 = vmatpush3.msra.mxu0 %v1202_v11  ;;  %4084 = vmatpush3.msra.mxu1 %v1106_v12  ;;  %v1188_v37 = vld [vmem:[%s4674_s25] sm:$0xff]  ;;  %v1296_v41 = vld [vmem:[%s5847_s3 + $0x78] sm:$0xff]  ;;  %v1295_v44 = vld [vmem:[%s5847_s3 + $0x70] sm:$0xff] }
  0x62   : > { %4114 = vmatprep.subr.mxu0 %v4638_v1  ;;  %4085 = vmatprep.subr.mxu1 %v4638_v1  ;;  %v3684_v38 = vld [vmem:[%s5851_s13] ss:$0 sm:$0xff]  ;;  %v1390_v42 = vld [vmem:[%s5842_s14 + $0x78] sm:$0xff]  ;;  %v1389_v45 = vld [vmem:[%s5842_s14 + $0x70] sm:$0xff]  ;;  %s5769_s13 = scalar_lea.hbm %s4804_s20, %s3701_s9 }
  0x63   : > { %4115 = vmatpush3.msra.mxu0 %v1201_v13  ;;  %4086 = vmatpush3.msra.mxu1 %v1105_v14  ;;  %v1294_v46 = vld [vmem:[%s5847_s3 + $0x68] sm:$0xff]  ;;  %v1293_v48 = vld [vmem:[%s5847_s3 + $0x60] sm:$0xff]  ;;  %v1292_v50 = vld [vmem:[%s5847_s3 + $0x58] sm:$0xff] }
  0x64   : > { %4116 = vmatprep.subr.mxu0 %v4638_v1  ;;  %4087 = vmatprep.subr.mxu1 %v4638_v1  ;;  %v1388_v47 = vld [vmem:[%s5842_s14 + $0x68] sm:$0xff]  ;;  %v1387_v49 = vld [vmem:[%s5842_s14 + $0x60] sm:$0xff]  ;;  %v1386_v51 = vld [vmem:[%s5842_s14 + $0x58] sm:$0xff] }
  0x65   : > { %4117 = vmatpush3.msra.mxu0 %v1200_v15  ;;  %4088 = vmatpush3.msra.mxu1 %v1104_v16  ;;  %v1291_v52 = vld [vmem:[%s5847_s3 + $0x50] sm:$0xff]  ;;  %v1290_v54 = vld [vmem:[%s5847_s3 + $0x48] sm:$0xff]  ;;  %v1289_v56 = vld [vmem:[%s5847_s3 + $0x40] sm:$0xff] }
  0x66   : > { %4118 = vmatprep.subr.mxu0 %v4638_v1  ;;  %4089 = vmatprep.subr.mxu1 %v4638_v1  ;;  %v1385_v53 = vld [vmem:[%s5842_s14 + $0x50] sm:$0xff]  ;;  %v1384_v55 = vld [vmem:[%s5842_s14 + $0x48] sm:$0xff]  ;;  %v1383_v57 = vld [vmem:[%s5842_s14 + $0x40] sm:$0xff] }
  0x67   : > { %4119 = vmatpush3.msra.mxu0 %v1199_v17  ;;  %4090 = vmatpush3.msra.mxu1 %v1103_v18  ;;  %v1288_v58 = vld [vmem:[%s5847_s3 + $0x38] sm:$0xff]  ;;  %v1287_v60 = vld [vmem:[%s5847_s3 + $0x30] sm:$0xff]  ;;  %v1286_v62 = vld [vmem:[%s5847_s3 + $0x28] sm:$0xff] }
  0x68   : > { %4120 = vmatprep.subr.mxu0 %v4638_v1  ;;  %4091 = vmatprep.subr.mxu1 %v4638_v1  ;;  %v1382_v59 = vld [vmem:[%s5842_s14 + $0x38] sm:$0xff]  ;;  %v1381_v61 = vld [vmem:[%s5842_s14 + $0x30] sm:$0xff]  ;;  %v1380_v63 = vld [vmem:[%s5842_s14 + $0x28] sm:$0xff] }
  0x69   : > { %4121 = vmatpush3.msra.mxu0 %v1198_v19  ;;  %4092 = vmatpush3.msra.mxu1 %v1102_v20  ;;  %v1285_v0 = vld [vmem:[%s5847_s3 + $0x20] sm:$0xff]  ;;  %v1284_v3 = vld [vmem:[%s5847_s3 + $0x18] sm:$0xff]  ;;  %v1283_v5 = vld [vmem:[%s5847_s3 + $0x10] sm:$0xff] }
  0x6a   : > { %4122 = vmatprep.subr.mxu0 %v4638_v1  ;;  %4093 = vmatprep.subr.mxu1 %v4638_v1  ;;  %v1379_v2 = vld [vmem:[%s5842_s14 + $0x20] sm:$0xff]  ;;  %v1378_v4 = vld [vmem:[%s5842_s14 + $0x18] sm:$0xff]  ;;  %v1377_v6 = vld [vmem:[%s5842_s14 + $0x10] sm:$0xff] }
  0x6b   : > { %4123 = vmatpush3.msra.mxu0 %v1197_v21  ;;  %4094 = vmatpush3.msra.mxu1 %v1101_v22  ;;  %v1282_v7 = vld [vmem:[%s5847_s3 + $0x8] sm:$0xff]  ;;  %v1281_v9 = vld [vmem:[%s5847_s3] sm:$0xff]  ;;  %v1525_v13 = vld [vmem:[%s4699_s19 + $0x1f8] sm:$0xff]  ;;  %s5855_s3 = sshll.u32 %s4867_s26, 3  ;;  %s5858_s26 = sld [smem:[#allocation19_spill]] }
  0x6c   : > { %4124 = vmatprep.subr.mxu0 %v4638_v1  ;;  %4095 = vmatprep.subr.mxu1 %v4638_v1  ;;  %v1376_v8 = vld [vmem:[%s5842_s14 + $0x8] sm:$0xff]  ;;  %v1375_v10 = vld [vmem:[%s5842_s14] sm:$0xff]  ;;  %v1524_v15 = vld [vmem:[%s4699_s19 + $0x1f0] sm:$0xff]  ;;  %s992_s5 = scalar_lea.vmem %s4809_s27, %s5855_s3  ;;  %s5857_s3 = sld [smem:[#allocation15_spill]] }
  0x6d   : > { %4125 = vmatpush3.msra.mxu0 %v1196_v23  ;;  %4096 = vmatpush3.msra.mxu1 %v1100_v24  ;;  %v1523_v12 = vld [vmem:[%s4699_s19 + $0x1e8] sm:$0xff]  ;;  %v1522_v14 = vld [vmem:[%s4699_s19 + $0x1e0] sm:$0xff]  ;;  %v1521_v17 = vld [vmem:[%s4699_s19 + $0x1d8] sm:$0xff]  ;;  %s4640_s14 = smov [#allocation2]  }
  0x6e   : > { %4126 = vmatprep.subr.mxu0 %v4638_v1  ;;  %4097 = vmatprep.subr.mxu1 %v4638_v1  ;;  %v1519_v16 = vld [vmem:[%s4699_s19 + $0x1c8] sm:$0xff]  ;;  %v1518_v18 = vld [vmem:[%s4699_s19 + $0x1c0] sm:$0xff]  ;;  %v1520_v19 = vld [vmem:[%s4699_s19 + $0x1d0] sm:$0xff] }
  0x6f   : > { %4127 = vmatpush3.msra.mxu0 %v1195_v25  ;;  %4098 = vmatpush3.msra.mxu1 %v1099_v26  ;;  %v1515_v20 = vld [vmem:[%s4699_s19 + $0x1a8] sm:$0xff]  ;;  %v1517_v21 = vld [vmem:[%s4699_s19 + $0x1b8] sm:$0xff]  ;;  %v1514_v22 = vld [vmem:[%s4699_s19 + $0x1a0] sm:$0xff] }
  0x70   : > { %4128 = vmatprep.subr.mxu0 %v4638_v1  ;;  %4099 = vmatprep.subr.mxu1 %v4638_v1  ;;  %v1516_v23 = vld [vmem:[%s4699_s19 + $0x1b0] sm:$0xff]  ;;  %v1511_v24 = vld [vmem:[%s4699_s19 + $0x188] sm:$0xff]  ;;  %v1513_v25 = vld [vmem:[%s4699_s19 + $0x198] sm:$0xff] }
  0x71   : > { %4129 = vmatpush3.msra.mxu0 %v1194_v27  ;;  %4100 = vmatpush3.msra.mxu1 %v1098_v28  ;;  %v1510_v26 = vld [vmem:[%s4699_s19 + $0x180] sm:$0xff]  ;;  %v1512_v27 = vld [vmem:[%s4699_s19 + $0x190] sm:$0xff]  ;;  %v1507_v28 = vld [vmem:[%s4699_s19 + $0x168] sm:$0xff] }
  0x72   : > { %4130 = vmatprep.subr.mxu0 %v4638_v1  ;;  %4101 = vmatprep.subr.mxu1 %v4638_v1 }
  0x73   : > { %4131 = vmatpush3.msra.mxu0 %v1193_v29  ;;  %4102 = vmatpush3.msra.mxu1 %v1097_v30  ;;  %v1509_v29 = vld [vmem:[%s4699_s19 + $0x178] sm:$0xff]  ;;  %v1506_v30 = vld [vmem:[%s4699_s19 + $0x160] sm:$0xff] }
  0x74   : > { %4132 = vmatprep.subr.mxu0 %v4638_v1  ;;  %4103 = vmatprep.subr.mxu1 %v4638_v1 }
  0x75   : > { %4133 = vmatpush3.msra.mxu0 %v1192_v31  ;;  %4104 = vmatpush3.msra.mxu1 %v1096_v32  ;;  %v1508_v31 = vld [vmem:[%s4699_s19 + $0x170] sm:$0xff]  ;;  %v1503_v32 = vld [vmem:[%s4699_s19 + $0x148] sm:$0xff] }
  0x76   : > { %4134 = vmatprep.subr.mxu0 %v4638_v1  ;;  %4105 = vmatprep.subr.mxu1 %v4638_v1 }
  0x77   : > { %4135 = vmatpush3.msra.mxu0 %v1191_v33  ;;  %4107 = vmatprep.mubr.msk.f32.mxu1 %vm4639_vm0, %v4638_v1  ;;  %v1505_v33 = vld [vmem:[%s4699_s19 + $0x158] sm:$0xff] }
  0x78   : > { %4136 = vmatprep.subr.mxu0 %v4638_v1  ;;  %4142 = vmatprep.mubr.msk.f32.mxu0 %vm4639_vm0, %v4638_v1 }
  0x79   : > { %4137 = vmatpush3.msra.mxu0 %v1190_v34  ;;  %4106 = vmatpush3.msra.mxu1 %v1095_v36  ;;  %v1502_v34 = vld [vmem:[%s4699_s19 + $0x140] sm:$0xff]  ;;  %v1499_v36 = vld [vmem:[%s4699_s19 + $0x128] sm:$0xff] }
  0x7a   : > { %4138 = vmatprep.subr.mxu0 %v4638_v1  ;;  %4145 = vmatprep.subr.mxu1 %v4638_v1 }
  0x7b   : > { %4139 = vmatpush3.msra.mxu0 %v1189_v35  ;;  %v1504_v35 = vld [vmem:[%s4699_s19 + $0x150] sm:$0xff] }
  0x7c   : > { %4140 = vmatprep.subr.mxu0 %v4638_v1 }
  0x7d   : > { %4141 = vmatpush3.msra.mxu0 %v1188_v37  ;;  %v1501_v37 = vld [vmem:[%s4699_s19 + $0x138] sm:$0xff] }
  0x7e   : > { %4180 = vmatprep.subr.mxu0 %v4638_v1 }
 0x11e   : > { %v1091_v39 = vpop.f32.mrf.mxu0 }
 0x11f   : > { %v4949_v40 = vadd.f32 %v3684_v38, %v1091_v39  ;;  %v1498_v38 = vld [vmem:[%s4699_s19 + $0x120] sm:$0xff]  ;;  %v1500_v39 = vld [vmem:[%s4699_s19 + $0x130] sm:$0xff] }
 0x120   : > { %v4074_v43 = vpop.f32.mrf.mxu0 }
 0x121   : > { %4108 = vmatmul.mubr.f32.vlgmr.msra.gmra.mxu1 %v4949_v40  ;;  %4143 = vmatmul.mubr.f32.vlgmr.msra.gmra.mxu0 %v4949_v40  ;;  %v1374_v11 = vand.u32 2147483647, %v4949_v40  ;;  %v1494_v43 = vld [vmem:[%s4699_s19 + $0x100] sm:$0xff] }
 0x122   : > { %4146 = vmatpush3.msra.mxu1 %v1296_v41  ;;  %4181 = vmatpush3.msra.mxu0 %v1390_v42  ;;  %v1495_v41 = vld [vmem:[%s4699_s19 + $0x108] sm:$0xff]  ;;  %v1497_v42 = vld [vmem:[%s4699_s19 + $0x118] sm:$0xff] }
 0x123   : > { %4147 = vmatprep.subr.mxu1 %v4638_v1  ;;  %4182 = vmatprep.subr.mxu0 %v4638_v1 }
 0x124   : > { %4148 = vmatpush3.msra.mxu1 %v1295_v44  ;;  %4183 = vmatpush3.msra.mxu0 %v1389_v45  ;;  %v1496_v44 = vld [vmem:[%s4699_s19 + $0x110] sm:$0xff]  ;;  %v1491_v45 = vld [vmem:[%s4699_s19 + $0xe8] sm:$0xff] }
 0x125   : > { %4149 = vmatprep.subr.mxu1 %v4638_v1  ;;  %4184 = vmatprep.subr.mxu0 %v4638_v1 }
 0x126   : > { %4150 = vmatpush3.msra.mxu1 %v1294_v46  ;;  %4185 = vmatpush3.msra.mxu0 %v1388_v47  ;;  %v1493_v46 = vld [vmem:[%s4699_s19 + $0xf8] sm:$0xff]  ;;  %v1490_v47 = vld [vmem:[%s4699_s19 + $0xe0] sm:$0xff] }
 0x127   : > { %4151 = vmatprep.subr.mxu1 %v4638_v1  ;;  %4186 = vmatprep.subr.mxu0 %v4638_v1 }
 0x128   : > { %4152 = vmatpush3.msra.mxu1 %v1293_v48  ;;  %4187 = vmatpush3.msra.mxu0 %v1387_v49  ;;  %v1492_v48 = vld [vmem:[%s4699_s19 + $0xf0] sm:$0xff]  ;;  %v1487_v49 = vld [vmem:[%s4699_s19 + $0xc8] sm:$0xff] }
 0x129   : > { %4153 = vmatprep.subr.mxu1 %v4638_v1  ;;  %4188 = vmatprep.subr.mxu0 %v4638_v1 }
 0x12a   : > { %4154 = vmatpush3.msra.mxu1 %v1292_v50  ;;  %4189 = vmatpush3.msra.mxu0 %v1386_v51  ;;  %v1489_v50 = vld [vmem:[%s4699_s19 + $0xd8] sm:$0xff]  ;;  %v1486_v51 = vld [vmem:[%s4699_s19 + $0xc0] sm:$0xff] }
 0x12b   : > { %4155 = vmatprep.subr.mxu1 %v4638_v1  ;;  %4190 = vmatprep.subr.mxu0 %v4638_v1 }
 0x12c   : > { %4156 = vmatpush3.msra.mxu1 %v1291_v52  ;;  %4191 = vmatpush3.msra.mxu0 %v1385_v53  ;;  %v1488_v52 = vld [vmem:[%s4699_s19 + $0xd0] sm:$0xff]  ;;  %v1483_v53 = vld [vmem:[%s4699_s19 + $0xa8] sm:$0xff] }
 0x12d   : > { %4157 = vmatprep.subr.mxu1 %v4638_v1  ;;  %4192 = vmatprep.subr.mxu0 %v4638_v1 }
 0x12e   : > { %4158 = vmatpush3.msra.mxu1 %v1290_v54  ;;  %4193 = vmatpush3.msra.mxu0 %v1384_v55  ;;  %v1485_v54 = vld [vmem:[%s4699_s19 + $0xb8] sm:$0xff]  ;;  %v1482_v55 = vld [vmem:[%s4699_s19 + $0xa0] sm:$0xff] }
 0x12f   : > { %4159 = vmatprep.subr.mxu1 %v4638_v1  ;;  %4194 = vmatprep.subr.mxu0 %v4638_v1 }
 0x130   : > { %4160 = vmatpush3.msra.mxu1 %v1289_v56  ;;  %4195 = vmatpush3.msra.mxu0 %v1383_v57  ;;  %v1484_v56 = vld [vmem:[%s4699_s19 + $0xb0] sm:$0xff]  ;;  %v1479_v57 = vld [vmem:[%s4699_s19 + $0x88] sm:$0xff] }
 0x131   : > { %4161 = vmatprep.subr.mxu1 %v4638_v1  ;;  %4196 = vmatprep.subr.mxu0 %v4638_v1 }
 0x132   : > { %4162 = vmatpush3.msra.mxu1 %v1288_v58  ;;  %4197 = vmatpush3.msra.mxu0 %v1382_v59  ;;  %v1481_v58 = vld [vmem:[%s4699_s19 + $0x98] sm:$0xff]  ;;  %v1478_v59 = vld [vmem:[%s4699_s19 + $0x80] sm:$0xff] }
 0x133   : > { %4163 = vmatprep.subr.mxu1 %v4638_v1  ;;  %4198 = vmatprep.subr.mxu0 %v4638_v1 }
 0x134   : > { %4164 = vmatpush3.msra.mxu1 %v1287_v60  ;;  %4199 = vmatpush3.msra.mxu0 %v1381_v61  ;;  %v1480_v60 = vld [vmem:[%s4699_s19 + $0x90] sm:$0xff]  ;;  %v1475_v61 = vld [vmem:[%s4699_s19 + $0x68] sm:$0xff] }
 0x135   : > { %4165 = vmatprep.subr.mxu1 %v4638_v1  ;;  %4200 = vmatprep.subr.mxu0 %v4638_v1 }
 0x136   : > { %4166 = vmatpush3.msra.mxu1 %v1286_v62  ;;  %4201 = vmatpush3.msra.mxu0 %v1380_v63  ;;  %v1477_v62 = vld [vmem:[%s4699_s19 + $0x78] sm:$0xff]  ;;  %v1474_v63 = vld [vmem:[%s4699_s19 + $0x60] sm:$0xff] }
 0x137   : > { %4167 = vmatprep.subr.mxu1 %v4638_v1  ;;  %4202 = vmatprep.subr.mxu0 %v4638_v1 }
 0x138   : > { %4168 = vmatpush3.msra.mxu1 %v1285_v0  ;;  %4203 = vmatpush3.msra.mxu0 %v1379_v2  ;;  %v1476_v0 = vld [vmem:[%s4699_s19 + $0x70] sm:$0xff]  ;;  %v1471_v2 = vld [vmem:[%s4699_s19 + $0x48] sm:$0xff] }
 0x139   : > { %4169 = vmatprep.subr.mxu1 %v4638_v1  ;;  %4204 = vmatprep.subr.mxu0 %v4638_v1 }
 0x13a   : > { %4170 = vmatpush3.msra.mxu1 %v1284_v3  ;;  %4205 = vmatpush3.msra.mxu0 %v1378_v4  ;;  %v1473_v3 = vld [vmem:[%s4699_s19 + $0x58] sm:$0xff]  ;;  %v1470_v4 = vld [vmem:[%s4699_s19 + $0x40] sm:$0xff] }
 0x13b   : > { %4171 = vmatprep.subr.mxu1 %v4638_v1  ;;  %4206 = vmatprep.subr.mxu0 %v4638_v1 }
 0x13c   : > { %4172 = vmatpush3.msra.mxu1 %v1283_v5  ;;  %4207 = vmatpush3.msra.mxu0 %v1377_v6  ;;  %v1472_v5 = vld [vmem:[%s4699_s19 + $0x50] sm:$0xff]  ;;  %v1467_v6 = vld [vmem:[%s4699_s19 + $0x28] sm:$0xff] }
 0x13d   : > { %4173 = vmatprep.subr.mxu1 %v4638_v1  ;;  %4208 = vmatprep.subr.mxu0 %v4638_v1 }
 0x13e   : > { %4174 = vmatpush3.msra.mxu1 %v1282_v7  ;;  %4209 = vmatpush3.msra.mxu0 %v1376_v8  ;;  %v1469_v7 = vld [vmem:[%s4699_s19 + $0x38] sm:$0xff]  ;;  %v1466_v8 = vld [vmem:[%s4699_s19 + $0x20] sm:$0xff] }
 0x13f   : > { %4175 = vmatprep.subr.mxu1 %v4638_v1  ;;  %4210 = vmatprep.subr.mxu0 %v4638_v1 }
 0x140   : > { %4176 = vmatpush3.msra.mxu1 %v1281_v9  ;;  %4177 = vmatprep.mubr.msk.f32.mxu1 %vm4639_vm0, %v4638_v1  ;;  %v1468_v9 = vld [vmem:[%s4699_s19 + $0x30] sm:$0xff] }
 0x141   : > { %4211 = vmatpush3.msra.mxu0 %v1375_v10  ;;  %4212 = vmatprep.mubr.msk.f32.mxu0 %vm4639_vm0, %v4638_v1  ;;  %v1463_v10 = vld [vmem:[%s4699_s19 + $0x8] sm:$0xff] }
 0x142   : > { %4178 = vmatmul.mubr.f32.vlgmr.msra.gmra.mxu1 %v4949_v40  ;;  %4213 = vmatmul.mubr.f32.vlgmr.msra.gmra.mxu0 %v1374_v11  ;;  %v1465_v11 = vld [vmem:[%s4699_s19 + $0x18] sm:$0xff] }
 0x143   : > { %1526 = vmatprep.subr.mxu1 %v1523_v12  ;;  %1597 = vmatprep.subr.mxu0 %v1525_v13  ;;  %v1462_v12 = vld [vmem:[%s4699_s19] sm:$0xff]  ;;  %v1464_v13 = vld [vmem:[%s4699_s19 + $0x10] sm:$0xff] }
 0x144   : > { %1527 = vmatpush1.msra.mxu1 %v1522_v14  ;;  %1598 = vmatpush1.msra.mxu0 %v1524_v15  ;;  %v1703_v14 = vld [vmem:[%s4704_s24 + $0xf8] sm:$0xff] }
 0x145   : > { %1528 = vmatprep.subr.mxu1 %v1519_v16  ;;  %1599 = vmatprep.subr.mxu0 %v1521_v17  ;;  %v1735_v15 = vld [vmem:[%s4704_s24 + $0x1f8] sm:$0xff]  ;;  %v3686_v16 = vld [vmem:[%s4669_s21] ss:$0 sm:$0xff] }
 0x146   : > { %1529 = vmatpush1.msra.mxu1 %v1518_v18  ;;  %1600 = vmatpush1.msra.mxu0 %v1520_v19 }
 0x147   : > { %1530 = vmatprep.subr.mxu1 %v1515_v20  ;;  %1601 = vmatprep.subr.mxu0 %v1517_v21  ;;  %v1687_v20 = vld [vmem:[%s4704_s24 + $0x78] sm:$0xff] }
 0x148   : > { %1531 = vmatpush1.msra.mxu1 %v1514_v22  ;;  %1602 = vmatpush1.msra.mxu0 %v1516_v23  ;;  %v1719_v21 = vld [vmem:[%s4704_s24 + $0x178] sm:$0xff] }
 0x149   : > { %1532 = vmatprep.subr.mxu1 %v1511_v24  ;;  %1603 = vmatprep.subr.mxu0 %v1513_v25  ;;  %v1702_v24 = vld [vmem:[%s4704_s24 + $0xf0] sm:$0xff] }
 0x14a   : > { %1533 = vmatpush1.msra.mxu1 %v1510_v26  ;;  %1604 = vmatpush1.msra.mxu0 %v1512_v27  ;;  %v1734_v25 = vld [vmem:[%s4704_s24 + $0x1f0] sm:$0xff] }
 0x14b   : > { %1534 = vmatprep.subr.mxu1 %v1507_v28  ;;  %1605 = vmatprep.subr.mxu0 %v1509_v29  ;;  %v1686_v26 = vld [vmem:[%s4704_s24 + $0x70] sm:$0xff]  ;;  %v1701_v28 = vld [vmem:[%s4704_s24 + $0xe8] sm:$0xff] }
 0x14c   : > { %1535 = vmatpush1.msra.mxu1 %v1506_v30  ;;  %1606 = vmatpush1.msra.mxu0 %v1508_v31  ;;  %v1718_v27 = vld [vmem:[%s4704_s24 + $0x170] sm:$0xff]  ;;  %v1733_v29 = vld [vmem:[%s4704_s24 + $0x1e8] sm:$0xff] }
 0x14d   : > { %1536 = vmatprep.subr.mxu1 %v1503_v32  ;;  %1607 = vmatprep.subr.mxu0 %v1505_v33  ;;  %v1685_v30 = vld [vmem:[%s4704_s24 + $0x68] sm:$0xff]  ;;  %v1700_v32 = vld [vmem:[%s4704_s24 + $0xe0] sm:$0xff] }
 0x14e   : > { %1537 = vmatpush1.msra.mxu1 %v1502_v34  ;;  %1608 = vmatpush1.msra.mxu0 %v1504_v35  ;;  %v1717_v31 = vld [vmem:[%s4704_s24 + $0x168] sm:$0xff]  ;;  %v1732_v33 = vld [vmem:[%s4704_s24 + $0x1e0] sm:$0xff] }
 0x14f   : > { %1538 = vmatprep.subr.mxu1 %v1499_v36  ;;  %1609 = vmatprep.subr.mxu0 %v1501_v37  ;;  %v1684_v34 = vld [vmem:[%s4704_s24 + $0x60] sm:$0xff]  ;;  %v1699_v36 = vld [vmem:[%s4704_s24 + $0xd8] sm:$0xff] }
 0x150   : > { %1539 = vmatpush1.msra.mxu1 %v1498_v38  ;;  %1610 = vmatpush1.msra.mxu0 %v1500_v39  ;;  %v1716_v35 = vld [vmem:[%s4704_s24 + $0x160] sm:$0xff]  ;;  %v1731_v37 = vld [vmem:[%s4704_s24 + $0x1d8] sm:$0xff] }
 0x151   : > { %1540 = vmatprep.subr.mxu1 %v1495_v41  ;;  %1611 = vmatprep.subr.mxu0 %v1497_v42  ;;  %v1683_v38 = vld [vmem:[%s4704_s24 + $0x58] sm:$0xff]  ;;  %v1698_v41 = vld [vmem:[%s4704_s24 + $0xd0] sm:$0xff] }
 0x152   : > { %1541 = vmatpush1.msra.mxu1 %v1494_v43  ;;  %1612 = vmatpush1.msra.mxu0 %v1496_v44  ;;  %v1715_v39 = vld [vmem:[%s4704_s24 + $0x158] sm:$0xff]  ;;  %v1730_v42 = vld [vmem:[%s4704_s24 + $0x1d0] sm:$0xff] }
 0x153   : > { %1542 = vmatprep.subr.mxu1 %v1491_v45  ;;  %1613 = vmatprep.subr.mxu0 %v1493_v46  ;;  %v1682_v43 = vld [vmem:[%s4704_s24 + $0x50] sm:$0xff]  ;;  %v1697_v45 = vld [vmem:[%s4704_s24 + $0xc8] sm:$0xff] }
 0x154   : > { %1543 = vmatpush1.msra.mxu1 %v1490_v47  ;;  %1614 = vmatpush1.msra.mxu0 %v1492_v48  ;;  %v1714_v44 = vld [vmem:[%s4704_s24 + $0x150] sm:$0xff]  ;;  %v1729_v46 = vld [vmem:[%s4704_s24 + $0x1c8] sm:$0xff] }
 0x155   : > { %1544 = vmatprep.subr.mxu1 %v1487_v49  ;;  %1615 = vmatprep.subr.mxu0 %v1489_v50  ;;  %v1681_v47 = vld [vmem:[%s4704_s24 + $0x48] sm:$0xff]  ;;  %v1696_v49 = vld [vmem:[%s4704_s24 + $0xc0] sm:$0xff] }
 0x156   : > { %1545 = vmatpush1.msra.mxu1 %v1486_v51  ;;  %1616 = vmatpush1.msra.mxu0 %v1488_v52  ;;  %v1713_v48 = vld [vmem:[%s4704_s24 + $0x148] sm:$0xff]  ;;  %v1728_v50 = vld [vmem:[%s4704_s24 + $0x1c0] sm:$0xff] }
 0x157   : > { %1546 = vmatprep.subr.mxu1 %v1483_v53  ;;  %1617 = vmatprep.subr.mxu0 %v1485_v54  ;;  %v1680_v51 = vld [vmem:[%s4704_s24 + $0x40] sm:$0xff]  ;;  %v1695_v53 = vld [vmem:[%s4704_s24 + $0xb8] sm:$0xff] }
 0x158   : > { %1547 = vmatpush1.msra.mxu1 %v1482_v55  ;;  %1618 = vmatpush1.msra.mxu0 %v1484_v56  ;;  %v1712_v52 = vld [vmem:[%s4704_s24 + $0x140] sm:$0xff]  ;;  %v1727_v54 = vld [vmem:[%s4704_s24 + $0x1b8] sm:$0xff] }
 0x159   : > { %1548 = vmatprep.subr.mxu1 %v1479_v57  ;;  %1619 = vmatprep.subr.mxu0 %v1481_v58  ;;  %v1679_v55 = vld [vmem:[%s4704_s24 + $0x38] sm:$0xff]  ;;  %v1694_v57 = vld [vmem:[%s4704_s24 + $0xb0] sm:$0xff] }
 0x15a   : > { %1549 = vmatpush1.msra.mxu1 %v1478_v59  ;;  %1620 = vmatpush1.msra.mxu0 %v1480_v60  ;;  %v1711_v56 = vld [vmem:[%s4704_s24 + $0x138] sm:$0xff]  ;;  %v1726_v58 = vld [vmem:[%s4704_s24 + $0x1b0] sm:$0xff] }
 0x15b   : > { %1550 = vmatprep.subr.mxu1 %v1475_v61  ;;  %1621 = vmatprep.subr.mxu0 %v1477_v62  ;;  %v1678_v59 = vld [vmem:[%s4704_s24 + $0x30] sm:$0xff]  ;;  %v1693_v61 = vld [vmem:[%s4704_s24 + $0xa8] sm:$0xff] }
 0x15c   : > { %1551 = vmatpush1.msra.mxu1 %v1474_v63  ;;  %1622 = vmatpush1.msra.mxu0 %v1476_v0  ;;  %v1710_v60 = vld [vmem:[%s4704_s24 + $0x130] sm:$0xff]  ;;  %v1725_v62 = vld [vmem:[%s4704_s24 + $0x1a8] sm:$0xff] }
 0x15d   : > { %1552 = vmatprep.subr.mxu1 %v1471_v2  ;;  %1623 = vmatprep.subr.mxu0 %v1473_v3  ;;  %v1677_v63 = vld [vmem:[%s4704_s24 + $0x28] sm:$0xff]  ;;  %v1692_v2 = vld [vmem:[%s4704_s24 + $0xa0] sm:$0xff] }
 0x15e   : > { %1553 = vmatpush1.msra.mxu1 %v1470_v4  ;;  %1624 = vmatpush1.msra.mxu0 %v1472_v5  ;;  %v1709_v0 = vld [vmem:[%s4704_s24 + $0x128] sm:$0xff]  ;;  %v1724_v3 = vld [vmem:[%s4704_s24 + $0x1a0] sm:$0xff] }
 0x15f   : > { %1554 = vmatprep.subr.mxu1 %v1467_v6  ;;  %1625 = vmatprep.subr.mxu0 %v1469_v7  ;;  %v1676_v4 = vld [vmem:[%s4704_s24 + $0x20] sm:$0xff]  ;;  %v1691_v6 = vld [vmem:[%s4704_s24 + $0x98] sm:$0xff] }
 0x160   : > { %1590 = vmatprep.mubr.f32.mxu1 %v4638_v1  ;;  %1661 = vmatprep.mubr.f32.mxu0 %v4638_v1  ;;  %v1708_v5 = vld [vmem:[%s4704_s24 + $0x120] sm:$0xff]  ;;  %v1723_v7 = vld [vmem:[%s4704_s24 + $0x198] sm:$0xff] }
 0x161   : > { %1555 = vmatpush1.msra.mxu1 %v1466_v8  ;;  %1626 = vmatpush1.msra.mxu0 %v1468_v9  ;;  %v1675_v8 = vld [vmem:[%s4704_s24 + $0x18] sm:$0xff] }
 0x162   : > { %1556 = vmatprep.subr.mxu1 %v1463_v10  ;;  %1627 = vmatprep.subr.mxu0 %v1465_v11  ;;  %v1707_v9 = vld [vmem:[%s4704_s24 + $0x118] sm:$0xff] }
 0x163   : > { %1557 = vmatpush1.msra.mxu1 %v1462_v12  ;;  %1628 = vmatpush1.msra.mxu0 %v1464_v13 }
 0x164   : > { %3777 = vmatprep.subr.mxu1 %v1703_v14  ;;  %3812 = vmatprep.subr.mxu0 %v1735_v15  ;;  %v1690_v14 = vld [vmem:[%s4704_s24 + $0x90] sm:$0xff] }
 0x165   : > { %v1722_v15 = vld [vmem:[%s4704_s24 + $0x190] sm:$0xff] }
 0x1e1   : > { %v1184_v17 = vpop.f32.mrf.mxu1  ;;  %v5090_v18 = vpop.f32.mrf.mxu0 }
 0x1e2   : > { %v1185_v19 = vadd.f32 %v3686_v16, %v1184_v17  ;;  %v1674_v16 = vld [vmem:[%s4704_s24 + $0x10] sm:$0xff] }
 0x1e3   : > { %v4109_v22 = vpop.f32.mrf.mxu1  ;;  %v4144_v23 = vpop.f32.mrf.mxu0  ;;  %v1706_v17 = vld [vmem:[%s4704_s24 + $0x110] sm:$0xff] }
 0x1e4   : > { %1591 = vmatmul.mubr.f32.vlgmr.msra.gmra.mxu1 %v1185_v19  ;;  %1662 = vmatmul.mubr.f32.vlgmr.msra.gmra.mxu0 %v1185_v19  ;;  %v1689_v19 = vld [vmem:[%s4704_s24 + $0x88] sm:$0xff]  ;;  %v1688_v23 = vld [vmem:[%s4704_s24 + $0x80] sm:$0xff] }
 0x1e5   : > { %3778 = vmatpush3.msra.mxu1 %v1687_v20  ;;  %3813 = vmatpush3.msra.mxu0 %v1719_v21  ;;  %v1721_v20 = vld [vmem:[%s4704_s24 + $0x188] sm:$0xff] }
 0x1e6   : > { %3779 = vmatprep.subr.mxu1 %v1702_v24  ;;  %3814 = vmatprep.subr.mxu0 %v1734_v25  ;;  %v1673_v21 = vld [vmem:[%s4704_s24 + $0x8] sm:$0xff]  ;;  %v1720_v24 = vld [vmem:[%s4704_s24 + $0x180] sm:$0xff] }
 0x1e7   : > { %3780 = vmatpush3.msra.mxu1 %v1686_v26  ;;  %3815 = vmatpush3.msra.mxu0 %v1718_v27  ;;  %v1705_v22 = vld [vmem:[%s4704_s24 + $0x108] sm:$0xff]  ;;  %v1672_v25 = vld [vmem:[%s4704_s24] sm:$0xff] }
 0x1e8   : > { %3781 = vmatprep.subr.mxu1 %v1701_v28  ;;  %3816 = vmatprep.subr.mxu0 %v1733_v29  ;;  %v1704_v26 = vld [vmem:[%s4704_s24 + $0x100] sm:$0xff] }
 0x1e9   : > { %3782 = vmatpush3.msra.mxu1 %v1685_v30  ;;  %3817 = vmatpush3.msra.mxu0 %v1717_v31  ;;  %v3687_v27 = vld [vmem:[%s4679_s29] ss:$0 sm:$0xff] }
 0x1ea   : > { %3783 = vmatprep.subr.mxu1 %v1700_v32  ;;  %3818 = vmatprep.subr.mxu0 %v1732_v33  ;;  %v1278_v30 = vadd.f32 %v3687_v27, %v5090_v18  ;;  %v2250_v27 = vld [vmem:[%s5852_s16 + $0x178] sm:$0xff] }
 0x1eb   : > { %3784 = vmatpush3.msra.mxu1 %v1684_v34  ;;  %3819 = vmatpush3.msra.mxu0 %v1716_v35 }
 0x1ec   : > { %3785 = vmatprep.subr.mxu1 %v1699_v36  ;;  %3820 = vmatprep.subr.mxu0 %v1731_v37 }
 0x1ed   : > { %3786 = vmatpush3.msra.mxu1 %v1683_v38  ;;  %3821 = vmatpush3.msra.mxu0 %v1715_v39 }
 0x1ee   : > { %3787 = vmatprep.subr.mxu1 %v1698_v41  ;;  %3822 = vmatprep.subr.mxu0 %v1730_v42 }
 0x1ef   : > { %3788 = vmatpush3.msra.mxu1 %v1682_v43  ;;  %3823 = vmatpush3.msra.mxu0 %v1714_v44 }
 0x1f0   : > { %3789 = vmatprep.subr.mxu1 %v1697_v45  ;;  %3824 = vmatprep.subr.mxu0 %v1729_v46  ;;  %v1886_v46 = vld [vmem:[%s4709_s30 + $0x18] sm:$0xff] }
 0x1f1   : > { %3790 = vmatpush3.msra.mxu1 %v1681_v47  ;;  %3825 = vmatpush3.msra.mxu0 %v1713_v48  ;;  %v1885_v47 = vld [vmem:[%s4709_s30 + $0x10] sm:$0xff]  ;;  %v1884_v48 = vld [vmem:[%s4709_s30 + $0x8] sm:$0xff] }
 0x1f2   : > { %3791 = vmatprep.subr.mxu1 %v1696_v49  ;;  %3826 = vmatprep.subr.mxu0 %v1728_v50  ;;  %v1883_v49 = vld [vmem:[%s4709_s30] sm:$0xff] }
 0x1f3   : > { %3792 = vmatpush3.msra.mxu1 %v1680_v51  ;;  %3827 = vmatpush3.msra.mxu0 %v1712_v52 }
 0x1f4   : > { %3793 = vmatprep.subr.mxu1 %v1695_v53  ;;  %3828 = vmatprep.subr.mxu0 %v1727_v54  ;;  %v1965_v54 = vld [vmem:[%s5846_s6 + $0x18] sm:$0xff] }
 0x1f5   : > { %3794 = vmatpush3.msra.mxu1 %v1679_v55  ;;  %3829 = vmatpush3.msra.mxu0 %v1711_v56  ;;  %v2054_v55 = vld [vmem:[%s5843_s12 + $0x68] sm:$0xff]  ;;  %v2053_v56 = vld [vmem:[%s5843_s12 + $0x60] sm:$0xff] }
 0x1f6   : > { %3795 = vmatprep.subr.mxu1 %v1694_v57  ;;  %3830 = vmatprep.subr.mxu0 %v1726_v58  ;;  %v1964_v57 = vld [vmem:[%s5846_s6 + $0x10] sm:$0xff]  ;;  %v2050_v58 = vld [vmem:[%s5843_s12 + $0x48] sm:$0xff] }
 0x1f7   : > { %3796 = vmatpush3.msra.mxu1 %v1678_v59  ;;  %3831 = vmatpush3.msra.mxu0 %v1710_v60  ;;  %v2049_v59 = vld [vmem:[%s5843_s12 + $0x40] sm:$0xff]  ;;  %v1963_v60 = vld [vmem:[%s5846_s6 + $0x8] sm:$0xff] }
 0x1f8   : > { %3797 = vmatprep.subr.mxu1 %v1693_v61  ;;  %3832 = vmatprep.subr.mxu0 %v1725_v62  ;;  %v2046_v61 = vld [vmem:[%s5843_s12 + $0x28] sm:$0xff]  ;;  %v2045_v62 = vld [vmem:[%s5843_s12 + $0x20] sm:$0xff] }
 0x1f9   : > { %3798 = vmatpush3.msra.mxu1 %v1677_v63  ;;  %3833 = vmatpush3.msra.mxu0 %v1709_v0  ;;  %v1962_v63 = vld [vmem:[%s5846_s6] sm:$0xff]  ;;  %v2042_v0 = vld [vmem:[%s5843_s12 + $0x8] sm:$0xff]  ;;  %s5861_s6 = sld [smem:[#allocation18_spill]] }
 0x1fa   : > { %3799 = vmatprep.subr.mxu1 %v1692_v2  ;;  %3834 = vmatprep.subr.mxu0 %v1724_v3  ;;  %v2041_v2 = vld [vmem:[%s5843_s12] sm:$0xff]  ;;  %v2056_v3 = vld [vmem:[%s5843_s12 + $0x78] sm:$0xff] }
 0x1fb   : > { %3800 = vmatpush3.msra.mxu1 %v1676_v4  ;;  %3835 = vmatpush3.msra.mxu0 %v1708_v5  ;;  %v2234_v4 = vld [vmem:[%s5852_s16 + $0xf8] sm:$0xff] }
 0x1fc   : > { %3801 = vmatprep.subr.mxu1 %v1691_v6  ;;  %3836 = vmatprep.subr.mxu0 %v1723_v7 }
 0x1fd   : > { %3802 = vmatpush3.msra.mxu1 %v1675_v8  ;;  %3837 = vmatpush3.msra.mxu0 %v1707_v9  ;;  %v2055_v9 = vld [vmem:[%s5843_s12 + $0x70] sm:$0xff] }
 0x1fe   : > { %3803 = vmatprep.subr.mxu1 %v1690_v14  ;;  %3838 = vmatprep.subr.mxu0 %v1722_v15  ;;  %v2233_v14 = vld [vmem:[%s5852_s16 + $0xf0] sm:$0xff]  ;;  %v2048_v15 = vld [vmem:[%s5843_s12 + $0x38] sm:$0xff] }
 0x1ff   : > { %3804 = vmatpush3.msra.mxu1 %v1674_v16  ;;  %3839 = vmatpush3.msra.mxu0 %v1706_v17  ;;  %v2217_v16 = vld [vmem:[%s5852_s16 + $0x70] sm:$0xff] }
 0x200   : > { %3805 = vmatprep.subr.mxu1 %v1689_v19  ;;  %3840 = vmatprep.subr.mxu0 %v1721_v20  ;;  %v2047_v17 = vld [vmem:[%s5843_s12 + $0x30] sm:$0xff]  ;;  %v2232_v19 = vld [vmem:[%s5852_s16 + $0xe8] sm:$0xff]  ;;  %v2044_v20 = vld [vmem:[%s5843_s12 + $0x18] sm:$0xff] }
 0x201   : > { %3806 = vmatpush3.msra.mxu1 %v1673_v21  ;;  %3841 = vmatpush3.msra.mxu0 %v1705_v22  ;;  %v2216_v21 = vld [vmem:[%s5852_s16 + $0x68] sm:$0xff]  ;;  %v2043_v22 = vld [vmem:[%s5843_s12 + $0x10] sm:$0xff] }
 0x202   : > { %v5142_v10 = vpop.f32.mrf.mxu1  ;;  %v1457_v11 = vpop.f32.mrf.mxu0  ;;  %3807 = vmatprep.subr.mxu1 %v1688_v23  ;;  %3842 = vmatprep.subr.mxu0 %v1720_v24  ;;  %v2231_v23 = vld [vmem:[%s5852_s16 + $0xe0] sm:$0xff] }
 0x203   : > { %3808 = vmatpush3.msra.mxu1 %v1672_v25  ;;  %3843 = vmatpush3.msra.mxu0 %v1704_v26  ;;  %vm1461_vm2 = vcmp.lt.f32.partialorder %v1457_v11, 1e-06  ;;  %v2052_v11 = vld [vmem:[%s5843_s12 + $0x58] sm:$0xff]  ;;  %v2215_v24 = vld [vmem:[%s5852_s16 + $0x60] sm:$0xff] }
 0x204   : > { %v4179_v12 = vpop.f32.mrf.mxu1  ;;  %v4214_v13 = vpop.f32.mrf.mxu0  ;;  %4215 = vmatprep.subr.mxu0 %v4638_v1  ;;  %2081 = vmatprep.subr.mxu1 %v2054_v55  ;;  %v2266_v25 = vld [vmem:[%s5852_s16 + $0x1f8] sm:$0xff]  ;;  %v2243_v55 = vld [vmem:[%s5852_s16 + $0x140] sm:$0xff] }
 0x205   : > { %v2218_v12 = vld [vmem:[%s5852_s16 + $0x78] sm:$0xff]  ;;  %v2051_v13 = vld [vmem:[%s5843_s12 + $0x50] sm:$0xff] }
 0x206   : > { %v2230_v26 = vld [vmem:[%s5852_s16 + $0xd8] sm:$0xff] }
 0x2a4   : > { %v1592_v28 = vpop.f32.mrf.mxu1  ;;  %v1663_v29 = vpop.f32.mrf.mxu0 }
 0x2a5   : > { %v1668_v35 = vmul.f32 %v1592_v28, %v1278_v30  ;;  %v1670_v36 = vmul.f32 %v1663_v29, %v1278_v30  ;;  %v2214_v28 = vld [vmem:[%s5852_s16 + $0x58] sm:$0xff]  ;;  %v2265_v29 = vld [vmem:[%s5852_s16 + $0x1f0] sm:$0xff] }
 0x2a6   : > { %v1594_v31 = vpop.f32.mrf.mxu1  ;;  %v1665_v32 = vpop.f32.mrf.mxu0 }
 0x2a7   : > { %v1669_v33 = vmul.f32 %v1594_v31, %v1278_v30  ;;  %v1671_v34 = vmul.f32 %v1665_v32, %v1278_v30  ;;  %v2229_v30 = vld [vmem:[%s5852_s16 + $0xd0] sm:$0xff] }
 0x2a8   : > { %v2249_v31 = vld [vmem:[%s5852_s16 + $0x170] sm:$0xff] }
 0x2a9   : > { %1800 = vmatprep.mubr.f32.mxu1 %v1669_v33  ;;  %1870 = vmatprep.mubr.f32.mxu0 %v1671_v34  ;;  %v2213_v32 = vld [vmem:[%s5852_s16 + $0x50] sm:$0xff]  ;;  %v2264_v33 = vld [vmem:[%s5852_s16 + $0x1e8] sm:$0xff] }
 0x2aa   : > { %1801 = vmatmul.mubr.f32.vlgmr.msra.gmra.mxu1 %v1668_v35  ;;  %1871 = vmatmul.mubr.f32.vlgmr.msra.gmra.mxu0 %v1670_v36  ;;  %v2228_v34 = vld [vmem:[%s5852_s16 + $0xc8] sm:$0xff] }
 0x2ab   : > { %4223 = vmatprep.mubr.msk.f32.mxu0 %vm4639_vm0, %v4638_v1  ;;  %2121 = vmatprep.mubr.f32.mxu1 %v4638_v1  ;;  %v2248_v35 = vld [vmem:[%s5852_s16 + $0x168] sm:$0xff] }
 0x2ac   : > { %4216 = vmatpush3.msra.mxu0 %v1886_v46  ;;  %2082 = vmatpush1.msra.mxu1 %v2053_v56  ;;  %v2212_v36 = vld [vmem:[%s5852_s16 + $0x48] sm:$0xff]  ;;  %v2225_v46 = vld [vmem:[%s5852_s16 + $0xb0] sm:$0xff]  ;;  %v2207_v56 = vld [vmem:[%s5852_s16 + $0x20] sm:$0xff] }
 0x2ad   : > { %4217 = vmatprep.subr.mxu0 %v4638_v1  ;;  %2083 = vmatprep.subr.mxu1 %v2050_v58  ;;  %v2222_v58 = vld [vmem:[%s5852_s16 + $0x98] sm:$0xff] }
 0x2ae   : > { %4218 = vmatpush3.msra.mxu0 %v1885_v47  ;;  %2084 = vmatpush1.msra.mxu1 %v2049_v59  ;;  %v2245_v47 = vld [vmem:[%s5852_s16 + $0x150] sm:$0xff]  ;;  %v2242_v59 = vld [vmem:[%s5852_s16 + $0x138] sm:$0xff] }
 0x2af   : > { %4219 = vmatprep.subr.mxu0 %v4638_v1  ;;  %2085 = vmatprep.subr.mxu1 %v2046_v61  ;;  %v2257_v61 = vld [vmem:[%s5852_s16 + $0x1b0] sm:$0xff] }
 0x2b0   : > { %4220 = vmatpush3.msra.mxu0 %v1884_v48  ;;  %2086 = vmatpush1.msra.mxu1 %v2045_v62  ;;  %v2209_v48 = vld [vmem:[%s5852_s16 + $0x30] sm:$0xff] }
 0x2b1   : > { %4221 = vmatprep.subr.mxu0 %v4638_v1  ;;  %2087 = vmatprep.subr.mxu1 %v2042_v0  ;;  %v2221_v62 = vld [vmem:[%s5852_s16 + $0x90] sm:$0xff] }
 0x2b2   : > { %4222 = vmatpush3.msra.mxu0 %v1883_v49  ;;  %2088 = vmatpush1.msra.mxu1 %v2041_v2  ;;  %v2260_v49 = vld [vmem:[%s5852_s16 + $0x1c8] sm:$0xff]  ;;  %v2205_v0 = vld [vmem:[%s5852_s16 + $0x10] sm:$0xff] }
 0x2b3   : > { %4226 = vmatprep.subr.mxu0 %v4638_v1  ;;  %3857 = vmatprep.subr.mxu1 %v2234_v4  ;;  %v2256_v2 = vld [vmem:[%s5852_s16 + $0x1a8] sm:$0xff] }
 0x2b4   : > { %v2240_v4 = vld [vmem:[%s5852_s16 + $0x128] sm:$0xff] }
 0x36a   : > { %v3809_v37 = vpop.f32.mrf.mxu1  ;;  %v3844_v18 = vpop.f32.mrf.mxu0 }
 0x36c   : > { %v3810_v38 = vpop.f32.mrf.mxu1  ;;  %v3845_v39 = vpop.f32.mrf.mxu0 }
 0x36d   : > { %v3811_v41 = vadd.f32 %v3810_v38, %v3809_v37  ;;  %v3846_v42 = vadd.f32 %v3845_v39, %v3844_v18  ;;  %v2263_v37 = vld [vmem:[%s5852_s16 + $0x1e0] sm:$0xff] }
 0x36e   : > { %v2227_v18 = vld [vmem:[%s5852_s16 + $0xc0] sm:$0xff] }
 0x36f   : > { %v1873_v43 = vadd.f32 %v3846_v42, %v3811_v41  ;;  %v2247_v38 = vld [vmem:[%s5852_s16 + $0x160] sm:$0xff]  ;;  %v2262_v41 = vld [vmem:[%s5852_s16 + $0x1d8] sm:$0xff] }
 0x370   : > { %v2211_v39 = vld [vmem:[%s5852_s16 + $0x40] sm:$0xff]  ;;  %v2226_v42 = vld [vmem:[%s5852_s16 + $0xb8] sm:$0xff] }
 0x371   : > { %v1876_v44 = vsel %vm1461_vm2, -inf, %v1873_v43  ;;  %v2246_v43 = vld [vmem:[%s5852_s16 + $0x158] sm:$0xff] }
 0x372   : > { %v1877_v45 = vsel %vm1021_vm1, %v1876_v44, -inf }
 0x373   : > { %1878 = vmax.xlane.f32.xlu0 %v1877_v45  ;;  %v2261_v45 = vld [vmem:[%s5852_s16 + $0x1d0] sm:$0xff] }
 0x3fc   : > { %v1879_v50 = vpop.xlane.xlu0 %1878 }
 0x3fd   : > { %v1880_v51 = vsub.f32 %v1876_v44, %v1879_v50  ;;  %v2210_v44 = vld [vmem:[%s5852_s16 + $0x38] sm:$0xff]  ;;  %v2224_v50 = vld [vmem:[%s5852_s16 + $0xa8] sm:$0xff] }
 0x3ff   : > { %v1881_v52 = vmul.f32 1.442695, %v1880_v51  ;;  %v2244_v51 = vld [vmem:[%s5852_s16 + $0x148] sm:$0xff] }
 0x401   : > { %4520 = vpow2.f32 %v1881_v52  ;;  %v2208_v52 = vld [vmem:[%s5852_s16 + $0x28] sm:$0xff] }
 0x40e   : > { %v4521_v53 = vpop.eup %4520 }
 0x40f   : > { %4224 = vmatmul.mubr.msk.f32.vlgmr.msra.gmra.mxu0 %vm1021_vm1, %v4521_v53 }
 0x410   : > { %4234 = vmatprep.mubr.msk.f32.mxu0 %vm4639_vm0, %v4638_v1  ;;  %4227 = vmatpush3.msra.mxu0 %v1965_v54  ;;  %v2223_v54 = vld [vmem:[%s5852_s16 + $0xa0] sm:$0xff] }
 0x411   : > { %4228 = vmatprep.subr.mxu0 %v4638_v1 }
 0x412   : > { %4229 = vmatpush3.msra.mxu0 %v1964_v57  ;;  %v2258_v57 = vld [vmem:[%s5852_s16 + $0x1b8] sm:$0xff] }
 0x413   : > { %4230 = vmatprep.subr.mxu0 %v4638_v1 }
 0x414   : > { %4231 = vmatpush3.msra.mxu0 %v1963_v60  ;;  %v2206_v60 = vld [vmem:[%s5852_s16 + $0x18] sm:$0xff] }
 0x415   : > { %4232 = vmatprep.subr.mxu0 %v4638_v1 }
 0x416   : > { %4233 = vmatpush3.msra.mxu0 %v1962_v63  ;;  %v2241_v63 = vld [vmem:[%s5852_s16 + $0x130] sm:$0xff] }
 0x417   : > { %2152 = vmatprep.subr.mxu0 %v2056_v3  ;;  %v2220_v3 = vld [vmem:[%s5852_s16 + $0x88] sm:$0xff] }
 0x4cf   : > { %v1956_v5 = vpop.f32.mrf.mxu0 }
 0x4d0   : > { %4522 = vrcp.f32 %v1956_v5  ;;  %v2204_v5 = vld [vmem:[%s5852_s16 + $0x8] sm:$0xff] }
 0x4d1   : > { %v4225_v6 = vpop.f32.mrf.mxu0 }
 0x4d2   : > { %v2255_v6 = vld [vmem:[%s5852_s16 + $0x1a0] sm:$0xff] }
 0x4dd   : > { %v4523_v7 = vpop.eup %4522 }
 0x4de   : > { %v1961_v8 = vmul.f32 %v4523_v7, %v4521_v53  ;;  %v2259_v53 = vld [vmem:[%s5852_s16 + $0x1c0] sm:$0xff] }
 0x4df   : > { %v2219_v7 = vld [vmem:[%s5852_s16 + $0x80] sm:$0xff] }
 0x4e0   : > { %4235 = vmatmul.mubr.msk.f32.vlgmr.msra.gmra.mxu0 %vm1021_vm1, %v1961_v8  ;;  %3691 = vmatmul.mubr.msk.f32.vlgmr.msra.gmra.mxu1 %vm1021_vm1, %v1961_v8 }
 0x4e1   : > { %2153 = vmatpush1.msra.mxu0 %v2055_v9  ;;  %2192 = vmatprep.mubr.f32.mxu0 %v4638_v1  ;;  %v2203_v9 = vld [vmem:[%s5852_s16] sm:$0xff] }
 0x4e2   : > { %2154 = vmatprep.subr.mxu0 %v2052_v11  ;;  %3858 = vmatpush3.msra.mxu1 %v2218_v12  ;;  %v2254_v11 = vld [vmem:[%s5852_s16 + $0x198] sm:$0xff] }
 0x4e3   : > { %2155 = vmatpush1.msra.mxu0 %v2051_v13  ;;  %3859 = vmatprep.subr.mxu1 %v2233_v14  ;;  %v2238_v12 = vld [vmem:[%s5852_s16 + $0x118] sm:$0xff]  ;;  %v2253_v13 = vld [vmem:[%s5852_s16 + $0x190] sm:$0xff] }
 0x4e4   : > { %2156 = vmatprep.subr.mxu0 %v2048_v15  ;;  %3860 = vmatpush3.msra.mxu1 %v2217_v16  ;;  %v2237_v14 = vld [vmem:[%s5852_s16 + $0x110] sm:$0xff]  ;;  %v2252_v15 = vld [vmem:[%s5852_s16 + $0x188] sm:$0xff] }
 0x4e5   : > { %2157 = vmatpush1.msra.mxu0 %v2047_v17  ;;  %3861 = vmatprep.subr.mxu1 %v2232_v19  ;;  %v2236_v16 = vld [vmem:[%s5852_s16 + $0x108] sm:$0xff]  ;;  %v2251_v17 = vld [vmem:[%s5852_s16 + $0x180] sm:$0xff] }
 0x4e6   : > { %2158 = vmatprep.subr.mxu0 %v2044_v20  ;;  %3862 = vmatpush3.msra.mxu1 %v2216_v21  ;;  %v2235_v19 = vld [vmem:[%s5852_s16 + $0x100] sm:$0xff] }
 0x4e7   : > { %2159 = vmatpush1.msra.mxu0 %v2043_v22  ;;  %3863 = vmatprep.subr.mxu1 %v2231_v23  ;;  %v3688_v20 = vld [vmem:[%s5853_s15] ss:$0 sm:$0xff]  ;;  %s5859_s15 = sld [smem:[#allocation21_spill]] }
 0x4e8   : > { %3692 = vmatmul.mubr.msk.f32.vlgmr.msra.gmra.mxu0 %vm1021_vm1, %v1961_v8  ;;  %3864 = vmatpush3.msra.mxu1 %v2215_v24  ;;  %v2239_v8 = vld [vmem:[%s5852_s16 + $0x120] sm:$0xff]  ;;  %v1371_v23 = vadd.f32 %v3688_v20, %v5142_v10  ;;  %v2420_v10 = vld [vmem:[%s5854_s10 + $0x68] sm:$0xff] }
 0x4e9   : > { %3892 = vmatprep.subr.mxu0 %v2266_v25  ;;  %3865 = vmatprep.subr.mxu1 %v2230_v26  ;;  %v2710_v20 = vld [vmem:[%s5858_s26 + $0x188] sm:$0xff] }
 0x4ea   : > { %3893 = vmatpush3.msra.mxu0 %v2250_v27  ;;  %3866 = vmatpush3.msra.mxu1 %v2214_v28  ;;  %v2422_v28 = vld [vmem:[%s5854_s10 + $0x78] sm:$0xff] }
 0x4eb   : > { %3894 = vmatprep.subr.mxu0 %v2265_v29  ;;  %3867 = vmatprep.subr.mxu1 %v2229_v30  ;;  %v2421_v29 = vld [vmem:[%s5854_s10 + $0x70] sm:$0xff] }
 0x4ec   : > { %3895 = vmatpush3.msra.mxu0 %v2249_v31  ;;  %3868 = vmatpush3.msra.mxu1 %v2213_v32  ;;  %v2419_v32 = vld [vmem:[%s5854_s10 + $0x60] sm:$0xff] }
 0x4ed   : > { %3896 = vmatprep.subr.mxu0 %v2264_v33  ;;  %3869 = vmatprep.subr.mxu1 %v2228_v34 }
 0x4ee   : > { %3897 = vmatpush3.msra.mxu0 %v2248_v35  ;;  %3870 = vmatpush3.msra.mxu1 %v2212_v36  ;;  %v2418_v35 = vld [vmem:[%s5854_s10 + $0x58] sm:$0xff]  ;;  %v2417_v36 = vld [vmem:[%s5854_s10 + $0x50] sm:$0xff] }
 0x4ef   : > { %3898 = vmatprep.subr.mxu0 %v2263_v37  ;;  %3871 = vmatprep.subr.mxu1 %v2227_v18  ;;  %v2416_v37 = vld [vmem:[%s5854_s10 + $0x48] sm:$0xff]  ;;  %v2415_v18 = vld [vmem:[%s5854_s10 + $0x40] sm:$0xff] }
 0x4f0   : > { %3899 = vmatpush3.msra.mxu0 %v2247_v38  ;;  %3872 = vmatpush3.msra.mxu1 %v2211_v39  ;;  %v2414_v38 = vld [vmem:[%s5854_s10 + $0x38] sm:$0xff]  ;;  %v2413_v39 = vld [vmem:[%s5854_s10 + $0x30] sm:$0xff] }
 0x4f1   : > { %3900 = vmatprep.subr.mxu0 %v2262_v41  ;;  %3873 = vmatprep.subr.mxu1 %v2226_v42  ;;  %v2412_v41 = vld [vmem:[%s5854_s10 + $0x28] sm:$0xff]  ;;  %v2411_v42 = vld [vmem:[%s5854_s10 + $0x20] sm:$0xff] }
 0x4f2   : > { %3901 = vmatpush3.msra.mxu0 %v2246_v43  ;;  %3874 = vmatpush3.msra.mxu1 %v2210_v44  ;;  %v2410_v43 = vld [vmem:[%s5854_s10 + $0x18] sm:$0xff]  ;;  %v2409_v44 = vld [vmem:[%s5854_s10 + $0x10] sm:$0xff] }
 0x4f3   : > { %3902 = vmatprep.subr.mxu0 %v2261_v45  ;;  %3875 = vmatprep.subr.mxu1 %v2225_v46  ;;  %v2408_v45 = vld [vmem:[%s5854_s10 + $0x8] sm:$0xff]  ;;  %v2407_v46 = vld [vmem:[%s5854_s10] sm:$0xff] }
 0x4f4   : > { %3903 = vmatpush3.msra.mxu0 %v2245_v47  ;;  %3876 = vmatpush3.msra.mxu1 %v2209_v48 }
 0x4f5   : > { %3904 = vmatprep.subr.mxu0 %v2260_v49  ;;  %3877 = vmatprep.subr.mxu1 %v2224_v50 }
 0x4f6   : > { %3905 = vmatpush3.msra.mxu0 %v2244_v51  ;;  %3878 = vmatpush3.msra.mxu1 %v2208_v52 }
 0x4f7   : > { %3906 = vmatprep.subr.mxu0 %v2259_v53  ;;  %3879 = vmatprep.subr.mxu1 %v2223_v54 }
 0x4f8   : > { %3907 = vmatpush3.msra.mxu0 %v2243_v55  ;;  %3880 = vmatpush3.msra.mxu1 %v2207_v56 }
 0x4f9   : > { %3908 = vmatprep.subr.mxu0 %v2258_v57  ;;  %3881 = vmatprep.subr.mxu1 %v2222_v58 }
 0x4fa   : > { %3909 = vmatpush3.msra.mxu0 %v2242_v59  ;;  %3882 = vmatpush3.msra.mxu1 %v2206_v60 }
 0x4fb   : > { %3910 = vmatprep.subr.mxu0 %v2257_v61  ;;  %3883 = vmatprep.subr.mxu1 %v2221_v62 }
 0x4fc   : > { %3911 = vmatpush3.msra.mxu0 %v2241_v63  ;;  %3884 = vmatpush3.msra.mxu1 %v2205_v0 }
 0x4fd   : > { %3912 = vmatprep.subr.mxu0 %v2256_v2  ;;  %3885 = vmatprep.subr.mxu1 %v2220_v3 }
 0x4fe   : > { %3913 = vmatpush3.msra.mxu0 %v2240_v4  ;;  %3886 = vmatpush3.msra.mxu1 %v2204_v5 }
 0x4ff   : > { %3914 = vmatprep.subr.mxu0 %v2255_v6  ;;  %3887 = vmatprep.subr.mxu1 %v2219_v7  ;;  %v3693_v7 = vld [vmem:[%s5857_s3] ss:$0 sm:$0xff]  ;;  %s5860_s3 = sld [smem:[#allocation17_spill]] }
 0x500   : > { %3915 = vmatpush3.msra.mxu0 %v2239_v8  ;;  %3888 = vmatpush3.msra.mxu1 %v2203_v9 }
 0x501   : > { %3916 = vmatprep.subr.mxu0 %v2254_v11  ;;  %4237 = vmatprep.subr.mxu1 %v4638_v1 }
 0x502   : > { %3917 = vmatpush3.msra.mxu0 %v2238_v12 }
 0x503   : > { %3918 = vmatprep.subr.mxu0 %v2253_v13  ;;  %v2722_v13 = vld [vmem:[%s5858_s26 + $0x1e8] sm:$0xff] }
 0x504   : > { %3919 = vmatpush3.msra.mxu0 %v2237_v14  ;;  %v2724_v14 = vld [vmem:[%s5858_s26 + $0x1f8] sm:$0xff] }
 0x505   : > { %3920 = vmatprep.subr.mxu0 %v2252_v15  ;;  %v2721_v15 = vld [vmem:[%s5858_s26 + $0x1e0] sm:$0xff] }
 0x506   : > { %3921 = vmatpush3.msra.mxu0 %v2236_v16  ;;  %v2718_v16 = vld [vmem:[%s5858_s26 + $0x1c8] sm:$0xff] }
 0x507   : > { %3922 = vmatprep.subr.mxu0 %v2251_v17  ;;  %v2717_v17 = vld [vmem:[%s5858_s26 + $0x1c0] sm:$0xff] }
 0x508   : > { %3923 = vmatpush3.msra.mxu0 %v2235_v19  ;;  %v2714_v19 = vld [vmem:[%s5858_s26 + $0x1a8] sm:$0xff] }
 0x509   : > { %4272 = vmatprep.subr.mxu0 %v4638_v1 }
 0x5a0   : > { %v2035_v21 = vpop.f32.mrf.mxu0  ;;  %v2123_v22 = vpop.f32.mrf.mxu1 }
 0x5a1   : > { %2040 = vst.msk [vmem:[%s992_s5] sm:$0xff] %vm2039_vm3, %v2035_v21  ;;  %v2199_v27 = vmul.f32 %v2123_v22, %v1371_v23  ;;  %s5856_s5 = sld [smem:[#allocation16_spill]]  ;;  %v2709_v21 = vld [vmem:[%s5858_s26 + $0x180] sm:$0xff]  ;;  %v2706_v22 = vld [vmem:[%s5858_s26 + $0x168] sm:$0xff] }
 0x5a2   : > { %v4236_v24 = vpop.f32.mrf.mxu0  ;;  %v2125_v25 = vpop.f32.mrf.mxu1 }
 0x5a3   : > { %v2200_v26 = vmul.f32 %v2125_v25, %v1371_v23 }
 0x5a5   : > { %2331 = vmatprep.mubr.f32.mxu1 %v2200_v26 }
 0x5a6   : > { %2332 = vmatmul.mubr.f32.vlgmr.msra.gmra.mxu1 %v2199_v27  ;;  %v2723_v27 = vld [vmem:[%s5858_s26 + $0x1f0] sm:$0xff] }
 0x5a7   : > { %4238 = vmatpush3.msra.mxu1 %v2422_v28  ;;  %4269 = vmatprep.mubr.msk.f32.mxu1 %vm4639_vm0, %v4638_v1  ;;  %v1008_v47 = vld [vmem:[%s5856_s5 + $0x78] sm:$0xff]  ;;  %v1007_v48 = vld [vmem:[%s5856_s5 + $0x70] sm:$0xff]  ;;  %v1006_v49 = vld [vmem:[%s5856_s5 + $0x68] sm:$0xff] }
 0x5a8   : > { %v2194_v30 = vpop.f32.mrf.mxu0  ;;  %4239 = vmatprep.subr.mxu1 %v4638_v1  ;;  %v1005_v50 = vld [vmem:[%s5856_s5 + $0x60] sm:$0xff]  ;;  %v1004_v51 = vld [vmem:[%s5856_s5 + $0x58] sm:$0xff]  ;;  %v1003_v52 = vld [vmem:[%s5856_s5 + $0x50] sm:$0xff] }
 0x5a9   : > { %4240 = vmatpush3.msra.mxu1 %v2421_v29  ;;  %v2201_v34 = vmul.f32 %v2194_v30, %v1371_v23  ;;  %v1002_v53 = vld [vmem:[%s5856_s5 + $0x48] sm:$0xff]  ;;  %v1001_v54 = vld [vmem:[%s5856_s5 + $0x40] sm:$0xff]  ;;  %v1000_v55 = vld [vmem:[%s5856_s5 + $0x38] sm:$0xff] }
 0x5aa   : > { %v2196_v31 = vpop.f32.mrf.mxu0  ;;  %4241 = vmatprep.subr.mxu1 %v4638_v1  ;;  %v999_v56 = vld [vmem:[%s5856_s5 + $0x30] sm:$0xff]  ;;  %v998_v57 = vld [vmem:[%s5856_s5 + $0x28] sm:$0xff]  ;;  %v997_v58 = vld [vmem:[%s5856_s5 + $0x20] sm:$0xff] }
 0x5ab   : > { %v2202_v33 = vmul.f32 %v2196_v31, %v1371_v23  ;;  %4242 = vmatpush3.msra.mxu1 %v2420_v10  ;;  %v996_v59 = vld [vmem:[%s5856_s5 + $0x18] sm:$0xff]  ;;  %v995_v4 = vld [vmem:[%s5856_s5 + $0x10] sm:$0xff]  ;;  %v994_v5 = vld [vmem:[%s5856_s5 + $0x8] sm:$0xff] }
 0x5ac   : > { %4243 = vmatprep.subr.mxu1 %v4638_v1  ;;  %v993_v6 = vld [vmem:[%s5856_s5] sm:$0xff]  ;;  %v2720_v28 = vld [vmem:[%s5858_s26 + $0x1d8] sm:$0xff]  ;;  %v2719_v29 = vld [vmem:[%s5858_s26 + $0x1d0] sm:$0xff] }
 0x5ad   : > { %2401 = vmatprep.mubr.f32.mxu0 %v2202_v33  ;;  %4244 = vmatpush3.msra.mxu1 %v2419_v32  ;;  %v2716_v30 = vld [vmem:[%s5858_s26 + $0x1b8] sm:$0xff]  ;;  %v2715_v10 = vld [vmem:[%s5858_s26 + $0x1b0] sm:$0xff] }
 0x5ae   : > { %2402 = vmatmul.mubr.f32.vlgmr.msra.gmra.mxu0 %v2201_v34  ;;  %4245 = vmatprep.subr.mxu1 %v4638_v1  ;;  %v2712_v31 = vld [vmem:[%s5858_s26 + $0x198] sm:$0xff]  ;;  %v2711_v32 = vld [vmem:[%s5858_s26 + $0x190] sm:$0xff]  ;;  %v2705_v34 = vld [vmem:[%s5858_s26 + $0x160] sm:$0xff] }
 0x5af   : > { %4246 = vmatpush3.msra.mxu1 %v2418_v35  ;;  %4304 = vmatprep.mubr.msk.f32.mxu0 %vm4639_vm0, %v4638_v1  ;;  %v2708_v33 = vld [vmem:[%s5858_s26 + $0x178] sm:$0xff]  ;;  %v2707_v35 = vld [vmem:[%s5858_s26 + $0x170] sm:$0xff] }
 0x5b0   : > { %4247 = vmatprep.subr.mxu1 %v4638_v1  ;;  %4273 = vmatpush3.msra.mxu0 %v1008_v47 }
 0x5b1   : > { %4248 = vmatpush3.msra.mxu1 %v2417_v36  ;;  %4274 = vmatprep.subr.mxu0 %v4638_v1  ;;  %v2702_v36 = vld [vmem:[%s5858_s26 + $0x148] sm:$0xff] }
 0x5b2   : > { %4249 = vmatprep.subr.mxu1 %v4638_v1  ;;  %4275 = vmatpush3.msra.mxu0 %v1007_v48 }
 0x5b3   : > { %4250 = vmatpush3.msra.mxu1 %v2416_v37  ;;  %4276 = vmatprep.subr.mxu0 %v4638_v1  ;;  %v2704_v37 = vld [vmem:[%s5858_s26 + $0x158] sm:$0xff] }
 0x5b4   : > { %4251 = vmatprep.subr.mxu1 %v4638_v1  ;;  %4277 = vmatpush3.msra.mxu0 %v1006_v49 }
 0x5b5   : > { %4252 = vmatpush3.msra.mxu1 %v2415_v18  ;;  %4278 = vmatprep.subr.mxu0 %v4638_v1  ;;  %v2701_v18 = vld [vmem:[%s5858_s26 + $0x140] sm:$0xff] }
 0x5b6   : > { %4253 = vmatprep.subr.mxu1 %v4638_v1  ;;  %4279 = vmatpush3.msra.mxu0 %v1005_v50 }
 0x5b7   : > { %4254 = vmatpush3.msra.mxu1 %v2414_v38  ;;  %4280 = vmatprep.subr.mxu0 %v4638_v1  ;;  %v2703_v38 = vld [vmem:[%s5858_s26 + $0x150] sm:$0xff] }
 0x5b8   : > { %4255 = vmatprep.subr.mxu1 %v4638_v1  ;;  %4281 = vmatpush3.msra.mxu0 %v1004_v51 }
 0x5b9   : > { %4256 = vmatpush3.msra.mxu1 %v2413_v39  ;;  %4282 = vmatprep.subr.mxu0 %v4638_v1  ;;  %v2698_v39 = vld [vmem:[%s5858_s26 + $0x128] sm:$0xff] }
 0x5ba   : > { %4257 = vmatprep.subr.mxu1 %v4638_v1  ;;  %4283 = vmatpush3.msra.mxu0 %v1003_v52 }
 0x5bb   : > { %4258 = vmatpush3.msra.mxu1 %v2412_v41  ;;  %4284 = vmatprep.subr.mxu0 %v4638_v1  ;;  %v2700_v41 = vld [vmem:[%s5858_s26 + $0x138] sm:$0xff] }
 0x5bc   : > { %4259 = vmatprep.subr.mxu1 %v4638_v1  ;;  %4285 = vmatpush3.msra.mxu0 %v1002_v53 }
 0x5bd   : > { %4260 = vmatpush3.msra.mxu1 %v2411_v42  ;;  %4286 = vmatprep.subr.mxu0 %v4638_v1  ;;  %v2697_v42 = vld [vmem:[%s5858_s26 + $0x120] sm:$0xff] }
 0x5be   : > { %4261 = vmatprep.subr.mxu1 %v4638_v1  ;;  %4287 = vmatpush3.msra.mxu0 %v1001_v54 }
 0x5bf   : > { %4262 = vmatpush3.msra.mxu1 %v2410_v43  ;;  %4288 = vmatprep.subr.mxu0 %v4638_v1  ;;  %v2699_v43 = vld [vmem:[%s5858_s26 + $0x130] sm:$0xff] }
 0x5c0   : > { %4263 = vmatprep.subr.mxu1 %v4638_v1  ;;  %4289 = vmatpush3.msra.mxu0 %v1000_v55 }
 0x5c1   : > { %4264 = vmatpush3.msra.mxu1 %v2409_v44  ;;  %4290 = vmatprep.subr.mxu0 %v4638_v1  ;;  %v2694_v44 = vld [vmem:[%s5858_s26 + $0x108] sm:$0xff] }
 0x5c2   : > { %4265 = vmatprep.subr.mxu1 %v4638_v1  ;;  %4291 = vmatpush3.msra.mxu0 %v999_v56 }
 0x5c3   : > { %4266 = vmatpush3.msra.mxu1 %v2408_v45  ;;  %4292 = vmatprep.subr.mxu0 %v4638_v1  ;;  %v2696_v45 = vld [vmem:[%s5858_s26 + $0x118] sm:$0xff] }
 0x5c4   : > { %4267 = vmatprep.subr.mxu1 %v4638_v1  ;;  %4293 = vmatpush3.msra.mxu0 %v998_v57 }
 0x5c5   : > { %4268 = vmatpush3.msra.mxu1 %v2407_v46  ;;  %4294 = vmatprep.subr.mxu0 %v4638_v1  ;;  %v2693_v46 = vld [vmem:[%s5858_s26 + $0x100] sm:$0xff] }
 0x5c6   : > { %4307 = vmatprep.subr.mxu1 %v4638_v1  ;;  %4295 = vmatpush3.msra.mxu0 %v997_v58 }
 0x5c7   : > { %4296 = vmatprep.subr.mxu0 %v4638_v1 }
 0x5c8   : > { %4297 = vmatpush3.msra.mxu0 %v996_v59 }
 0x5c9   : > { %4298 = vmatprep.subr.mxu0 %v4638_v1 }
 0x5ca   : > { %4299 = vmatpush3.msra.mxu0 %v995_v4 }
 0x5cb   : > { %4300 = vmatprep.subr.mxu0 %v4638_v1 }
 0x5cc   : > { %4301 = vmatpush3.msra.mxu0 %v994_v5 }
 0x5cd   : > { %4302 = vmatprep.subr.mxu0 %v4638_v1 }
 0x5ce   : > { %4303 = vmatpush3.msra.mxu0 %v993_v6 }
 0x5cf   : > { %2747 = vmatprep.subr.mxu0 %v2722_v13  ;;  %v2667_v13 = vld [vmem:[%s5858_s26 + $0x30] sm:$0xff] }
 0x666   : > { %v3889_v60 = vpop.f32.mrf.mxu1 }
 0x668   : > { %v3890_v61 = vpop.f32.mrf.mxu1 }
 0x669   : > { %v3891_v0 = vadd.f32 %v3890_v61, %v3889_v60  ;;  %v2678_v60 = vld [vmem:[%s5858_s26 + $0x88] sm:$0xff]  ;;  %v2680_v61 = vld [vmem:[%s5858_s26 + $0x98] sm:$0xff] }
 0x66e   : > { %v3924_v62 = vpop.f32.mrf.mxu0 }
 0x670   : > { %v3925_v63 = vpop.f32.mrf.mxu0 }
 0x671   : > { %v3926_v2 = vadd.f32 %v3925_v63, %v3924_v62  ;;  %v2677_v62 = vld [vmem:[%s5858_s26 + $0x80] sm:$0xff]  ;;  %v2679_v63 = vld [vmem:[%s5858_s26 + $0x90] sm:$0xff] }
 0x673   : > { %v2404_v3 = vadd.f32 %v3926_v2, %v3891_v0  ;;  %v2674_v0 = vld [vmem:[%s5858_s26 + $0x68] sm:$0xff]  ;;  %v2676_v2 = vld [vmem:[%s5858_s26 + $0x78] sm:$0xff] }
 0x675   : > { %4270 = vmatmul.mubr.f32.vlgmr.msra.gmra.mxu1 %v2404_v3  ;;  %v2673_v3 = vld [vmem:[%s5858_s26 + $0x60] sm:$0xff] }
 0x676   : > { %4308 = vmatpush3.msra.mxu1 %v1008_v47  ;;  %4339 = vmatprep.mubr.msk.f32.mxu1 %vm4639_vm0, %v4638_v1  ;;  %v2695_v47 = vld [vmem:[%s5858_s26 + $0x110] sm:$0xff] }
 0x677   : > { %4309 = vmatprep.subr.mxu1 %v4638_v1 }
 0x678   : > { %4310 = vmatpush3.msra.mxu1 %v1007_v48  ;;  %v2690_v48 = vld [vmem:[%s5858_s26 + $0xe8] sm:$0xff] }
 0x679   : > { %4311 = vmatprep.subr.mxu1 %v4638_v1 }
 0x67a   : > { %4312 = vmatpush3.msra.mxu1 %v1006_v49  ;;  %v2692_v49 = vld [vmem:[%s5858_s26 + $0xf8] sm:$0xff] }
 0x67b   : > { %4313 = vmatprep.subr.mxu1 %v4638_v1 }
 0x67c   : > { %4314 = vmatpush3.msra.mxu1 %v1005_v50  ;;  %v2689_v50 = vld [vmem:[%s5858_s26 + $0xe0] sm:$0xff] }
 0x67d   : > { %4315 = vmatprep.subr.mxu1 %v4638_v1 }
 0x67e   : > { %4316 = vmatpush3.msra.mxu1 %v1004_v51  ;;  %v2691_v51 = vld [vmem:[%s5858_s26 + $0xf0] sm:$0xff] }
 0x67f   : > { %4317 = vmatprep.subr.mxu1 %v4638_v1 }
 0x680   : > { %4318 = vmatpush3.msra.mxu1 %v1003_v52  ;;  %v2686_v52 = vld [vmem:[%s5858_s26 + $0xc8] sm:$0xff] }
 0x681   : > { %4319 = vmatprep.subr.mxu1 %v4638_v1 }
 0x682   : > { %4320 = vmatpush3.msra.mxu1 %v1002_v53  ;;  %v2688_v53 = vld [vmem:[%s5858_s26 + $0xd8] sm:$0xff] }
 0x683   : > { %4321 = vmatprep.subr.mxu1 %v4638_v1 }
 0x684   : > { %4322 = vmatpush3.msra.mxu1 %v1001_v54  ;;  %v2685_v54 = vld [vmem:[%s5858_s26 + $0xc0] sm:$0xff] }
 0x685   : > { %4323 = vmatprep.subr.mxu1 %v4638_v1 }
 0x686   : > { %4324 = vmatpush3.msra.mxu1 %v1000_v55  ;;  %v2687_v55 = vld [vmem:[%s5858_s26 + $0xd0] sm:$0xff] }
 0x687   : > { %4325 = vmatprep.subr.mxu1 %v4638_v1 }
 0x688   : > { %4326 = vmatpush3.msra.mxu1 %v999_v56  ;;  %v2682_v56 = vld [vmem:[%s5858_s26 + $0xa8] sm:$0xff] }
 0x689   : > { %4327 = vmatprep.subr.mxu1 %v4638_v1 }
 0x68a   : > { %4328 = vmatpush3.msra.mxu1 %v998_v57  ;;  %v2684_v57 = vld [vmem:[%s5858_s26 + $0xb8] sm:$0xff] }
 0x68b   : > { %4329 = vmatprep.subr.mxu1 %v4638_v1 }
 0x68c   : > { %4330 = vmatpush3.msra.mxu1 %v997_v58  ;;  %v2681_v58 = vld [vmem:[%s5858_s26 + $0xa0] sm:$0xff] }
 0x68d   : > { %4331 = vmatprep.subr.mxu1 %v4638_v1 }
 0x68e   : > { %4332 = vmatpush3.msra.mxu1 %v996_v59  ;;  %v2683_v59 = vld [vmem:[%s5858_s26 + $0xb0] sm:$0xff] }
 0x68f   : > { %4333 = vmatprep.subr.mxu1 %v4638_v1 }
 0x690   : > { %4334 = vmatpush3.msra.mxu1 %v995_v4  ;;  %v2675_v4 = vld [vmem:[%s5858_s26 + $0x70] sm:$0xff] }
 0x691   : > { %4335 = vmatprep.subr.mxu1 %v4638_v1 }
 0x692   : > { %4336 = vmatpush3.msra.mxu1 %v994_v5  ;;  %v2670_v5 = vld [vmem:[%s5858_s26 + $0x48] sm:$0xff] }
 0x693   : > { %4337 = vmatprep.subr.mxu1 %v4638_v1 }
 0x694   : > { %4338 = vmatpush3.msra.mxu1 %v993_v6  ;;  %v2672_v6 = vld [vmem:[%s5858_s26 + $0x58] sm:$0xff] }
 0x695   : > { %2818 = vmatprep.subr.mxu1 %v2724_v14  ;;  %v2662_v14 = vld [vmem:[%s5858_s26 + $0x8] sm:$0xff] }
 0x735   : > { %v2496_v8 = vpop.f32.mrf.mxu1 }
 0x736   : > { %v2497_v9 = vadd.f32 %v3693_v7, %v2496_v8  ;;  %v2669_v7 = vld [vmem:[%s5858_s26 + $0x40] sm:$0xff]  ;;  %v2671_v8 = vld [vmem:[%s5858_s26 + $0x50] sm:$0xff] }
 0x737   : > { %v4271_v11 = vpop.f32.mrf.mxu1 }
 0x738   : > { %v2500_v12 = vadd.f32 %v2497_v9, %v4949_v40  ;;  %v2713_v40 = vld [vmem:[%s5858_s26 + $0x1a0] sm:$0xff]  ;;  %v2666_v9 = vld [vmem:[%s5858_s26 + $0x28] sm:$0xff]  ;;  %v2668_v11 = vld [vmem:[%s5858_s26 + $0x38] sm:$0xff] }
 0x73a   : > { %4305 = vmatmul.mubr.f32.vlgmr.msra.gmra.mxu0 %v2500_v12 }
 0x73b   : > { %2811 = vmatprep.mubr.f32.mxu0 %v4638_v1  ;;  %2748 = vmatpush1.msra.mxu0 %v2721_v15  ;;  %v2664_v15 = vld [vmem:[%s5858_s26 + $0x18] sm:$0xff] }
 0x73c   : > { %2749 = vmatprep.subr.mxu0 %v2718_v16  ;;  %v2661_v16 = vld [vmem:[%s5858_s26] sm:$0xff] }
 0x73d   : > { %2750 = vmatpush1.msra.mxu0 %v2717_v17  ;;  %v2663_v17 = vld [vmem:[%s5858_s26 + $0x10] sm:$0xff] }
 0x73e   : > { %2751 = vmatprep.subr.mxu0 %v2714_v19  ;;  %v2924_v19 = vld [vmem:[%s5859_s15 + $0xf8] sm:$0xff] }
 0x73f   : > { %2752 = vmatpush1.msra.mxu0 %v2713_v40  ;;  %v2988_v40 = vld [vmem:[%s5859_s15 + $0x2f8] sm:$0xff] }
 0x740   : > { %2753 = vmatprep.subr.mxu0 %v2710_v20 }
 0x741   : > { %2754 = vmatpush1.msra.mxu0 %v2709_v21 }
 0x742   : > { %2755 = vmatprep.subr.mxu0 %v2706_v22 }
 0x743   : > { %2756 = vmatpush1.msra.mxu0 %v2705_v34  ;;  %v2985_v34 = vld [vmem:[%s5859_s15 + $0x2e0] sm:$0xff] }
 0x744   : > { %2757 = vmatprep.subr.mxu0 %v2702_v36  ;;  %v2919_v36 = vld [vmem:[%s5859_s15 + $0xd0] sm:$0xff] }
 0x745   : > { %2758 = vmatpush1.msra.mxu0 %v2701_v18  ;;  %v2918_v18 = vld [vmem:[%s5859_s15 + $0xc8] sm:$0xff] }
 0x746   : > { %2759 = vmatprep.subr.mxu0 %v2698_v39  ;;  %v2917_v39 = vld [vmem:[%s5859_s15 + $0xc0] sm:$0xff] }
 0x747   : > { %2760 = vmatpush1.msra.mxu0 %v2697_v42  ;;  %v2916_v42 = vld [vmem:[%s5859_s15 + $0xb8] sm:$0xff] }
 0x748   : > { %2761 = vmatprep.subr.mxu0 %v2694_v44  ;;  %v2915_v44 = vld [vmem:[%s5859_s15 + $0xb0] sm:$0xff] }
 0x749   : > { %2762 = vmatpush1.msra.mxu0 %v2693_v46  ;;  %v2914_v46 = vld [vmem:[%s5859_s15 + $0xa8] sm:$0xff] }
 0x74a   : > { %2763 = vmatprep.subr.mxu0 %v2690_v48  ;;  %v2913_v48 = vld [vmem:[%s5859_s15 + $0xa0] sm:$0xff] }
 0x74b   : > { %2764 = vmatpush1.msra.mxu0 %v2689_v50  ;;  %v2912_v50 = vld [vmem:[%s5859_s15 + $0x98] sm:$0xff] }
 0x74c   : > { %2765 = vmatprep.subr.mxu0 %v2686_v52  ;;  %v2911_v52 = vld [vmem:[%s5859_s15 + $0x90] sm:$0xff] }
 0x74d   : > { %2766 = vmatpush1.msra.mxu0 %v2685_v54  ;;  %v2910_v54 = vld [vmem:[%s5859_s15 + $0x88] sm:$0xff] }
 0x74e   : > { %2767 = vmatprep.subr.mxu0 %v2682_v56  ;;  %v2909_v56 = vld [vmem:[%s5859_s15 + $0x80] sm:$0xff] }
 0x74f   : > { %2768 = vmatpush1.msra.mxu0 %v2681_v58  ;;  %v2908_v58 = vld [vmem:[%s5859_s15 + $0x78] sm:$0xff] }
 0x750   : > { %2769 = vmatprep.subr.mxu0 %v2678_v60  ;;  %v2907_v60 = vld [vmem:[%s5859_s15 + $0x70] sm:$0xff] }
 0x751   : > { %2770 = vmatpush1.msra.mxu0 %v2677_v62  ;;  %v2906_v62 = vld [vmem:[%s5859_s15 + $0x68] sm:$0xff] }
 0x752   : > { %2771 = vmatprep.subr.mxu0 %v2674_v0  ;;  %v2905_v0 = vld [vmem:[%s5859_s15 + $0x60] sm:$0xff] }
 0x753   : > { %2772 = vmatpush1.msra.mxu0 %v2673_v3  ;;  %v2904_v3 = vld [vmem:[%s5859_s15 + $0x58] sm:$0xff] }
 0x754   : > { %2773 = vmatprep.subr.mxu0 %v2670_v5  ;;  %v2903_v5 = vld [vmem:[%s5859_s15 + $0x50] sm:$0xff] }
 0x755   : > { %2774 = vmatpush1.msra.mxu0 %v2669_v7  ;;  %v2902_v7 = vld [vmem:[%s5859_s15 + $0x48] sm:$0xff] }
 0x756   : > { %2775 = vmatprep.subr.mxu0 %v2666_v9  ;;  %v2901_v9 = vld [vmem:[%s5859_s15 + $0x40] sm:$0xff] }
 0x7fa   : > { %v2569_v23 = vpop.f32.mrf.mxu0 }
 0x7fb   : > { %v5369_v24 = vsub.f32 %v2500_v12, %v2569_v23  ;;  %v2665_v12 = vld [vmem:[%s5858_s26 + $0x20] sm:$0xff] }
 0x7fc   : > { %v4306_v25 = vpop.f32.mrf.mxu0  ;;  %2776 = vmatpush1.msra.mxu0 %v2665_v12  ;;  %v2900_v12 = vld [vmem:[%s5859_s15 + $0x38] sm:$0xff] }
 0x7fd   : > { %v2574_v26 = vmul.f32 %v5369_v24, %v5369_v24  ;;  %2777 = vmatprep.subr.mxu0 %v2662_v14  ;;  %v3694_v25 = vld [vmem:[%s5860_s3] ss:$0 sm:$0xff]  ;;  %v2899_v14 = vld [vmem:[%s5859_s15 + $0x30] sm:$0xff]  ;;  %s5863_s3 = sld [smem:[#allocation20_spill]] }
 0x7fe   : > { %2778 = vmatpush1.msra.mxu0 %v2661_v16  ;;  %v2898_v16 = vld [vmem:[%s5859_s15 + $0x28] sm:$0xff] }
 0x7ff   : > { %4340 = vmatmul.mubr.f32.vlgmr.msra.gmra.mxu1 %v2574_v26  ;;  %3033 = vmatprep.subr.mxu0 %v2924_v19  ;;  %v2897_v19 = vld [vmem:[%s5859_s15 + $0x20] sm:$0xff] }
 0x800   : > { %2819 = vmatpush1.msra.mxu1 %v2723_v27  ;;  %2882 = vmatprep.mubr.f32.mxu1 %v4638_v1  ;;  %v3695_v27 = vld [vmem:[%s5861_s6] ss:$0 sm:$0xff]  ;;  %s5862_s6 = sld [smem:[#allocation23_spill]] }
 0x801   : > { %2820 = vmatprep.subr.mxu1 %v2720_v28 }
 0x802   : > { %2821 = vmatpush1.msra.mxu1 %v2719_v29 }
 0x803   : > { %2822 = vmatprep.subr.mxu1 %v2716_v30  ;;  %v2923_v30 = vld [vmem:[%s5859_s15 + $0xf0] sm:$0xff] }
 0x804   : > { %2823 = vmatpush1.msra.mxu1 %v2715_v10  ;;  %v2987_v10 = vld [vmem:[%s5859_s15 + $0x2f0] sm:$0xff] }
 0x805   : > { %2824 = vmatprep.subr.mxu1 %v2712_v31  ;;  %v2922_v31 = vld [vmem:[%s5859_s15 + $0xe8] sm:$0xff] }
 0x806   : > { %2825 = vmatpush1.msra.mxu1 %v2711_v32  ;;  %v2986_v32 = vld [vmem:[%s5859_s15 + $0x2e8] sm:$0xff] }
 0x807   : > { %2826 = vmatprep.subr.mxu1 %v2708_v33  ;;  %v2921_v33 = vld [vmem:[%s5859_s15 + $0xe0] sm:$0xff] }
 0x808   : > { %2827 = vmatpush1.msra.mxu1 %v2707_v35  ;;  %v2984_v35 = vld [vmem:[%s5859_s15 + $0x2d8] sm:$0xff] }
 0x809   : > { %2828 = vmatprep.subr.mxu1 %v2704_v37  ;;  %v2983_v37 = vld [vmem:[%s5859_s15 + $0x2d0] sm:$0xff] }
 0x80a   : > { %2829 = vmatpush1.msra.mxu1 %v2703_v38  ;;  %v2982_v38 = vld [vmem:[%s5859_s15 + $0x2c8] sm:$0xff] }
 0x80b   : > { %2830 = vmatprep.subr.mxu1 %v2700_v41  ;;  %v2981_v41 = vld [vmem:[%s5859_s15 + $0x2c0] sm:$0xff] }
 0x80c   : > { %2831 = vmatpush1.msra.mxu1 %v2699_v43  ;;  %v2980_v43 = vld [vmem:[%s5859_s15 + $0x2b8] sm:$0xff] }
 0x80d   : > { %2832 = vmatprep.subr.mxu1 %v2696_v45  ;;  %v2979_v45 = vld [vmem:[%s5859_s15 + $0x2b0] sm:$0xff] }
 0x80e   : > { %2833 = vmatpush1.msra.mxu1 %v2695_v47  ;;  %v2978_v47 = vld [vmem:[%s5859_s15 + $0x2a8] sm:$0xff] }
 0x80f   : > { %2834 = vmatprep.subr.mxu1 %v2692_v49  ;;  %v2977_v49 = vld [vmem:[%s5859_s15 + $0x2a0] sm:$0xff] }
 0x810   : > { %2835 = vmatpush1.msra.mxu1 %v2691_v51  ;;  %v2976_v51 = vld [vmem:[%s5859_s15 + $0x298] sm:$0xff] }
 0x811   : > { %2836 = vmatprep.subr.mxu1 %v2688_v53  ;;  %v2975_v53 = vld [vmem:[%s5859_s15 + $0x290] sm:$0xff] }
 0x812   : > { %2837 = vmatpush1.msra.mxu1 %v2687_v55  ;;  %v2974_v55 = vld [vmem:[%s5859_s15 + $0x288] sm:$0xff] }
 0x813   : > { %2838 = vmatprep.subr.mxu1 %v2684_v57  ;;  %v2973_v57 = vld [vmem:[%s5859_s15 + $0x280] sm:$0xff] }
 0x814   : > { %2839 = vmatpush1.msra.mxu1 %v2683_v59  ;;  %v2972_v59 = vld [vmem:[%s5859_s15 + $0x278] sm:$0xff] }
 0x815   : > { %2840 = vmatprep.subr.mxu1 %v2680_v61  ;;  %v2971_v61 = vld [vmem:[%s5859_s15 + $0x270] sm:$0xff] }
 0x816   : > { %2841 = vmatpush1.msra.mxu1 %v2679_v63  ;;  %v2970_v63 = vld [vmem:[%s5859_s15 + $0x268] sm:$0xff] }
 0x817   : > { %2842 = vmatprep.subr.mxu1 %v2676_v2  ;;  %v2969_v2 = vld [vmem:[%s5859_s15 + $0x260] sm:$0xff] }
 0x818   : > { %2843 = vmatpush1.msra.mxu1 %v2675_v4  ;;  %v2968_v4 = vld [vmem:[%s5859_s15 + $0x258] sm:$0xff] }
 0x819   : > { %2844 = vmatprep.subr.mxu1 %v2672_v6  ;;  %v2967_v6 = vld [vmem:[%s5859_s15 + $0x250] sm:$0xff] }
 0x81a   : > { %2845 = vmatpush1.msra.mxu1 %v2671_v8  ;;  %v2966_v8 = vld [vmem:[%s5859_s15 + $0x248] sm:$0xff] }
 0x81b   : > { %2846 = vmatprep.subr.mxu1 %v2668_v11  ;;  %v2965_v11 = vld [vmem:[%s5859_s15 + $0x240] sm:$0xff] }
 0x81c   : > { %2847 = vmatpush1.msra.mxu1 %v2667_v13  ;;  %v2964_v13 = vld [vmem:[%s5859_s15 + $0x238] sm:$0xff] }
 0x81d   : > { %2848 = vmatprep.subr.mxu1 %v2664_v15  ;;  %v2963_v15 = vld [vmem:[%s5859_s15 + $0x230] sm:$0xff] }
 0x81e   : > { %2849 = vmatpush1.msra.mxu1 %v2663_v17  ;;  %v2962_v17 = vld [vmem:[%s5859_s15 + $0x228] sm:$0xff] }
 0x81f   : > { %3104 = vmatprep.subr.mxu1 %v2988_v40  ;;  %v2961_v40 = vld [vmem:[%s5859_s15 + $0x220] sm:$0xff] }
 0x8bf   : > { %v2641_v20 = vpop.f32.mrf.mxu1 }
 0x8c0   : > { %v2642_v21 = vadd.f32 1e-05, %v2641_v20  ;;  %v2896_v20 = vld [vmem:[%s5859_s15 + $0x18] sm:$0xff] }
 0x8c1   : > { %v4341_v22 = vpop.f32.mrf.mxu1 }
 0x8c2   : > { %4524 = vrsqrt.f32 %v2642_v21  ;;  %v2960_v21 = vld [vmem:[%s5859_s15 + $0x218] sm:$0xff]  ;;  %v2895_v22 = vld [vmem:[%s5859_s15 + $0x10] sm:$0xff] }
 0x8cf   : > { %v4525_v23 = vpop.eup %4524 }
 0x8d0   : > { %v2646_v26 = vmul.f32 %v4525_v23, %v5369_v24  ;;  %v2920_v24 = vld [vmem:[%s5859_s15 + $0xd8] sm:$0xff]  ;;  %v2959_v23 = vld [vmem:[%s5859_s15 + $0x210] sm:$0xff] }
 0x8d2   : > { %v2653_v28 = vmul.f32 %v3694_v25, %v2646_v26  ;;  %v2894_v25 = vld [vmem:[%s5859_s15 + $0x8] sm:$0xff] }
 0x8d3   : > { %v2958_v26 = vld [vmem:[%s5859_s15 + $0x208] sm:$0xff] }
 0x8d4   : > { %v5433_v29 = vadd.f32 %v3695_v27, %v2653_v28  ;;  %v2893_v27 = vld [vmem:[%s5859_s15] sm:$0xff] }
 0x8d5   : > { %v2957_v28 = vld [vmem:[%s5859_s15 + $0x200] sm:$0xff] }
 0x8d6   : > { %2812 = vmatmul.mubr.f32.vlgmr.msra.gmra.mxu0 %v5433_v29  ;;  %2883 = vmatmul.mubr.f32.vlgmr.msra.gmra.mxu1 %v5433_v29 }
 0x8d7   : > { %3034 = vmatpush1.msra.mxu0 %v2923_v30  ;;  %3105 = vmatpush1.msra.mxu1 %v2987_v10  ;;  %v2956_v30 = vld [vmem:[%s5859_s15 + $0x1f8] sm:$0xff] }
 0x8d8   : > { %3035 = vmatprep.subr.mxu0 %v2922_v31  ;;  %3106 = vmatprep.subr.mxu1 %v2986_v32  ;;  %v3020_v10 = vld [vmem:[%s5859_s15 + $0x3f8] sm:$0xff]  ;;  %v2955_v31 = vld [vmem:[%s5859_s15 + $0x1f0] sm:$0xff] }
 0x8d9   : > { %3036 = vmatpush1.msra.mxu0 %v2921_v33  ;;  %3107 = vmatpush1.msra.mxu1 %v2985_v34  ;;  %v3019_v32 = vld [vmem:[%s5859_s15 + $0x3f0] sm:$0xff]  ;;  %v2954_v33 = vld [vmem:[%s5859_s15 + $0x1e8] sm:$0xff] }
 0x8da   : > { %3037 = vmatprep.subr.mxu0 %v2920_v24  ;;  %3108 = vmatprep.subr.mxu1 %v2984_v35  ;;  %v3018_v34 = vld [vmem:[%s5859_s15 + $0x3e8] sm:$0xff]  ;;  %v2953_v24 = vld [vmem:[%s5859_s15 + $0x1e0] sm:$0xff] }
 0x8db   : > { %3038 = vmatpush1.msra.mxu0 %v2919_v36  ;;  %3109 = vmatpush1.msra.mxu1 %v2983_v37  ;;  %v3017_v35 = vld [vmem:[%s5859_s15 + $0x3e0] sm:$0xff]  ;;  %v2952_v36 = vld [vmem:[%s5859_s15 + $0x1d8] sm:$0xff] }
 0x8dc   : > { %3039 = vmatprep.subr.mxu0 %v2918_v18  ;;  %3110 = vmatprep.subr.mxu1 %v2982_v38  ;;  %v3016_v37 = vld [vmem:[%s5859_s15 + $0x3d8] sm:$0xff]  ;;  %v2951_v18 = vld [vmem:[%s5859_s15 + $0x1d0] sm:$0xff] }
 0x8dd   : > { %3040 = vmatpush1.msra.mxu0 %v2917_v39  ;;  %3111 = vmatpush1.msra.mxu1 %v2981_v41  ;;  %v3015_v38 = vld [vmem:[%s5859_s15 + $0x3d0] sm:$0xff]  ;;  %v2950_v39 = vld [vmem:[%s5859_s15 + $0x1c8] sm:$0xff] }
 0x8de   : > { %3041 = vmatprep.subr.mxu0 %v2916_v42  ;;  %3112 = vmatprep.subr.mxu1 %v2980_v43  ;;  %v3014_v41 = vld [vmem:[%s5859_s15 + $0x3c8] sm:$0xff]  ;;  %v2949_v42 = vld [vmem:[%s5859_s15 + $0x1c0] sm:$0xff] }
 0x8df   : > { %3042 = vmatpush1.msra.mxu0 %v2915_v44  ;;  %3113 = vmatpush1.msra.mxu1 %v2979_v45  ;;  %v3013_v43 = vld [vmem:[%s5859_s15 + $0x3c0] sm:$0xff]  ;;  %v2948_v44 = vld [vmem:[%s5859_s15 + $0x1b8] sm:$0xff] }
 0x8e0   : > { %3043 = vmatprep.subr.mxu0 %v2914_v46  ;;  %3114 = vmatprep.subr.mxu1 %v2978_v47  ;;  %v3012_v45 = vld [vmem:[%s5859_s15 + $0x3b8] sm:$0xff]  ;;  %v2947_v46 = vld [vmem:[%s5859_s15 + $0x1b0] sm:$0xff] }
 0x8e1   : > { %3044 = vmatpush1.msra.mxu0 %v2913_v48  ;;  %3115 = vmatpush1.msra.mxu1 %v2977_v49  ;;  %v3011_v47 = vld [vmem:[%s5859_s15 + $0x3b0] sm:$0xff]  ;;  %v2946_v48 = vld [vmem:[%s5859_s15 + $0x1a8] sm:$0xff] }
 0x8e2   : > { %3045 = vmatprep.subr.mxu0 %v2912_v50  ;;  %3116 = vmatprep.subr.mxu1 %v2976_v51  ;;  %v3010_v49 = vld [vmem:[%s5859_s15 + $0x3a8] sm:$0xff]  ;;  %v2945_v50 = vld [vmem:[%s5859_s15 + $0x1a0] sm:$0xff] }
 0x8e3   : > { %3046 = vmatpush1.msra.mxu0 %v2911_v52  ;;  %3117 = vmatpush1.msra.mxu1 %v2975_v53  ;;  %v3009_v51 = vld [vmem:[%s5859_s15 + $0x3a0] sm:$0xff]  ;;  %v2944_v52 = vld [vmem:[%s5859_s15 + $0x198] sm:$0xff] }
 0x8e4   : > { %3047 = vmatprep.subr.mxu0 %v2910_v54  ;;  %3118 = vmatprep.subr.mxu1 %v2974_v55  ;;  %v3008_v53 = vld [vmem:[%s5859_s15 + $0x398] sm:$0xff]  ;;  %v2943_v54 = vld [vmem:[%s5859_s15 + $0x190] sm:$0xff] }
 0x8e5   : > { %3048 = vmatpush1.msra.mxu0 %v2909_v56  ;;  %3119 = vmatpush1.msra.mxu1 %v2973_v57  ;;  %v3007_v55 = vld [vmem:[%s5859_s15 + $0x390] sm:$0xff]  ;;  %v2942_v56 = vld [vmem:[%s5859_s15 + $0x188] sm:$0xff] }
 0x8e6   : > { %3049 = vmatprep.subr.mxu0 %v2908_v58  ;;  %3120 = vmatprep.subr.mxu1 %v2972_v59  ;;  %v3006_v57 = vld [vmem:[%s5859_s15 + $0x388] sm:$0xff]  ;;  %v2941_v58 = vld [vmem:[%s5859_s15 + $0x180] sm:$0xff] }
 0x8e7   : > { %3050 = vmatpush1.msra.mxu0 %v2907_v60  ;;  %3121 = vmatpush1.msra.mxu1 %v2971_v61  ;;  %v3005_v59 = vld [vmem:[%s5859_s15 + $0x380] sm:$0xff]  ;;  %v2940_v60 = vld [vmem:[%s5859_s15 + $0x178] sm:$0xff] }
 0x8e8   : > { %3051 = vmatprep.subr.mxu0 %v2906_v62  ;;  %3122 = vmatprep.subr.mxu1 %v2970_v63  ;;  %v3004_v61 = vld [vmem:[%s5859_s15 + $0x378] sm:$0xff]  ;;  %v2939_v62 = vld [vmem:[%s5859_s15 + $0x170] sm:$0xff] }
 0x8e9   : > { %3052 = vmatpush1.msra.mxu0 %v2905_v0  ;;  %3123 = vmatpush1.msra.mxu1 %v2969_v2  ;;  %v3003_v63 = vld [vmem:[%s5859_s15 + $0x370] sm:$0xff]  ;;  %v2938_v0 = vld [vmem:[%s5859_s15 + $0x168] sm:$0xff] }
 0x8ea   : > { %3053 = vmatprep.subr.mxu0 %v2904_v3  ;;  %3124 = vmatprep.subr.mxu1 %v2968_v4  ;;  %v3002_v2 = vld [vmem:[%s5859_s15 + $0x368] sm:$0xff]  ;;  %v2937_v3 = vld [vmem:[%s5859_s15 + $0x160] sm:$0xff] }
 0x8eb   : > { %3054 = vmatpush1.msra.mxu0 %v2903_v5  ;;  %3125 = vmatpush1.msra.mxu1 %v2967_v6  ;;  %v3001_v4 = vld [vmem:[%s5859_s15 + $0x360] sm:$0xff]  ;;  %v2936_v5 = vld [vmem:[%s5859_s15 + $0x158] sm:$0xff] }
 0x8ec   : > { %3055 = vmatprep.subr.mxu0 %v2902_v7  ;;  %3126 = vmatprep.subr.mxu1 %v2966_v8  ;;  %v3000_v6 = vld [vmem:[%s5859_s15 + $0x358] sm:$0xff]  ;;  %v2935_v7 = vld [vmem:[%s5859_s15 + $0x150] sm:$0xff] }
 0x8ed   : > { %3056 = vmatpush1.msra.mxu0 %v2901_v9  ;;  %3127 = vmatpush1.msra.mxu1 %v2965_v11  ;;  %v2999_v8 = vld [vmem:[%s5859_s15 + $0x350] sm:$0xff]  ;;  %v2934_v9 = vld [vmem:[%s5859_s15 + $0x148] sm:$0xff] }
 0x8ee   : > { %3057 = vmatprep.subr.mxu0 %v2900_v12  ;;  %3128 = vmatprep.subr.mxu1 %v2964_v13  ;;  %v2998_v11 = vld [vmem:[%s5859_s15 + $0x348] sm:$0xff]  ;;  %v2933_v12 = vld [vmem:[%s5859_s15 + $0x140] sm:$0xff] }
 0x8ef   : > { %3058 = vmatpush1.msra.mxu0 %v2899_v14  ;;  %3129 = vmatpush1.msra.mxu1 %v2963_v15  ;;  %v2997_v13 = vld [vmem:[%s5859_s15 + $0x340] sm:$0xff]  ;;  %v2932_v14 = vld [vmem:[%s5859_s15 + $0x138] sm:$0xff] }
 0x8f0   : > { %3059 = vmatprep.subr.mxu0 %v2898_v16  ;;  %3130 = vmatprep.subr.mxu1 %v2962_v17  ;;  %v2996_v15 = vld [vmem:[%s5859_s15 + $0x338] sm:$0xff]  ;;  %v2931_v16 = vld [vmem:[%s5859_s15 + $0x130] sm:$0xff] }
 0x8f1   : > { %3060 = vmatpush1.msra.mxu0 %v2897_v19  ;;  %3131 = vmatpush1.msra.mxu1 %v2961_v40  ;;  %v2995_v17 = vld [vmem:[%s5859_s15 + $0x330] sm:$0xff]  ;;  %v2930_v19 = vld [vmem:[%s5859_s15 + $0x128] sm:$0xff] }
 0x8f2   : > { %3061 = vmatprep.subr.mxu0 %v2896_v20  ;;  %3132 = vmatprep.subr.mxu1 %v2960_v21  ;;  %v2994_v40 = vld [vmem:[%s5859_s15 + $0x328] sm:$0xff]  ;;  %v2929_v20 = vld [vmem:[%s5859_s15 + $0x120] sm:$0xff] }
 0x8f3   : > { %3062 = vmatpush1.msra.mxu0 %v2895_v22  ;;  %3133 = vmatpush1.msra.mxu1 %v2959_v23  ;;  %v2993_v21 = vld [vmem:[%s5859_s15 + $0x320] sm:$0xff]  ;;  %v2928_v22 = vld [vmem:[%s5859_s15 + $0x118] sm:$0xff] }
 0x8f4   : > { %3063 = vmatprep.subr.mxu0 %v2894_v25  ;;  %3134 = vmatprep.subr.mxu1 %v2958_v26  ;;  %v2992_v23 = vld [vmem:[%s5859_s15 + $0x318] sm:$0xff]  ;;  %v2927_v25 = vld [vmem:[%s5859_s15 + $0x110] sm:$0xff] }
 0x8f5   : > { %3064 = vmatpush1.msra.mxu0 %v2893_v27  ;;  %3135 = vmatpush1.msra.mxu1 %v2957_v28  ;;  %v2991_v26 = vld [vmem:[%s5859_s15 + $0x310] sm:$0xff]  ;;  %v2926_v27 = vld [vmem:[%s5859_s15 + $0x108] sm:$0xff] }
 0x8f6   : > { %3065 = vmatprep.subr.mxu0 %v2956_v30  ;;  %3136 = vmatprep.subr.mxu1 %v3020_v10  ;;  %v2990_v28 = vld [vmem:[%s5859_s15 + $0x308] sm:$0xff]  ;;  %v2925_v30 = vld [vmem:[%s5859_s15 + $0x100] sm:$0xff] }
 0x8f7   : > { %3066 = vmatpush2.msra.mxu0 %v2955_v31  ;;  %3137 = vmatpush2.msra.mxu1 %v3019_v32  ;;  %v2989_v10 = vld [vmem:[%s5859_s15 + $0x300] sm:$0xff]  ;;  %v3208_v31 = vld [vmem:[%s5862_s6 + $0xf8] sm:$0xff]  ;;  %v2727_v32 = vlaneseq  ;;  %s4548_s15 = sshll.u32 %s4640_s14, 4  ;;  %s4549_s15 = int_to_ptr.vmem [resolvable:$false] %s4548_s15 }
 0x8f8   : > { %3067 = vmatprep.subr.mxu0 %v2954_v33  ;;  %3138 = vmatprep.subr.mxu1 %v3018_v34  ;;  %s4550_s0 = scalar_lea.vmem %s4549_s15, 256 }
 0x8f9   : > { %3068 = vmatpush2.msra.mxu0 %v2953_v24  ;;  %3139 = vmatpush2.msra.mxu1 %v3017_v35  ;;  %v5565_v33 = vshrl.u32 %v2727_v32, 7  ;;  %v2725_v35 = vld [vmem:[%s5863_s3] sm:$0xf]  ;;  %v3196_v32 = vld [vmem:[%s5862_s6 + $0x98] sm:$0xff]  ;;  %s5864_s3 = sld [smem:[#allocation22_spill]] }
 0x8fa   : > { %3069 = vmatprep.subr.mxu0 %v2952_v36  ;;  %3140 = vmatprep.subr.mxu1 %v3016_v37 }
 0x8fb   : > { %3070 = vmatpush2.msra.mxu0 %v2951_v18  ;;  %3141 = vmatpush2.msra.mxu1 %v3015_v38  ;;  %v2729_v34 = vsub.s32 0, %v5565_v33  ;;  %v2737_v24 = vsub.s32 2, %v5565_v33  ;;  %v2733_v36 = vsub.s32 1, %v5565_v33  ;;  %v2741_v37 = vsub.s32 3, %v5565_v33 }
 0x8fc   : > { %3071 = vmatprep.subr.mxu0 %v2950_v39  ;;  %3142 = vmatprep.subr.mxu1 %v3014_v41 }
 0x8fd   : > { %3072 = vmatpush2.msra.mxu0 %v2949_v42  ;;  %3143 = vmatpush2.msra.mxu1 %v3013_v43  ;;  %v2730_v18 = vrot.slane %v2725_v35, %v2729_v34  ;;  %v2738_v38 = vrot.slane %v2725_v35, %v2737_v24  ;;  %v2734_v39 = vrot.slane %v2725_v35, %v2733_v36  ;;  %v3180_v24 = vld [vmem:[%s5862_s6 + $0x18] sm:$0xff] }
 0x8fe   : > { %3073 = vmatprep.subr.mxu0 %v2948_v44  ;;  %3144 = vmatprep.subr.mxu1 %v3012_v45  ;;  %v2742_v41 = vrot.slane %v2725_v35, %v2741_v37  ;;  %v3195_v35 = vld [vmem:[%s5862_s6 + $0x90] sm:$0xff] }
 0x8ff   : > { %3074 = vmatpush2.msra.mxu0 %v2947_v46  ;;  %3145 = vmatpush2.msra.mxu1 %v3011_v47  ;;  %v3179_v37 = vld [vmem:[%s5862_s6 + $0x10] sm:$0xff] }
 0x900   : > { %3075 = vmatprep.subr.mxu0 %v2946_v48  ;;  %3146 = vmatprep.subr.mxu1 %v3010_v49 }
 0x901   : > { %3076 = vmatpush2.msra.mxu0 %v2945_v50  ;;  %3147 = vmatpush2.msra.mxu1 %v3009_v51 }
 0x902   : > { %3077 = vmatprep.subr.mxu0 %v2944_v52  ;;  %3148 = vmatprep.subr.mxu1 %v3008_v53 }
 0x903   : > { %3078 = vmatpush2.msra.mxu0 %v2943_v54  ;;  %3149 = vmatpush2.msra.mxu1 %v3007_v55  ;;  %v3192_v54 = vld [vmem:[%s5862_s6 + $0x78] sm:$0xff]  ;;  %v3207_v55 = vld [vmem:[%s5862_s6 + $0xf0] sm:$0xff] }
 0x904   : > { %3079 = vmatprep.subr.mxu0 %v2942_v56  ;;  %3150 = vmatprep.subr.mxu1 %v3006_v57  ;;  %v3191_v56 = vld [vmem:[%s5862_s6 + $0x70] sm:$0xff]  ;;  %v3206_v57 = vld [vmem:[%s5862_s6 + $0xe8] sm:$0xff] }
 0x905   : > { %3080 = vmatpush2.msra.mxu0 %v2941_v58  ;;  %3151 = vmatpush2.msra.mxu1 %v3005_v59  ;;  %v5581_v58 = vld [vmem:[%s5856_s5 + $0x78] sm:$0xff]  ;;  %v3190_v59 = vld [vmem:[%s5862_s6 + $0x68] sm:$0xff] }
 0x906   : > { %3081 = vmatprep.subr.mxu0 %v2940_v60  ;;  %3152 = vmatprep.subr.mxu1 %v3004_v61  ;;  %v3205_v60 = vld [vmem:[%s5862_s6 + $0xe0] sm:$0xff]  ;;  %v5588_v61 = vld [vmem:[%s5856_s5 + $0x70] sm:$0xff] }
 0x907   : > { %3082 = vmatpush2.msra.mxu0 %v2939_v62  ;;  %3153 = vmatpush2.msra.mxu1 %v3003_v63  ;;  %v3189_v62 = vld [vmem:[%s5862_s6 + $0x60] sm:$0xff]  ;;  %v3204_v63 = vld [vmem:[%s5862_s6 + $0xd8] sm:$0xff] }
 0x908   : > { %3083 = vmatprep.subr.mxu0 %v2938_v0  ;;  %3154 = vmatprep.subr.mxu1 %v3002_v2  ;;  %v5595_v0 = vld [vmem:[%s5856_s5 + $0x68] sm:$0xff]  ;;  %v3188_v2 = vld [vmem:[%s5862_s6 + $0x58] sm:$0xff] }
 0x909   : > { %3084 = vmatpush2.msra.mxu0 %v2937_v3  ;;  %3155 = vmatpush2.msra.mxu1 %v3001_v4  ;;  %v3203_v3 = vld [vmem:[%s5862_s6 + $0xd0] sm:$0xff]  ;;  %v5602_v4 = vld [vmem:[%s5856_s5 + $0x60] sm:$0xff] }
 0x90a   : > { %3085 = vmatprep.subr.mxu0 %v2936_v5  ;;  %3156 = vmatprep.subr.mxu1 %v3000_v6  ;;  %v3187_v5 = vld [vmem:[%s5862_s6 + $0x50] sm:$0xff]  ;;  %v3202_v6 = vld [vmem:[%s5862_s6 + $0xc8] sm:$0xff] }
 0x90b   : > { %3086 = vmatpush2.msra.mxu0 %v2935_v7  ;;  %3157 = vmatpush2.msra.mxu1 %v2999_v8  ;;  %v5609_v7 = vld [vmem:[%s5856_s5 + $0x58] sm:$0xff]  ;;  %v3186_v8 = vld [vmem:[%s5862_s6 + $0x48] sm:$0xff] }
 0x90c   : > { %3087 = vmatprep.subr.mxu0 %v2934_v9  ;;  %3158 = vmatprep.subr.mxu1 %v2998_v11  ;;  %v3201_v9 = vld [vmem:[%s5862_s6 + $0xc0] sm:$0xff]  ;;  %v5616_v11 = vld [vmem:[%s5856_s5 + $0x50] sm:$0xff] }
 0x90d   : > { %3088 = vmatpush2.msra.mxu0 %v2933_v12  ;;  %3159 = vmatpush2.msra.mxu1 %v2997_v13  ;;  %v3185_v12 = vld [vmem:[%s5862_s6 + $0x40] sm:$0xff]  ;;  %v3200_v13 = vld [vmem:[%s5862_s6 + $0xb8] sm:$0xff] }
 0x90e   : > { %3089 = vmatprep.subr.mxu0 %v2932_v14  ;;  %3160 = vmatprep.subr.mxu1 %v2996_v15  ;;  %v5623_v14 = vld [vmem:[%s5856_s5 + $0x48] sm:$0xff]  ;;  %v3184_v15 = vld [vmem:[%s5862_s6 + $0x38] sm:$0xff] }
 0x90f   : > { %3090 = vmatpush2.msra.mxu0 %v2931_v16  ;;  %3161 = vmatpush2.msra.mxu1 %v2995_v17  ;;  %v3199_v16 = vld [vmem:[%s5862_s6 + $0xb0] sm:$0xff]  ;;  %v5630_v17 = vld [vmem:[%s5856_s5 + $0x40] sm:$0xff] }
 0x910   : > { %3091 = vmatprep.subr.mxu0 %v2930_v19  ;;  %3162 = vmatprep.subr.mxu1 %v2994_v40  ;;  %v3183_v19 = vld [vmem:[%s5862_s6 + $0x30] sm:$0xff]  ;;  %v3198_v40 = vld [vmem:[%s5862_s6 + $0xa8] sm:$0xff] }
 0x911   : > { %3092 = vmatpush2.msra.mxu0 %v2929_v20  ;;  %3163 = vmatpush2.msra.mxu1 %v2993_v21  ;;  %v5637_v20 = vld [vmem:[%s5856_s5 + $0x38] sm:$0xff]  ;;  %v3182_v21 = vld [vmem:[%s5862_s6 + $0x28] sm:$0xff] }
 0x912   : > { %3093 = vmatprep.subr.mxu0 %v2928_v22  ;;  %3164 = vmatprep.subr.mxu1 %v2992_v23  ;;  %v5643_v22 = vld [vmem:[%s5856_s5 + $0x30] sm:$0xff]  ;;  %v5648_v23 = vld [vmem:[%s5856_s5 + $0x28] sm:$0xff] }
 0x913   : > { %3094 = vmatpush2.msra.mxu0 %v2927_v25  ;;  %3165 = vmatpush2.msra.mxu1 %v2991_v26  ;;  %v5655_v25 = vld [vmem:[%s5856_s5 + $0x20] sm:$0xff]  ;;  %v5660_v26 = vld [vmem:[%s5856_s5 + $0x18] sm:$0xff] }
 0x914   : > { %3095 = vmatprep.subr.mxu0 %v2926_v27  ;;  %3166 = vmatprep.subr.mxu1 %v2990_v28  ;;  %v5665_v27 = vld [vmem:[%s5856_s5 + $0x10] sm:$0xff]  ;;  %v5670_v28 = vld [vmem:[%s5856_s5 + $0x8] sm:$0xff] }
 0x915   : > { %3096 = vmatpush2.msra.mxu0 %v2925_v30  ;;  %3167 = vmatpush2.msra.mxu1 %v2989_v10  ;;  %v5675_v30 = vld [vmem:[%s5856_s5] sm:$0xff]  ;;  %s5867_s5 = sld [smem:[#allocation26_spill]] }
 0x916   : > { %3978 = vmatprep.subr.mxu0 %v3208_v31  ;;  %4342 = vmatprep.subr.mxu1 %v4638_v1  ;;  %v3197_v10 = vld [vmem:[%s5862_s6 + $0xa0] sm:$0xff] }
 0x917   : > { %v3181_v31 = vld [vmem:[%s5862_s6 + $0x20] sm:$0xff] }
 0x996   : > { %v2813_v42 = vpop.f32.mrf.mxu0  ;;  %v2884_v43 = vpop.f32.mrf.mxu1 }
 0x997   : > { %v2814_v44 = vadd.f32 %v2813_v42, %v2730_v18  ;;  %v2885_v45 = vadd.f32 %v2884_v43, %v2738_v38  ;;  %v3194_v18 = vld [vmem:[%s5862_s6 + $0x88] sm:$0xff]  ;;  %v3021_v42 = vld [vmem:[%s5864_s3] sm:$0x3]  ;;  %s5865_s3 = sld [smem:[#allocation24_spill]] }
 0x998   : > { %v2815_v46 = vpop.f32.mrf.mxu0  ;;  %v2886_v47 = vpop.f32.mrf.mxu1  ;;  %v3178_v38 = vld [vmem:[%s5862_s6 + $0x8] sm:$0xff]  ;;  %v3026_v43 = vrot.slane %v3021_v42, %v2729_v34 }
 0x999   : > { %v2816_v48 = vadd.f32 %v2815_v46, %v2734_v39  ;;  %v2887_v49 = vadd.f32 %v2886_v47, %v2742_v41  ;;  %v2889_v52 = vmax.f32 %v2814_v44, 0.0  ;;  %v2891_v53 = vmax.f32 %v2885_v45, 0.0  ;;  %v3193_v39 = vld [vmem:[%s5862_s6 + $0x80] sm:$0xff] }
 0x99a   : > { %v3177_v41 = vld [vmem:[%s5862_s6] sm:$0xff]  ;;  %v3030_v44 = vrot.slane %v3021_v42, %v2733_v36 }
 0x99b   : > { %v2890_v50 = vmax.f32 %v2816_v48, 0.0  ;;  %v2892_v51 = vmax.f32 %v2887_v49, 0.0 }
 0x99d   : > { %3097 = vmatprep.mubr.f32.mxu0 %v2890_v50  ;;  %3168 = vmatprep.mubr.f32.mxu1 %v2892_v51  ;;  %v3696_v34 = vld [vmem:[%s5865_s3] ss:$0 sm:$0xff]  ;;  %s5866_s3 = sld [smem:[#allocation25_spill]] }
 0x99e   : > { %3098 = vmatmul.mubr.f32.vlgmr.msra.gmra.mxu0 %v2889_v52  ;;  %3169 = vmatmul.mubr.f32.vlgmr.msra.gmra.mxu1 %v2891_v53 }
 0x99f   : > { %3979 = vmatpush3.msra.mxu0 %v3192_v54  ;;  %4343 = vmatpush3.msra.mxu1 %v5581_v58 }
 0x9a0   : > { %3980 = vmatprep.subr.mxu0 %v3207_v55  ;;  %4344 = vmatprep.subr.mxu1 %v4638_v1 }
 0x9a1   : > { %3981 = vmatpush3.msra.mxu0 %v3191_v56  ;;  %4345 = vmatpush3.msra.mxu1 %v5588_v61 }
 0x9a2   : > { %3982 = vmatprep.subr.mxu0 %v3206_v57  ;;  %4346 = vmatprep.subr.mxu1 %v4638_v1 }
 0x9a3   : > { %3983 = vmatpush3.msra.mxu0 %v3190_v59  ;;  %4347 = vmatpush3.msra.mxu1 %v5595_v0  ;;  %v3461_v59 = vld [vmem:[%s5845_s4 + $0x70] sm:$0xff] }
 0x9a4   : > { %3984 = vmatprep.subr.mxu0 %v3205_v60  ;;  %4348 = vmatprep.subr.mxu1 %v4638_v1  ;;  %v3460_v60 = vld [vmem:[%s5845_s4 + $0x68] sm:$0xff] }
 0x9a5   : > { %3985 = vmatpush3.msra.mxu0 %v3189_v62  ;;  %4349 = vmatpush3.msra.mxu1 %v5602_v4 }
 0x9a6   : > { %3986 = vmatprep.subr.mxu0 %v3204_v63  ;;  %4350 = vmatprep.subr.mxu1 %v4638_v1 }
 0x9a7   : > { %3987 = vmatpush3.msra.mxu0 %v3188_v2  ;;  %4351 = vmatpush3.msra.mxu1 %v5609_v7  ;;  %v3458_v2 = vld [vmem:[%s5845_s4 + $0x58] sm:$0xff] }
 0x9a8   : > { %3988 = vmatprep.subr.mxu0 %v3203_v3  ;;  %4352 = vmatprep.subr.mxu1 %v4638_v1  ;;  %v3457_v3 = vld [vmem:[%s5845_s4 + $0x50] sm:$0xff] }
 0x9a9   : > { %3989 = vmatpush3.msra.mxu0 %v3187_v5  ;;  %4353 = vmatpush3.msra.mxu1 %v5616_v11  ;;  %v3455_v5 = vld [vmem:[%s5845_s4 + $0x40] sm:$0xff] }
 0x9aa   : > { %3990 = vmatprep.subr.mxu0 %v3202_v6  ;;  %4354 = vmatprep.subr.mxu1 %v4638_v1  ;;  %v3454_v6 = vld [vmem:[%s5845_s4 + $0x38] sm:$0xff] }
 0x9ab   : > { %3991 = vmatpush3.msra.mxu0 %v3186_v8  ;;  %4355 = vmatpush3.msra.mxu1 %v5623_v14  ;;  %v3452_v8 = vld [vmem:[%s5845_s4 + $0x28] sm:$0xff] }
 0x9ac   : > { %3992 = vmatprep.subr.mxu0 %v3201_v9  ;;  %4356 = vmatprep.subr.mxu1 %v4638_v1  ;;  %v3451_v9 = vld [vmem:[%s5845_s4 + $0x20] sm:$0xff] }
 0x9ad   : > { %3993 = vmatpush3.msra.mxu0 %v3185_v12  ;;  %4357 = vmatpush3.msra.mxu1 %v5630_v17  ;;  %v3449_v12 = vld [vmem:[%s5845_s4 + $0x10] sm:$0xff] }
 0x9ae   : > { %3994 = vmatprep.subr.mxu0 %v3200_v13  ;;  %4358 = vmatprep.subr.mxu1 %v4638_v1  ;;  %v3448_v13 = vld [vmem:[%s5845_s4 + $0x8] sm:$0xff] }
 0x9af   : > { %3995 = vmatpush3.msra.mxu0 %v3184_v15  ;;  %4359 = vmatpush3.msra.mxu1 %v5637_v20 }
 0x9b0   : > { %3996 = vmatprep.subr.mxu0 %v3199_v16  ;;  %4360 = vmatprep.subr.mxu1 %v4638_v1 }
 0x9b1   : > { %3997 = vmatpush3.msra.mxu0 %v3183_v19  ;;  %4361 = vmatpush3.msra.mxu1 %v5643_v22 }
 0x9b2   : > { %3998 = vmatprep.subr.mxu0 %v3198_v40  ;;  %4362 = vmatprep.subr.mxu1 %v4638_v1  ;;  %v3697_v40 = vld [vmem:[%s5866_s3] ss:$0 sm:$0xff] }
 0x9b3   : > { %3999 = vmatpush3.msra.mxu0 %v3182_v21  ;;  %4363 = vmatpush3.msra.mxu1 %v5648_v23  ;;  %v3698_v21 = vld [vmem:[%s5867_s5] ss:$0 sm:$0xff] }
 0x9b4   : > { %4364 = vmatprep.subr.mxu1 %v4638_v1  ;;  %4374 = vmatprep.mubr.msk.f32.mxu1 %vm4639_vm0, %v4638_v1 }
 0x9b5   : > { %4365 = vmatpush3.msra.mxu1 %v5655_v25  ;;  %4000 = vmatprep.subr.mxu0 %v3197_v10 }
 0x9b6   : > { %4366 = vmatprep.subr.mxu1 %v4638_v1  ;;  %4001 = vmatpush3.msra.mxu0 %v3181_v31 }
 0x9b7   : > { %4367 = vmatpush3.msra.mxu1 %v5660_v26  ;;  %4002 = vmatprep.subr.mxu0 %v3196_v32 }
 0x9b8   : > { %4368 = vmatprep.subr.mxu1 %v4638_v1  ;;  %4003 = vmatpush3.msra.mxu0 %v3180_v24 }
 0x9b9   : > { %4369 = vmatpush3.msra.mxu1 %v5665_v27  ;;  %4004 = vmatprep.subr.mxu0 %v3195_v35 }
 0x9ba   : > { %4370 = vmatprep.subr.mxu1 %v4638_v1  ;;  %4005 = vmatpush3.msra.mxu0 %v3179_v37 }
 0x9bb   : > { %4371 = vmatpush3.msra.mxu1 %v5670_v28  ;;  %4006 = vmatprep.subr.mxu0 %v3194_v18 }
 0x9bc   : > { %4372 = vmatprep.subr.mxu1 %v4638_v1  ;;  %4007 = vmatpush3.msra.mxu0 %v3178_v38 }
 0x9bd   : > { %4373 = vmatpush3.msra.mxu1 %v5675_v30  ;;  %4008 = vmatprep.subr.mxu0 %v3193_v39 }
 0x9be   : > { %4412 = vmatprep.subr.mxu1 %v4638_v1  ;;  %4009 = vmatpush3.msra.mxu0 %v3177_v41 }
 0x9bf   : > { %4377 = vmatprep.subr.mxu0 %v4638_v1 }
 0xa5e   : > { %v3099_v45 = vpop.f32.mrf.mxu0  ;;  %v3170_v46 = vpop.f32.mrf.mxu1 }
 0xa5f   : > { %v3100_v47 = vadd.f32 %v3099_v45, %v3026_v43 }
 0xa60   : > { %v3101_v48 = vpop.f32.mrf.mxu0  ;;  %v3172_v51 = vpop.f32.mrf.mxu1 }
 0xa61   : > { %v3102_v49 = vadd.f32 %v3101_v48, %v3030_v44  ;;  %v3171_v50 = vadd.f32 %v3170_v46, %v3100_v47 }
 0xa63   : > { %v3173_v52 = vadd.f32 %v3172_v51, %v3102_v49  ;;  %v3175_v54 = vmax.f32 %v3171_v50, 0.0 }
 0xa65   : > { %v3176_v53 = vmax.f32 %v3173_v52, 0.0 }
 0xa67   : > { %3280 = vmatprep.mubr.f32.mxu0 %v3176_v53 }
 0xa68   : > { %3281 = vmatmul.mubr.f32.vlgmr.msra.gmra.mxu0 %v3175_v54 }
 0xa69   : > { %4378 = vmatpush3.msra.mxu0 %v5581_v58  ;;  %4409 = vmatprep.mubr.msk.f32.mxu0 %vm4639_vm0, %v4638_v1  ;;  %v3462_v58 = vld [vmem:[%s5845_s4 + $0x78] sm:$0xff] }
 0xa6a   : > { %4379 = vmatprep.subr.mxu0 %v4638_v1 }
 0xa6b   : > { %4380 = vmatpush3.msra.mxu0 %v5588_v61  ;;  %v3459_v61 = vld [vmem:[%s5845_s4 + $0x60] sm:$0xff] }
 0xa6c   : > { %4381 = vmatprep.subr.mxu0 %v4638_v1 }
 0xa6d   : > { %4382 = vmatpush3.msra.mxu0 %v5595_v0 }
 0xa6e   : > { %4383 = vmatprep.subr.mxu0 %v4638_v1 }
 0xa6f   : > { %4384 = vmatpush3.msra.mxu0 %v5602_v4  ;;  %v3456_v4 = vld [vmem:[%s5845_s4 + $0x48] sm:$0xff] }
 0xa70   : > { %4385 = vmatprep.subr.mxu0 %v4638_v1 }
 0xa71   : > { %4386 = vmatpush3.msra.mxu0 %v5609_v7  ;;  %v3453_v7 = vld [vmem:[%s5845_s4 + $0x30] sm:$0xff] }
 0xa72   : > { %4387 = vmatprep.subr.mxu0 %v4638_v1 }
 0xa73   : > { %4388 = vmatpush3.msra.mxu0 %v5616_v11  ;;  %v3450_v11 = vld [vmem:[%s5845_s4 + $0x18] sm:$0xff] }
 0xa74   : > { %4389 = vmatprep.subr.mxu0 %v4638_v1 }
 0xa75   : > { %4390 = vmatpush3.msra.mxu0 %v5623_v14  ;;  %v3447_v14 = vld [vmem:[%s5845_s4] sm:$0xff]  ;;  %s976_s4 = sand.u32 1, %s4596_s1  }
 0xa76   : > { %4391 = vmatprep.subr.mxu0 %v4638_v1  ;;  %s3681_s6 = sshll.u32 %s976_s4, 3  ;;  %s3542_s3 = scalar_lea.sflag [#allocation3], %s976_s4 }
 0xa77   : > { %4392 = vmatpush3.msra.mxu0 %v5630_v17  ;;  %s978_s10 = scalar_lea.vmem [#allocation2], %s3681_s6 }
 0xa78   : > { %4393 = vmatprep.subr.mxu0 %v4638_v1  ;;  %s3559_s12 = sshll.u32 %s978_s10, 4  ;;  %s3560_s12 = int_to_ptr.vmem [resolvable:$true] %s3559_s12 }
 0xa79   : > { %4394 = vmatpush3.msra.mxu0 %v5637_v20  ;;  %s4544_s5 = scalar_lea.vmem %s3560_s12, 128  ;;  %p4551_p0 = scmp.lt.s32.totalorder %s3560_s12, %s4549_s15 }
 0xa7a   : > { %4395 = vmatprep.subr.mxu0 %v4638_v1  ;;  %p4545_p11 = scmp.ne.s32.totalorder %s3560_s12, %s4544_s5  ;;  %p4552_p1 = scmp.lt.s32.totalorder %s4550_s0, %s4544_s5 }
 0xa7b   : > { %4396 = vmatpush3.msra.mxu0 %v5643_v22 }
 0xa7c   : > { %4397 = vmatprep.subr.mxu0 %v4638_v1  ;;  %p4546_p12 = pnand %p4545_p11, %p4849_p5  ;;  %p4553_p2 = por %p4552_p1, %p4551_p0 }
 0xa7d   : > { %4398 = vmatpush3.msra.mxu0 %v5648_v23 }
 0xa7e   : > { %4399 = vmatprep.subr.mxu0 %v4638_v1  ;;  %p4547_p13 = pneg %p4546_p12 }
 0xa7f   : > { %4400 = vmatpush3.msra.mxu0 %v5655_v25  ;;  %v3699_v25 = vld [vmem:[%s4799_s8] ss:$0 sm:$0xff] }
 0xa80   : > { %4401 = vmatprep.subr.mxu0 %v4638_v1  ;;  %p4554_p3 = pnand %p4553_p2, %p4547_p13 }
 0xa81   : > { %4402 = vmatpush3.msra.mxu0 %v5660_v26 }
 0xa82   : > { %4403 = vmatprep.subr.mxu0 %v4638_v1 }
 0xa83   : > { %4404 = vmatpush3.msra.mxu0 %v5665_v27 }
 0xa84   : > { %4405 = vmatprep.subr.mxu0 %v4638_v1 }
 0xa85   : > { %4406 = vmatpush3.msra.mxu0 %v5670_v28 }
 0xa86   : > { %4407 = vmatprep.subr.mxu0 %v4638_v1 }
 0xa87   : > { %4408 = vmatpush3.msra.mxu0 %v5675_v30 }
 0xb28   : > { %v4010_v33 = vpop.f32.mrf.mxu0 }
 0xb2a   : > { %v4011_v36 = vpop.f32.mrf.mxu0 }
 0xb2b   : > { %v4012_v55 = vadd.f32 %v4011_v36, %v4010_v33 }
 0xb2d   : > { %v3283_v56 = vadd.f32 %v4012_v55, %v3696_v34 }
 0xb2f   : > { %v3286_v57 = vadd.f32 %v3283_v56, %v5433_v29 }
 0xb31   : > { %4375 = vmatmul.mubr.f32.vlgmr.msra.gmra.mxu1 %v3286_v57 }
 0xb32   : > { %4444 = vmatprep.mubr.msk.f32.mxu1 %vm4639_vm0, %v4638_v1  ;;  %4413 = vmatpush3.msra.mxu1 %v3462_v58 }
 0xb33   : > { %4414 = vmatprep.subr.mxu1 %v4638_v1 }
 0xb34   : > { %4415 = vmatpush3.msra.mxu1 %v3461_v59 }
 0xb35   : > { %4416 = vmatprep.subr.mxu1 %v4638_v1 }
 0xb36   : > { %4417 = vmatpush3.msra.mxu1 %v3460_v60 }
 0xb37   : > { %4418 = vmatprep.subr.mxu1 %v4638_v1 }
 0xb38   : > { %4419 = vmatpush3.msra.mxu1 %v3459_v61 }
 0xb39   : > { %4420 = vmatprep.subr.mxu1 %v4638_v1 }
 0xb3a   : > { %4421 = vmatpush3.msra.mxu1 %v3458_v2 }
 0xb3b   : > { %4422 = vmatprep.subr.mxu1 %v4638_v1 }
 0xb3c   : > { %4423 = vmatpush3.msra.mxu1 %v3457_v3 }
 0xb3d   : > { %4424 = vmatprep.subr.mxu1 %v4638_v1 }
 0xb3e   : > { %4425 = vmatpush3.msra.mxu1 %v3456_v4 }
 0xb3f   : > { %4426 = vmatprep.subr.mxu1 %v4638_v1 }
 0xb40   : > { %4427 = vmatpush3.msra.mxu1 %v3455_v5 }
 0xb41   : > { %4428 = vmatprep.subr.mxu1 %v4638_v1 }
 0xb42   : > { %4429 = vmatpush3.msra.mxu1 %v3454_v6 }
 0xb43   : > { %4430 = vmatprep.subr.mxu1 %v4638_v1 }
 0xb44   : > { %4431 = vmatpush3.msra.mxu1 %v3453_v7 }
 0xb45   : > { %4432 = vmatprep.subr.mxu1 %v4638_v1 }
 0xb46   : > { %4433 = vmatpush3.msra.mxu1 %v3452_v8 }
 0xb47   : > { %4434 = vmatprep.subr.mxu1 %v4638_v1 }
 0xb48   : > { %4435 = vmatpush3.msra.mxu1 %v3451_v9 }
 0xb49   : > { %4436 = vmatprep.subr.mxu1 %v4638_v1 }
 0xb4a   : > { %4437 = vmatpush3.msra.mxu1 %v3450_v11 }
 0xb4b   : > { %4438 = vmatprep.subr.mxu1 %v4638_v1 }
 0xb4c   : > { %4439 = vmatpush3.msra.mxu1 %v3449_v12 }
 0xb4d   : > { %4440 = vmatprep.subr.mxu1 %v4638_v1 }
 0xb4e   : > { %4441 = vmatpush3.msra.mxu1 %v3448_v13 }
 0xb4f   : > { %4442 = vmatprep.subr.mxu1 %v4638_v1 }
 0xb50   : > { %4443 = vmatpush3.msra.mxu1 %v3447_v14 }
 0xbf1   : > { %v3355_v29 = vpop.f32.mrf.mxu1 }
 0xbf2   : > { %v3359_v62 = vsub.f32 %v3286_v57, %v3355_v29 }
 0xbf3   : > { %v4376_v63 = vpop.f32.mrf.mxu1 }
 0xbf4   : > { %v3360_v0 = vmul.f32 %v3359_v62, %v3359_v62 }
 0xbf6   : > { %4410 = vmatmul.mubr.f32.vlgmr.msra.gmra.mxu0 %v3360_v0 }
 0xcb6   : > { %v3427_v15 = vpop.f32.mrf.mxu0 }
 0xcb7   : > { %v3428_v16 = vadd.f32 1e-05, %v3427_v15 }
 0xcb8   : > { %v4411_v17 = vpop.f32.mrf.mxu0 }
 0xcb9   : > { %4526 = vrsqrt.f32 %v3428_v16 }
 0xcc6   : > { %v4527_v19 = vpop.eup %4526 }
 0xcc7   : > { %v3432_v20 = vmul.f32 %v4527_v19, %v3359_v62 }
 0xcc9   : > { %v3439_v22 = vmul.f32 %v3697_v40, %v3432_v20 }
 0xccb   : > { %v3446_v23 = vadd.f32 %v3698_v21, %v3439_v22 }
 0xccd   : > { %4445 = vmatmul.mubr.f32.vlgmr.msra.gmra.mxu1 %v3446_v23 }
 0xd8d   : > { %v3536_v1 = vpop.f32.mrf.mxu1 }
 0xd8e   : > { %v3537_v26 = vadd.f32 %v3699_v25, %v3536_v1 }
 0xd8f   : > { %v4446_v27 = vpop.f32.mrf.mxu1 }
 0xd90   : > { %3540 = vst.msk [vmem:[%s978_s10] sm:$0xff] %vm1021_vm1, %v3537_v26 }
 0xd91   : > { %4557 = shalt.err (!%p4554_p3)
}
 0xd92   : > { %s4558_s9 = scalar_lea.hbm %s5769_s13, 128  ;;  %s4562_s4 = scalar_lea.hbm %s4804_s20, 256 }
 0xd93   : > { %p4559_p4 = scmp.ne.s32.totalorder %s5769_s13, %s4558_s9  ;;  %p4563_p9 = scmp.lt.s32.totalorder %s5769_s13, %s4804_s20 }
 0xd94   : > { %p4564_p10 = scmp.lt.s32.totalorder %s4562_s4, %s4558_s9 }
 0xd95   : > { %p4560_p7 = pnand %p4559_p4, %p4849_p5 }
 0xd96   : > { %p4565_p11 = por %p4564_p10, %p4563_p9 }
 0xd97   : > { %p4561_p8 = pneg %p4560_p7 }
 0xd99   : > { %p4566_p12 = pnand %p4565_p11, %p4561_p8 }
 0xd9b   : > { %4569 = shalt.err (!%p4566_p12)
}
 0xd9c   : > { %4447 = dma.vmem_to_hbm [thread:$0]  (%p4849_p5), %s3560_s12, 128, %s5769_s13, %s3542_s3  }
 0xd9d PF: > { %p4453_p13 = scmp.ge.s32.totalorder %s4604_s7, 2  ;;  %s3574_s14 = sand.u32 1, %s4592_s28  }
 0xd9e   : > { %s3575_s10 = scalar_lea.sflag [#allocation3], %s3574_s14 }
 0xd9f   : > { %p4450_p0 = pnand %p4453_p13, %p4853_p6 }
 0xda1   : > { %p4451_p1 = pneg %p4450_p0 }
 0xda3   : > { %4587 = dma.done.wait (%p4451_p1), %s3575_s10, 128  }
 0xda4   : > { %4589 = vsyncadd (%p4451_p1), %s3575_s10, 4294967168  ;;  %p76_p2 = scmp.ge.s32.totalorder %s4836_s11, 4   ;;  %s5868_s28 = smov %s4596_s1 }
 0xda5   : > { %s5869_s1 = smov %s4600_s2  ;;  %s5870_s2 = smov %s4847_s18 }
 0xda6   : > { %s5871_s7 = smov %s4836_s11  ;;  %78 = sbr.rel (!%p76_p2) target bundleno = 66 (0x42), region = 223 }
 0xdab   :  { %3587 = vsyncpa [#allocation3], 1 }
 0xdac   :  { %3589 = vsyncpa [#allocation3 + $0x1], 1 }

</bundles_post_ra>
